<compile_context>
chip_gen: v7x
topology: tpu7x:2x2x1
jax: 0.10.0
libtpu: 0.0.40
codegen_flags: <defaults>
</compile_context>

<pallas_src>
import functools

import jax
import jax.numpy as jnp
from jax import lax
from jax.experimental import pallas as pl
from jax.experimental.pallas import tpu as pltpu

VIS_DIM = 1080     # fixed by the module (connector expects 1080 visual features)
HIDDEN = 2911      # connector output width


def _round_up(x, m):
    return (x + m - 1) // m * m


def head_kernel(vis_ref, txt_ref, w1v_ref, w1t_ref, s1_ref, b1_ref,
                w2t_ref, s2_ref, b2_ref, out_ref):
    """One grid step processes one tile (width tn) of the 2911-wide hidden dim.

    vis_ref:  (B, 1080)    f32   visual backbone output (resident every step)
    txt_ref:  (B, h_text)  f32   text CLS embedding     (resident every step)
    w1v_ref:  (1080, tn)   int8  connector weight rows for the visual part
    w1t_ref:  (h_text, tn) int8  connector weight rows for the text part
    s1_ref:   (1, tn)      f32   per-hidden-channel dequant scale for W1
    b1_ref:   (1, tn)      f32   connector bias tile
    w2t_ref:  (L_pad, tn)  int8  output weight, transposed (labels on sublanes)
    s2_ref:   (1, L_pad)   f32   per-label dequant scale for W2 (resident)
    b2_ref:   (1, L_pad)   f32   output bias (resident)
    out_ref:  (B, L_pad)   f32   logits accumulator (same block every step)
    """
    j = pl.program_id(0)

    @pl.when(j == 0)
    def _():
        out_ref[...] = jnp.broadcast_to(b2_ref[...], out_ref.shape)

    # First matmul, split over the concatenated input dim (== cat + matmul).
    # int8 -> f32 is an exact cast; per-channel scale is applied post-matmul.
    xv = vis_ref[...]
    xt = txt_ref[...]
    hv = jnp.dot(xv, w1v_ref[...].astype(jnp.float32),
                 preferred_element_type=jnp.float32)
    ht = jnp.dot(xt, w1t_ref[...].astype(jnp.float32),
                 preferred_element_type=jnp.float32)
    h = jnp.maximum((hv + ht) * s1_ref[...] + b1_ref[...], 0.0)

    # TODO(synk): dropout(p=0.5) is eval-mode identity here; training-mode
    # dropout would mask `h` using pltpu.prng_seed + pltpu.prng_random_bits.

    # Second matmul: contract h's hidden dim with W2T's last dim ("NT" dot),
    # then apply the per-label scale.  Accumulate into the resident output.
    w2 = w2t_ref[...].astype(jnp.float32)               # (L_pad, tn)
    p = lax.dot_general(h, w2, (((1,), (1,)), ((), ())),
                        preferred_element_type=jnp.float32)   # (B, L_pad)
    out_ref[...] += p * s2_ref[...]


def _quantize_per_col(w):
    """Symmetric per-output-channel int8 quantization of a (in, out) matrix."""
    amax = jnp.max(jnp.abs(w), axis=0)                       # (out,)
    scale = jnp.where(amax > 0, amax / 127.0, 1.0)           # (out,)
    q = jnp.clip(jnp.round(w / scale), -127, 127).astype(jnp.int8)
    return q, scale.astype(jnp.float32)


def prepare_head_params(w1, b1, w2, b2, h_text, *, tn=1024):
    """One-time (model-load) int8 quantization + padding of the head params.

    w1: (1080+h_text, 2911), b1: (2911,), w2: (2911, num_labels), b2: (num_labels,)
    (weights stored transposed vs PyTorch, i.e. (in_features, out_features)).
    Zero padding + zero scales in the padded region are exact for the matmuls.
    """
    num_labels = w2.shape[1]
    N_pad = _round_up(HIDDEN, tn)
    L_pad = _round_up(num_labels, 32)      # int8 sublane packing (32 rows/group)

    q1, s1 = _quantize_per_col(w1.astype(jnp.float32))   # (D, 2911) int8, (2911,)
    q2, s2 = _quantize_per_col(w2.astype(jnp.float32))   # (2911, L) int8, (L,)

    # Split W1 along the input dim so the kernel never needs a concatenated slab.
    w1v = jnp.zeros((VIS_DIM, N_pad), jnp.int8).at[:, :HIDDEN].set(q1[:VIS_DIM])
    w1t = jnp.zeros((h_text, N_pad), jnp.int8).at[:, :HIDDEN].set(q1[VIS_DIM:])
    s1p = jnp.zeros((1, N_pad), jnp.float32).at[0, :HIDDEN].set(s1)
    b1p = jnp.zeros((1, N_pad), jnp.float32).at[0, :HIDDEN].set(b1.astype(jnp.float32))

    # W2 transposed: labels on the sublane axis -> no 128-lane padding traffic.
    w2t = jnp.zeros((L_pad, N_pad), jnp.int8).at[:num_labels, :HIDDEN].set(q2.T)
    s2p = jnp.zeros((1, L_pad), jnp.float32).at[0, :num_labels].set(s2)
    b2p = jnp.zeros((1, L_pad), jnp.float32).at[0, :num_labels].set(b2.astype(jnp.float32))

    return dict(w1v=w1v, w1t=w1t, s1=s1p, b1=b1p,
                w2t=w2t, s2=s2p, b2=b2p,
                num_labels=num_labels, tn=tn)


@functools.partial(jax.jit, static_argnames=("tn", "num_labels"))
def combined_head(visual_out, text_cls, w1v, w1t, s1, b1, w2t, s2, b2,
                  *, tn, num_labels):
    """Pallas implementation of concat + Linear + ReLU + (dropout) + Linear."""
    B = visual_out.shape[0]
    h_text = text_cls.shape[1]
    N_pad = w1v.shape[1]
    L_pad = w2t.shape[0]
    grid = (N_pad // tn,)

    flops = 2 * B * (VIS_DIM + h_text) * N_pad + 2 * B * N_pad * L_pad
    bytes_accessed = (
        (VIS_DIM + h_text) * N_pad          # int8 W1 (both parts)
        + L_pad * N_pad                     # int8 W2T
        + 2 * N_pad * 4 + 2 * L_pad * 4     # scales + biases
        + B * (VIS_DIM + h_text) * 4        # activations in
        + B * L_pad * 4)                    # logits out

    out = pl.pallas_call(
        head_kernel,
        out_shape=jax.ShapeDtypeStruct((B, L_pad), jnp.float32),
        grid_spec=pltpu.PrefetchScalarGridSpec(
            num_scalar_prefetch=0,
            grid=grid,
            in_specs=[
                pl.BlockSpec((B, VIS_DIM), lambda j: (0, 0)),    # visual feats (resident)
                pl.BlockSpec((B, h_text), lambda j: (0, 0)),     # text CLS (resident)
                pl.BlockSpec((VIS_DIM, tn), lambda j: (0, j)),   # W1 visual rows, col tile
                pl.BlockSpec((h_text, tn), lambda j: (0, j)),    # W1 text rows, col tile
                pl.BlockSpec((1, tn), lambda j: (0, j)),         # W1 scale tile
                pl.BlockSpec((1, tn), lambda j: (0, j)),         # b1 tile
                pl.BlockSpec((L_pad, tn), lambda j: (0, j)),     # W2T col tile
                pl.BlockSpec((1, L_pad), lambda j: (0, 0)),      # W2 scale (resident)
                pl.BlockSpec((1, L_pad), lambda j: (0, 0)),      # b2 (resident)
            ],
            out_specs=pl.BlockSpec((B, L_pad), lambda j: (0, 0)),
        ),
        compiler_params=pltpu.CompilerParams(
            # Reduction over hidden tiles with a resident accumulator requires
            # sequential ("arbitrary") semantics on this axis.
            dimension_semantics=("arbitrary",),
        ),
        cost_estimate=pl.CostEstimate(
            flops=flops, transcendentals=0, bytes_accessed=bytes_accessed),
    )(visual_out.astype(jnp.float32), text_cls.astype(jnp.float32),
      w1v, w1t, s1, b1, w2t, s2, b2)

    return out[:, :num_labels]


def _init_linear(key, fan_in, fan_out):
    """Deterministic PyTorch-style Linear init; returns (W[in,out], b[out])."""
    kw, kb = jax.random.split(key)
    bound = 1.0 / jnp.sqrt(jnp.asarray(fan_in, jnp.float32))
    w = jax.random.uniform(kw, (fan_in, fan_out), jnp.float32, -bound, bound)
    b = jax.random.uniform(kb, (fan_out,), jnp.float32, -bound, bound)
    return w, b


if __name__ == "__main__":
    # Small, module-consistent shapes.
    B = 2            # batch
    SEQ = 8          # text sequence length
    H_TEXT = 32      # text_model.config.hidden_size
    NUM_LABELS = 5

    key = jax.random.PRNGKey(0)
    k_vis, k_txt, k_l1, k_l2 = jax.random.split(key, 4)

    # Backbones are external submodules -> simulate their outputs deterministically.
    visual_out = jax.random.normal(k_vis, (B, VIS_DIM), jnp.float32)        # visual_model(visual_feats)
    last_hidden_state = jax.random.normal(k_txt, (B, SEQ, H_TEXT), jnp.float32)
    text_cls = last_hidden_state[:, 0, :]                                   # [:, 0, :] CLS token (glue)

    # Head parameters (deterministic init, PyTorch Linear convention).
    w1, b1 = _init_linear(k_l1, VIS_DIM + H_TEXT, HIDDEN)   # connector
    w2, b2 = _init_linear(k_l2, HIDDEN, NUM_LABELS)         # out_layer

    # One-time weight prep (model-load time), then the hot call.
    params = prepare_head_params(w1, b1, w2, b2, H_TEXT)
    out = combined_head(visual_out, text_cls,
                        params["w1v"], params["w1t"], params["s1"], params["b1"],
                        params["w2t"], params["s2"], params["b2"],
                        tn=params["tn"], num_labels=params["num_labels"])
    out = jax.block_until_ready(out)

    # Reference checks.
    combined_ref = jnp.concatenate([visual_out, text_cls], axis=1)

    # (a) quantization-matched reference (dequantized int8 weights, f32 math)
    #     -> tight check of the kernel itself.
    q1, s1 = _quantize_per_col(w1)
    q2, s2 = _quantize_per_col(w2)
    w1_dq = q1.astype(jnp.float32) * s1
    w2_dq = q2.astype(jnp.float32) * s2
    ref_q = jnp.maximum(combined_ref @ w1_dq + b1, 0.0) @ w2_dq + b2

    # (b) full-precision module semantics -> loose check (int8 weight-quant noise).
    ref_f32 = jnp.maximum(combined_ref @ w1 + b1, 0.0) @ w2 + b2

    assert out.shape == (B, NUM_LABELS), out.shape
    assert jnp.allclose(out, ref_q, atol=2e-3, rtol=2e-3), \
        "mismatch vs quantization-matched reference"
    assert jnp.allclose(out, ref_f32, atol=3e-2, rtol=3e-2), \
        "mismatch vs f32 reference"

    print("KERNEL_OK")
</pallas_src>

<mosaic_0001>
module attributes {stable_mosaic.version = 11 : i64} {
  func.func @head_kernel(%arg0: i32, %arg1: memref<2x1080xf32, #tpu.memory_space<vmem>>, %arg2: memref<2x32xf32, #tpu.memory_space<vmem>>, %arg3: memref<1080x1024xi8, #tpu.memory_space<vmem>>, %arg4: memref<32x1024xi8, #tpu.memory_space<vmem>>, %arg5: memref<1x1024xf32, #tpu.memory_space<vmem>>, %arg6: memref<1x1024xf32, #tpu.memory_space<vmem>>, %arg7: memref<32x1024xi8, #tpu.memory_space<vmem>>, %arg8: memref<1x32xf32, #tpu.memory_space<vmem>>, %arg9: memref<1x32xf32, #tpu.memory_space<vmem>>, %arg10: memref<2x32xf32, #tpu.memory_space<vmem>>) attributes {dimension_semantics = [#tpu.dimension_semantics<arbitrary>], iteration_bounds = array<i64: 3>, scalar_prefetch = 0 : i64, scratch_operands = 0 : i64, tpu.core_type = #tpu.core_type<tc>, window_params = [{pipeline_mode = #tpu.pipeline_mode<synchronous>, transform_indices = @transform_0, window_bounds = array<i64: 2, 1080>}, {pipeline_mode = #tpu.pipeline_mode<synchronous>, transform_indices = @transform_1, window_bounds = array<i64: 2, 32>}, {transform_indices = @transform_2, window_bounds = array<i64: 1080, 1024>}, {transform_indices = @transform_3, window_bounds = array<i64: 32, 1024>}, {transform_indices = @transform_4, window_bounds = array<i64: 1, 1024>}, {transform_indices = @transform_5, window_bounds = array<i64: 1, 1024>}, {transform_indices = @transform_6, window_bounds = array<i64: 32, 1024>}, {pipeline_mode = #tpu.pipeline_mode<synchronous>, transform_indices = @transform_7, window_bounds = array<i64: 1, 32>}, {pipeline_mode = #tpu.pipeline_mode<synchronous>, transform_indices = @transform_8, window_bounds = array<i64: 1, 32>}, {pipeline_mode = #tpu.pipeline_mode<synchronous>, transform_indices = @transform_9, window_bounds = array<i64: 2, 32>}]} {
    %c0_i32 = arith.constant 0 : i32
    %0 = arith.cmpi eq, %arg0, %c0_i32 : i32
    %1 = arith.extui %0 : i1 to i32
    %c0_i32_0 = arith.constant 0 : i32
    %2 = arith.cmpi ne, %1, %c0_i32_0 : i32
    scf.if %2 {
      %c0_23 = arith.constant 0 : index
      %c0_24 = arith.constant 0 : index
      %29 = vector.load %arg9[%c0_23, %c0_24] : memref<1x32xf32, #tpu.memory_space<vmem>>, vector<1x32xf32>
      %30 = vector.shape_cast %29 : vector<1x32xf32> to vector<1x32xf32>
      %31 = vector.broadcast %30 : vector<1x32xf32> to vector<2x32xf32>
      %c0_25 = arith.constant 0 : index
      %c0_26 = arith.constant 0 : index
      %32 = vector.load %arg10[%c0_25, %c0_26] : memref<2x32xf32, #tpu.memory_space<vmem>>, vector<2x32xf32>
      tpu.vector_store %arg10[%c0_25, %c0_26], %31 {strides = array<i32>} : memref<2x32xf32, #tpu.memory_space<vmem>>, vector<2x32xf32>,
    } else {
    }
    %c0 = arith.constant 0 : index
    %c0_1 = arith.constant 0 : index
    %3 = vector.load %arg1[%c0, %c0_1] : memref<2x1080xf32, #tpu.memory_space<vmem>>, vector<2x1080xf32>
    %c0_2 = arith.constant 0 : index
    %c0_3 = arith.constant 0 : index
    %4 = vector.load %arg2[%c0_2, %c0_3] : memref<2x32xf32, #tpu.memory_space<vmem>>, vector<2x32xf32>
    %c0_4 = arith.constant 0 : index
    %c0_5 = arith.constant 0 : index
    %5 = vector.load %arg3[%c0_4, %c0_5] : memref<1080x1024xi8, #tpu.memory_space<vmem>>, vector<1080x1024xi8>
    %6 = arith.sitofp %5 : vector<1080x1024xi8> to vector<1080x1024xf32>
    %cst = arith.constant dense<0.000000e+00> : vector<2x1024xf32>
    %7 = tpu.matmul %3, %6, %cst {dimension_numbers = #tpu.dot_dimension_numbers<[1], [0], [0], [1], [0, 0, 1, 1], [], []>} : vector<2x1080xf32>, vector<1080x1024xf32>, vector<2x1024xf32> -> vector<2x1024xf32>
    %c0_6 = arith.constant 0 : index
    %c0_7 = arith.constant 0 : index
    %8 = vector.load %arg4[%c0_6, %c0_7] : memref<32x1024xi8, #tpu.memory_space<vmem>>, vector<32x1024xi8>
    %9 = arith.sitofp %8 : vector<32x1024xi8> to vector<32x1024xf32>
    %cst_8 = arith.constant dense<0.000000e+00> : vector<2x1024xf32>
    %10 = tpu.matmul %4, %9, %cst_8 {dimension_numbers = #tpu.dot_dimension_numbers<[1], [0], [0], [1], [0, 0, 1, 1], [], []>} : vector<2x32xf32>, vector<32x1024xf32>, vector<2x1024xf32> -> vector<2x1024xf32>
    %11 = arith.addf %7, %10 : vector<2x1024xf32>
    %c0_9 = arith.constant 0 : index
    %c0_10 = arith.constant 0 : index
    %12 = vector.load %arg5[%c0_9, %c0_10] : memref<1x1024xf32, #tpu.memory_space<vmem>>, vector<1x1024xf32>
    %13 = vector.broadcast %12 : vector<1x1024xf32> to vector<2x1024xf32>
    %14 = arith.mulf %11, %13 : vector<2x1024xf32>
    %c0_11 = arith.constant 0 : index
    %c0_12 = arith.constant 0 : index
    %15 = vector.load %arg6[%c0_11, %c0_12] : memref<1x1024xf32, #tpu.memory_space<vmem>>, vector<1x1024xf32>
    %16 = vector.broadcast %15 : vector<1x1024xf32> to vector<2x1024xf32>
    %17 = arith.addf %14, %16 : vector<2x1024xf32>
    %cst_13 = arith.constant 0.000000e+00 : f32
    %18 = vector.broadcast %cst_13 : f32 to vector<2x1024xf32>
    %19 = arith.maximumf %17, %18 : vector<2x1024xf32>
    %c0_14 = arith.constant 0 : index
    %c0_15 = arith.constant 0 : index
    %20 = vector.load %arg7[%c0_14, %c0_15] : memref<32x1024xi8, #tpu.memory_space<vmem>>, vector<32x1024xi8>
    %21 = arith.sitofp %20 : vector<32x1024xi8> to vector<32x1024xf32>
    %cst_16 = arith.constant dense<0.000000e+00> : vector<2x32xf32>
    %22 = tpu.matmul %19, %21, %cst_16 {dimension_numbers = #tpu.dot_dimension_numbers<[1], [1], [0], [0], [0, 0, 1, 0], [], []>} : vector<2x1024xf32>, vector<32x1024xf32>, vector<2x32xf32> -> vector<2x32xf32>
    %c0_17 = arith.constant 0 : index
    %c0_18 = arith.constant 0 : index
    %23 = vector.load %arg10[%c0_17, %c0_18] : memref<2x32xf32, #tpu.memory_space<vmem>>, vector<2x32xf32>
    %c0_19 = arith.constant 0 : index
    %c0_20 = arith.constant 0 : index
    %24 = vector.load %arg8[%c0_19, %c0_20] : memref<1x32xf32, #tpu.memory_space<vmem>>, vector<1x32xf32>
    %25 = vector.broadcast %24 : vector<1x32xf32> to vector<2x32xf32>
    %26 = arith.mulf %22, %25 : vector<2x32xf32>
    %27 = arith.addf %23, %26 : vector<2x32xf32>
    %c0_21 = arith.constant 0 : index
    %c0_22 = arith.constant 0 : index
    %28 = vector.load %arg10[%c0_21, %c0_22] : memref<2x32xf32, #tpu.memory_space<vmem>>, vector<2x32xf32>
    tpu.vector_store %arg10[%c0_21, %c0_22], %27 {strides = array<i32>} : memref<2x32xf32, #tpu.memory_space<vmem>>, vector<2x32xf32>,
    return
  }
  func.func @transform_0(%arg0: i32) -> (i32, i32) {
    %c0_i32 = arith.constant 0 : i32
    %c0_i32_0 = arith.constant 0 : i32
    %c0_i32_1 = arith.constant 0 : i32
    return %c0_i32, %c0_i32_0 : i32, i32
  }
  func.func @transform_1(%arg0: i32) -> (i32, i32) {
    %c0_i32 = arith.constant 0 : i32
    %c0_i32_0 = arith.constant 0 : i32
    %c0_i32_1 = arith.constant 0 : i32
    return %c0_i32, %c0_i32_0 : i32, i32
  }
  func.func @transform_2(%arg0: i32) -> (i32, i32) {
    %c0_i32 = arith.constant 0 : i32
    %c0_i32_0 = arith.constant 0 : i32
    return %c0_i32, %arg0 : i32, i32
  }
  func.func @transform_3(%arg0: i32) -> (i32, i32) {
    %c0_i32 = arith.constant 0 : i32
    %c0_i32_0 = arith.constant 0 : i32
    return %c0_i32, %arg0 : i32, i32
  }
  func.func @transform_4(%arg0: i32) -> (i32, i32) {
    %c0_i32 = arith.constant 0 : i32
    %c0_i32_0 = arith.constant 0 : i32
    return %c0_i32, %arg0 : i32, i32
  }
  func.func @transform_5(%arg0: i32) -> (i32, i32) {
    %c0_i32 = arith.constant 0 : i32
    %c0_i32_0 = arith.constant 0 : i32
    return %c0_i32, %arg0 : i32, i32
  }
  func.func @transform_6(%arg0: i32) -> (i32, i32) {
    %c0_i32 = arith.constant 0 : i32
    %c0_i32_0 = arith.constant 0 : i32
    return %c0_i32, %arg0 : i32, i32
  }
  func.func @transform_7(%arg0: i32) -> (i32, i32) {
    %c0_i32 = arith.constant 0 : i32
    %c0_i32_0 = arith.constant 0 : i32
    %c0_i32_1 = arith.constant 0 : i32
    return %c0_i32, %c0_i32_0 : i32, i32
  }
  func.func @transform_8(%arg0: i32) -> (i32, i32) {
    %c0_i32 = arith.constant 0 : i32
    %c0_i32_0 = arith.constant 0 : i32
    %c0_i32_1 = arith.constant 0 : i32
    return %c0_i32, %c0_i32_0 : i32, i32
  }
  func.func @transform_9(%arg0: i32) -> (i32, i32) {
    %c0_i32 = arith.constant 0 : i32
    %c0_i32_0 = arith.constant 0 : i32
    %c0_i32_1 = arith.constant 0 : i32
    return %c0_i32, %c0_i32_0 : i32, i32
  }
}

</mosaic_0001>

<bundles_post_ra>
// kernel: combined_head.1
= control target key start
LH: loop header
LB: loop body
LE: loop exit
PB: predicated region body
PF: predicated region fallthrough
CT: control target
= control target key end

     0   :  { %s8061_s0 = inlined_call_operand.hbm [shape: f32[2,1080], index: 0, kind: input, shape index: {}]   ;;  %s8062_s1 = inlined_call_operand.hbm [shape: f32[2,32], index: 1, kind: input, shape index: {}]   ;;  %s8063_s2 = inlined_call_operand.hbm [shape: s8[1080,3072], index: 2, kind: input, shape index: {}]   ;;  %s8064_s3 = inlined_call_operand.hbm [shape: s8[32,3072], index: 3, kind: input, shape index: {}]   ;;  %s8065_s4 = inlined_call_operand.hbm [shape: f32[1,3072], index: 4, kind: input, shape index: {}]   ;;  %s8066_s5 = inlined_call_operand.hbm [shape: f32[1,3072], index: 5, kind: input, shape index: {}]   ;;  %s8067_s6 = inlined_call_operand.hbm [shape: s8[32,3072], index: 6, kind: input, shape index: {}]   ;;  %s8068_s7 = inlined_call_operand.hbm [shape: f32[1,32], index: 7, kind: input, shape index: {}]   ;;  %s8069_s8 = inlined_call_operand.hbm [shape: f32[1,32], index: 8, kind: input, shape index: {}]   ;;  %s8070_s9 = inlined_call_operand.hbm [shape: f32[2,32], index: 9, kind: output, shape index: {}]  }
   0x1   :  { %8090 = sst [smem:[#allocation26_spill]] %s8061_s0 }
   0x2   :  { %8091 = sst [smem:[#allocation27_spill]] %s8063_s2 }
   0x3   :  { %8092 = sst [smem:[#allocation28_spill]] %s8070_s9 }
   0x4   :  { %14 = vsyncpa [#allocation3], 0 }
   0x5   :  { %15 = vsyncpa [#allocation6], 0 }
   0x6   :  { %16 = vsyncpa [#allocation14], 0 }
   0x7   :  { %17 = vsyncpa [#allocation4], 0  ;;  %s7219_s30 = smov 0   ;;  %s7221_s10 = smov 0  }
   0x8   :  { %s7223_s11 = smov 0   ;;  %s7225_s12 = smov 0  }
   0x9 LB: > { %8093 = sst [smem:[#allocation22_spill]] %s7148_s11  ;;  %s7238_s13 = sadd.s32 4294967295, %s7152_s12   ;;  %s7152_s12 = sphi %s7225_s12, %s8130_s12   ;;  %s7148_s11 = sphi %s7223_s11, %s8132_s11   ;;  %s7144_s10 = sphi %s7221_s10, %s8134_s10   ;;  %s7140_s30 = sphi %s7219_s30, %s8133_s30  }
   0xa   : > { %s7241_s14 = sadd.s32 1, %s7152_s12   ;;  %s72_s16 = sadd.s32 1, %s7148_s11 }
   0xb   : > { %8094 = sst [smem:[#allocation23_spill]] %s7241_s14  ;;  %s69_s15 = ssub.s32 %s7152_s12, %s7241_s14 }
   0xc   : > { %p70_p0 = scmp.eq.s32.totalorder %s69_s15, 0  ;;  %p79_p1 = scmp.ne.s32.totalorder %s7148_s11, %s7144_s10 }
   0xd   : > { %p80_p2 = scmp.eq.s32.totalorder %s7152_s12, 0  ;;  %p85_p3 = scmp.ne.s32.totalorder %s7144_s10, %s7140_s30 }
   0xe   : > { %s7251_s17 = scalar_select %p70_p0, %s7148_s11, %s72_s16  }
   0xf   : > { %p7253_p4 = por %p80_p2, %p79_p1  ;;  %p8071_p5 = scmp.eq.s32.totalorder %s7238_s13, 0 }
  0x10   : > { %8095 = sst [smem:[#allocation24_spill]] %s7251_s17  ;;  %p5462_p6 = scmp.ge.s32.totalorder %s7152_s12, 1 }
  0x11   : > { %p263_p7 = scmp.lt.s32.totalorder %s7152_s12, 4  ;;  %p7262_p8 = por %p8071_p5, %p85_p3 }
  0x12   : > { %s7154_s21 = smov [#allocation2]   ;;  %p6758_p12 = scmp.lt.s32.totalorder %s7152_s12, 3 }
  0x13   : > { %s8097_s19 = scalar_select %p7262_p8, 1, 0 }
  0x14   : > { %p7267_p10 = pnand %p5462_p6, %p263_p7  ;;  %s276_s22 = sshll.u32 %s7154_s21, 4  ;;  %s277_s22 = int_to_ptr.vmem [resolvable:$true] %s276_s22 }
  0x15   : > { %8098 = sst [smem:[#allocation25_spill]] %s8097_s19  ;;  %s320_s23 = sand.u32 1, %s7152_s12  }
  0x16   : > { %s8099_s20 = scalar_select %p7267_p10, 1, 0 }
  0x17   : > { %p6725_p11 = pneg %p7267_p10  ;;  %p7283_p0 = pnand %p6758_p12, %p7253_p4 }
  0x18   : > { %s7288_s26 = sand.u32 1, %s7148_s11   ;;  %s8102_s0 = sld [smem:[#allocation26_spill]] }
  0x19   : > { %p7277_p13 = pnand %p6725_p11, %p8071_p5  ;;  %s6693_s27 = smul.u32 2160, %s7288_s26 }
  0x1a   : > { %s8101_s25 = scalar_select %p7283_p0, 1, 0 }
  0x1b   : > { %s8100_s24 = scalar_select %p7277_p13, 1, 0 }
  0x1c   : > { %p7299_p2 = pneg %p7277_p13 }
  0x1e   : > { %s6810_s30 = scalar_lea.hbm %s8102_s0, 288 }
  0x1f   : > { %p6811_p1 = scmp.ne.s32.totalorder %s8102_s0, %s6810_s30  ;;  %p6817_p6 = scmp.lt.u32.totalorder %s6810_s30, %s8102_s0 }
  0x20   : > { %s8103_s18 = scalar_select %p7299_p2, 1, 0 }
  0x21   : > { %p6813_p3 = pnand %p7299_p2, %p6811_p1 }
  0x23   : > { %p6814_p4 = pneg %p6813_p3 }
  0x25   : > { %p6819_p7 = pnand %p6817_p6, %p6814_p4 }
  0x27   : > { %6822 = shalt.err (!%p6819_p7)
}
  0x28   : > { %s6823_s28 = scalar_lea.vmem %s277_s22, 288  ;;  %p6831_p5 = scmp.lt.s32.totalorder %s277_s22, %s277_s22 }
  0x29   : > { %p6824_p11 = scmp.ne.s32.totalorder %s277_s22, %s6823_s28  ;;  %p6832_p8 = scmp.lt.s32.totalorder %s6823_s28, %s6823_s28 }
  0x2b   : > { %p6826_p12 = pnand %p6824_p11, %p7299_p2  ;;  %p6833_p10 = por %p6832_p8, %p6831_p5 }
  0x2d   : > { %p6827_p9 = pneg %p6826_p12 }
  0x2f   : > { %p6834_p0 = pnand %p6833_p10, %p6827_p9 }
  0x31   : > { %6837 = shalt.err (!%p6834_p0)
}
  0x32   : > { %6728 = dma.hbm_to_vmem [thread:$0]  (!%p7277_p13), %s8102_s0, 288, %s277_s22, [#allocation3]  }
  0x33   : > { %s5507_s17 = sshll.u32 %s7152_s12, 8  ;;  %s324_s30 = scalar_lea.vmem [#allocation7], %s6693_s27 }
  0x34   : > { %s331_s16 = sshll.u32 %s324_s30, 4  ;;  %s8104_s2 = sld [smem:[#allocation27_spill]]  ;;  %s7321_s16 = int_to_ptr.vmem [resolvable:$true] %s331_s16 }
  0x35   : > { %s8086_s28 = sshll.u32 %s7288_s26, 6  ;;  %s7324_s29 = scalar_lea.sflag [#allocation3], %s320_s23 }
  0x36   : > { %p8105_p8 = scmp.ne.s32.totalorder %s8101_s25, 0 }
  0x38   : > { %p7330_p9 = pneg %p8105_p8 }
  0x3a   : > { %s7319_s14 = scalar_lea.hbm %s8104_s2, %s5507_s17  ;;  %s6843_s17 = scalar_lea.hbm %s8104_s2, 103680 }
  0x3b   : > { %s6838_s15 = scalar_lea.hbm %s7319_s14, 34560  ;;  %p6844_p1 = scmp.lt.u32.totalorder %s7319_s14, %s8104_s2 }
  0x3c   : > { %p6839_p5 = scmp.ne.s32.totalorder %s7319_s14, %s6838_s15  ;;  %p6845_p3 = scmp.lt.u32.totalorder %s6843_s17, %s6838_s15 }
  0x3d   : > { %s8106_s22 = scalar_select %p7330_p9, 1, 0 }
  0x3e   : > { %p6841_p10 = pnand %p7330_p9, %p6839_p5  ;;  %p6846_p4 = por %p6845_p3, %p6844_p1 }
  0x3f   : > { %p6847_p6 = scmp.lt.u32.totalorder %s6838_s15, %s7319_s14 }
  0x40   : > { %p6842_p0 = pneg %p6841_p10 }
  0x41   : > { %p6848_p7 = por %p6847_p6, %p6846_p4 }
  0x43   : > { %p6849_p11 = pnand %p6848_p7, %p6842_p0 }
  0x45   : > { %6852 = shalt.err (!%p6849_p11)
}
  0x46   : > { %s6853_s23 = scalar_lea.vmem %s7321_s16, 34560  ;;  %s7155_s11 = smov [#allocation7]  }
  0x47   : > { %p6854_p12 = scmp.ne.s32.totalorder %s7321_s16, %s6853_s23  ;;  %s6858_s27 = sshll.u32 %s7155_s11, 4  ;;  %s6859_s27 = int_to_ptr.vmem [resolvable:$false] %s6858_s27 }
  0x48   : > { %s6860_s30 = scalar_lea.vmem %s6859_s27, 69120  ;;  %p6861_p13 = scmp.lt.s32.totalorder %s7321_s16, %s6859_s27 }
  0x49   : > { %p6856_p5 = pnand %p6854_p12, %p7330_p9  ;;  %p6862_p2 = scmp.lt.s32.totalorder %s6860_s30, %s6853_s23 }
  0x4b   : > { %p6857_p10 = pneg %p6856_p5  ;;  %p6863_p1 = por %p6862_p2, %p6861_p13 }
  0x4d   : > { %p6864_p3 = pnand %p6863_p1, %p6857_p10 }
  0x4f   : > { %6867 = shalt.err (!%p6864_p3)
}
  0x50   : > { %s7156_s15 = smov 768   ;;  %s7157_s17 = smov 256  }
  0x51   : > { %s7158_s21 = smov 16   ;;  %s8087_s11 = sshll.u32 %s7152_s12, 10 }
  0x52   : > { %6741 = dma.hbm_to_vmem [thread:$0]  (!%p8105_p8), %s7319_s14, 34560, %s7321_s16, %s7324_s29, %s7156_s15, %s7157_s17, %s7158_s21  }
  0x53   : > { %s7360_s30 = scalar_lea.hbm %s8064_s3, %s8087_s11  ;;  %s345_s0 = scalar_lea.vmem [#allocation8], %s8086_s28 }
  0x54   : > { %s353_s2 = sshll.u32 %s345_s0, 4  ;;  %s5473_s9 = sshll.u32 %s7288_s26, 3  ;;  %s354_s2 = int_to_ptr.vmem [resolvable:$true] %s353_s2 }
  0x55   : > { %s6868_s19 = scalar_lea.hbm %s7360_s30, 1024  ;;  %s6873_s15 = scalar_lea.hbm %s8064_s3, 3072 }
  0x56   : > { %p6869_p13 = scmp.ne.s32.totalorder %s7360_s30, %s6868_s19  ;;  %p6874_p4 = scmp.lt.u32.totalorder %s7360_s30, %s8064_s3 }
  0x57   : > { %p6875_p6 = scmp.lt.u32.totalorder %s6873_s15, %s6868_s19  ;;  %p6877_p11 = scmp.lt.u32.totalorder %s6868_s19, %s7360_s30 }
  0x58   : > { %p6871_p2 = pnand %p6869_p13, %p7330_p9 }
  0x59   : > { %p6876_p7 = por %p6875_p6, %p6874_p4 }
  0x5a   : > { %p6872_p0 = pneg %p6871_p2 }
  0x5b   : > { %p6878_p12 = por %p6877_p11, %p6876_p7 }
  0x5d   : > { %p6879_p5 = pnand %p6878_p12, %p6872_p0 }
  0x5f   : > { %6882 = shalt.err (!%p6879_p5)
}
  0x60   : > { %s6883_s0 = scalar_lea.vmem %s354_s2, 1024  ;;  %s7159_s23 = smov [#allocation8]  }
  0x61   : > { %p6884_p10 = scmp.ne.s32.totalorder %s354_s2, %s6883_s0  ;;  %s6888_s27 = sshll.u32 %s7159_s23, 4  ;;  %s6889_s27 = int_to_ptr.vmem [resolvable:$false] %s6888_s27 }
  0x62   : > { %s6890_s14 = scalar_lea.vmem %s6889_s27, 2048  ;;  %p6891_p13 = scmp.lt.s32.totalorder %s354_s2, %s6889_s27 }
  0x63   : > { %p6886_p1 = pnand %p6884_p10, %p7330_p9  ;;  %p6892_p2 = scmp.lt.s32.totalorder %s6890_s14, %s6883_s0 }
  0x65   : > { %p6887_p3 = pneg %p6886_p1  ;;  %p6893_p8 = por %p6892_p2, %p6891_p13 }
  0x67   : > { %p6894_p4 = pnand %p6893_p8, %p6887_p3 }
  0x69   : > { %6897 = shalt.err (!%p6894_p4)
}
  0x6a   : > { %p8107_p6 = scmp.ne.s32.totalorder %s8101_s25, 0  ;;  %s5509_s19 = sshll.u32 %s7152_s12, 7 }
  0x6b   : > { %s7389_s17 = scalar_lea.hbm %s8065_s4, %s5509_s19  ;;  %s364_s21 = scalar_lea.vmem [#allocation9], %s5473_s9 }
  0x6c   : > { %6744 = dma.hbm_to_vmem [thread:$0]  (!%p8107_p6), %s7360_s30, 1024, %s354_s2, %s7324_s29  }
  0x6d   : > { %s372_s0 = sshll.u32 %s364_s21, 4  ;;  %s6898_s23 = scalar_lea.hbm %s7389_s17, 128  ;;  %s373_s0 = int_to_ptr.vmem [resolvable:$true] %s372_s0 }
  0x6e   : > { %p6899_p8 = scmp.ne.s32.totalorder %s7389_s17, %s6898_s23  ;;  %s6903_s27 = scalar_lea.hbm %s8065_s4, 384 }
  0x6f   : > { %p6904_p11 = scmp.lt.u32.totalorder %s7389_s17, %s8065_s4  ;;  %p6905_p12 = scmp.lt.u32.totalorder %s6903_s27, %s6898_s23 }
  0x70   : > { %p6901_p0 = pnand %p6899_p8, %p7330_p9  ;;  %p6907_p10 = scmp.lt.u32.totalorder %s6898_s23, %s7389_s17 }
  0x71   : > { %p6906_p5 = por %p6905_p12, %p6904_p11 }
  0x72   : > { %p6902_p7 = pneg %p6901_p0 }
  0x73   : > { %p6908_p1 = por %p6907_p10, %p6906_p5 }
  0x75   : > { %p6909_p3 = pnand %p6908_p1, %p6902_p7 }
  0x77   : > { %6912 = shalt.err (!%p6909_p3)
}
  0x78   : > { %s6913_s15 = scalar_lea.vmem %s373_s0, 128  ;;  %s7160_s21 = smov [#allocation9]  }
  0x79   : > { %p6914_p13 = scmp.ne.s32.totalorder %s373_s0, %s6913_s15  ;;  %s6918_s28 = sshll.u32 %s7160_s21, 4  ;;  %s6919_s28 = int_to_ptr.vmem [resolvable:$false] %s6918_s28 }
  0x7a   : > { %s6920_s2 = scalar_lea.vmem %s6919_s28, 256  ;;  %p6921_p8 = scmp.lt.s32.totalorder %s373_s0, %s6919_s28 }
  0x7b   : > { %p6916_p2 = pnand %p6914_p13, %p7330_p9  ;;  %p6922_p0 = scmp.lt.s32.totalorder %s6920_s2, %s6913_s15 }
  0x7d   : > { %p6917_p4 = pneg %p6916_p2  ;;  %p6923_p6 = por %p6922_p0, %p6921_p8 }
  0x7f   : > { %p6924_p11 = pnand %p6923_p6, %p6917_p4 }
  0x81   : > { %6927 = shalt.err (!%p6924_p11)
}
  0x82   : > { %p8108_p12 = scmp.ne.s32.totalorder %s8101_s25, 0  ;;  %s7161_s23 = smov [#allocation5]  }
  0x83   : > { %s287_s30 = sshll.u32 %s7161_s23, 4  ;;  %s7416_s16 = scalar_lea.hbm %s8066_s5, %s5509_s19  ;;  %s288_s30 = int_to_ptr.vmem [resolvable:$true] %s287_s30 }
  0x84   : > { %6747 = dma.hbm_to_vmem [thread:$0]  (!%p8108_p12), %s7389_s17, 128, %s373_s0, %s7324_s29  }
  0x85   : > { %s6928_s21 = scalar_lea.hbm %s8062_s1, 32  ;;  %p8109_p7 = scmp.ne.s32.totalorder %s8103_s18, 0 }
  0x86   : > { %p6929_p6 = scmp.ne.s32.totalorder %s8062_s1, %s6928_s21  ;;  %p6935_p1 = scmp.lt.u32.totalorder %s6928_s21, %s8062_s1 }
  0x88   : > { %p6931_p5 = pnand %p6929_p6, %p8109_p7 }
  0x8a   : > { %p6932_p10 = pneg %p6931_p5 }
  0x8c   : > { %p6937_p3 = pnand %p6935_p1, %p6932_p10 }
  0x8e   : > { %6940 = shalt.err (!%p6937_p3)
}
  0x8f   : > { %s6941_s23 = scalar_lea.vmem %s288_s30, 32  ;;  %p6949_p8 = scmp.lt.s32.totalorder %s288_s30, %s288_s30 }
  0x90   : > { %p6942_p13 = scmp.ne.s32.totalorder %s288_s30, %s6941_s23  ;;  %p6950_p0 = scmp.lt.s32.totalorder %s6941_s23, %s6941_s23 }
  0x92   : > { %p6944_p2 = pnand %p6942_p13, %p8109_p7  ;;  %p6951_p11 = por %p6950_p0, %p6949_p8 }
  0x94   : > { %p6945_p4 = pneg %p6944_p2 }
  0x96   : > { %p6952_p12 = pnand %p6951_p11, %p6945_p4 }
  0x98   : > { %6955 = shalt.err (!%p6952_p12)
}
  0x99   : > { %p8110_p6 = scmp.ne.s32.totalorder %s8100_s24, 0  ;;  %s383_s27 = scalar_lea.vmem [#allocation10], %s5473_s9 }
  0x9a   : > { %s391_s14 = sshll.u32 %s383_s27, 4  ;;  %s7162_s28 = smov [#allocation12]   ;;  %s7438_s14 = int_to_ptr.vmem [resolvable:$true] %s391_s14 }
  0x9b   : > { %6731 = dma.hbm_to_vmem [thread:$0]  (!%p8110_p6), %s8062_s1, 32, %s288_s30, [#allocation6]  }
  0x9c   : > { %s298_s15 = sshll.u32 %s7162_s28, 4  ;;  %s6956_s21 = scalar_lea.hbm %s7416_s16, 128  ;;  %s299_s15 = int_to_ptr.vmem [resolvable:$true] %s298_s15 }
  0x9d   : > { %p6957_p12 = scmp.ne.s32.totalorder %s7416_s16, %s6956_s21  ;;  %s6961_s0 = scalar_lea.hbm %s8066_s5, 384 }
  0x9e   : > { %p6962_p1 = scmp.lt.u32.totalorder %s7416_s16, %s8066_s5  ;;  %p6963_p3 = scmp.lt.u32.totalorder %s6961_s0, %s6956_s21 }
  0x9f   : > { %p6959_p5 = pnand %p6957_p12, %p7330_p9  ;;  %p6965_p2 = scmp.lt.u32.totalorder %s6956_s21, %s7416_s16 }
  0xa0   : > { %p6964_p13 = por %p6963_p3, %p6962_p1 }
  0xa1   : > { %p6960_p10 = pneg %p6959_p5 }
  0xa2   : > { %p6966_p4 = por %p6965_p2, %p6964_p13 }
  0xa4   : > { %p6967_p8 = pnand %p6966_p4, %p6960_p10 }
  0xa6   : > { %6970 = shalt.err (!%p6967_p8)
}
  0xa7   : > { %s6971_s9 = scalar_lea.vmem %s7438_s14, 128  ;;  %s7163_s30 = smov [#allocation10]  }
  0xa8   : > { %p6972_p0 = scmp.ne.s32.totalorder %s7438_s14, %s6971_s9  ;;  %s6976_s19 = sshll.u32 %s7163_s30, 4  ;;  %s6977_s19 = int_to_ptr.vmem [resolvable:$false] %s6976_s19 }
  0xa9   : > { %s6978_s27 = scalar_lea.vmem %s6977_s19, 256  ;;  %p6979_p5 = scmp.lt.s32.totalorder %s7438_s14, %s6977_s19 }
  0xaa   : > { %p6974_p11 = pnand %p6972_p0, %p7330_p9  ;;  %p6980_p6 = scmp.lt.s32.totalorder %s6978_s27, %s6971_s9 }
  0xac   : > { %p6975_p12 = pneg %p6974_p11  ;;  %p6981_p1 = por %p6980_p6, %p6979_p5 }
  0xae   : > { %p6982_p3 = pnand %p6981_p1, %p6975_p12 }
  0xb0   : > { %6985 = shalt.err (!%p6982_p3)
}
  0xb1   : > { %p8111_p10 = scmp.ne.s32.totalorder %s8101_s25, 0  ;;  %s6986_s2 = scalar_lea.hbm %s8068_s7, 16 }
  0xb2   : > { %p6987_p13 = scmp.ne.s32.totalorder %s8068_s7, %s6986_s2  ;;  %p6993_p4 = scmp.lt.u32.totalorder %s6986_s2, %s8068_s7 }
  0xb3   : > { %6750 = dma.hbm_to_vmem [thread:$0]  (!%p8111_p10), %s7416_s16, 128, %s7438_s14, %s7324_s29  }
  0xb4   : > { %p6989_p6 = pnand %p6987_p13, %p8109_p7 }
  0xb6   : > { %p6990_p2 = pneg %p6989_p6 }
  0xb8   : > { %p6995_p8 = pnand %p6993_p4, %p6990_p2 }
  0xba   : > { %6998 = shalt.err (!%p6995_p8)
}
  0xbb   : > { %s6999_s9 = scalar_lea.vmem %s299_s15, 16  ;;  %s7006_s16 = scalar_lea.vmem %s299_s15, 32 }
  0xbc   : > { %p7000_p0 = scmp.ne.s32.totalorder %s299_s15, %s6999_s9  ;;  %p7007_p5 = scmp.lt.s32.totalorder %s299_s15, %s299_s15 }
  0xbd   : > { %p7008_p1 = scmp.lt.s32.totalorder %s7006_s16, %s6999_s9 }
  0xbe   : > { %p7002_p11 = pnand %p7000_p0, %p8109_p7 }
  0xbf   : > { %p7009_p3 = por %p7008_p1, %p7007_p5 }
  0xc0   : > { %p7003_p12 = pneg %p7002_p11 }
  0xc2   : > { %p7010_p10 = pnand %p7009_p3, %p7003_p12 }
  0xc4   : > { %7013 = shalt.err (!%p7010_p10)
}
  0xc5   : > { %p8112_p13 = scmp.ne.s32.totalorder %s8100_s24, 0  ;;  %s7164_s19 = smov [#allocation13]  }
  0xc6   : > { %s309_s27 = sshll.u32 %s7164_s19, 4  ;;  %s8113_s28 = sshll.u32 %s7152_s12, 10  ;;  %s310_s27 = int_to_ptr.vmem [resolvable:$true] %s309_s27 }
  0xc7   : > { %6734 = dma.hbm_to_vmem [thread:$0]  (!%p8112_p13), %s8068_s7, 16, %s299_s15, [#allocation6]  }
  0xc8   : > { %s7485_s17 = scalar_lea.hbm %s8067_s6, %s8113_s28  ;;  %s7014_s11 = scalar_lea.hbm %s8069_s8, 16 }
  0xc9   : > { %p7015_p10 = scmp.ne.s32.totalorder %s8069_s8, %s7014_s11  ;;  %p7021_p4 = scmp.lt.u32.totalorder %s7014_s11, %s8069_s8 }
  0xcb   : > { %p7017_p6 = pnand %p7015_p10, %p8109_p7 }
  0xcd   : > { %p7018_p2 = pneg %p7017_p6 }
  0xcf   : > { %p7023_p8 = pnand %p7021_p4, %p7018_p2 }
  0xd1   : > { %7026 = shalt.err (!%p7023_p8)
}
  0xd2   : > { %s7027_s12 = scalar_lea.vmem %s310_s27, 16  ;;  %s7034_s30 = scalar_lea.vmem %s310_s27, 32 }
  0xd3   : > { %p7028_p0 = scmp.ne.s32.totalorder %s310_s27, %s7027_s12  ;;  %p7035_p5 = scmp.lt.s32.totalorder %s310_s27, %s310_s27 }
  0xd4   : > { %p7036_p1 = scmp.lt.s32.totalorder %s7034_s30, %s7027_s12 }
  0xd5   : > { %p7030_p11 = pnand %p7028_p0, %p8109_p7 }
  0xd6   : > { %p7037_p3 = por %p7036_p1, %p7035_p5 }
  0xd7   : > { %p7031_p12 = pneg %p7030_p11 }
  0xd9   : > { %p7038_p9 = pnand %p7037_p3, %p7031_p12 }
  0xdb   : > { %7041 = shalt.err (!%p7038_p9)
}
  0xdc   : > { %6737 = dma.hbm_to_vmem [thread:$0]  (!%p8112_p13), %s8069_s8, 16, %s310_s27, [#allocation14]  }
  0xdd   : > { %s8114_s18 = sshll.u32 %s7288_s26, 6  ;;  %s7042_s0 = scalar_lea.hbm %s7485_s17, 1024 }
  0xde   : > { %s402_s21 = scalar_lea.vmem [#allocation11], %s8114_s18  ;;  %p7043_p7 = scmp.ne.s32.totalorder %s7485_s17, %s7042_s0 }
  0xdf   : > { %s410_s2 = sshll.u32 %s402_s21, 4  ;;  %p8115_p10 = scmp.ne.s32.totalorder %s8106_s22, 0  ;;  %s411_s2 = int_to_ptr.vmem [resolvable:$true] %s410_s2 }
  0xe0   : > { %s7047_s11 = scalar_lea.hbm %s8067_s6, 3072  ;;  %p7048_p2 = scmp.lt.u32.totalorder %s7485_s17, %s8067_s6 }
  0xe1   : > { %p7045_p9 = pnand %p7043_p7, %p8115_p10  ;;  %p7049_p4 = scmp.lt.u32.totalorder %s7047_s11, %s7042_s0 }
  0xe2   : > { %p7051_p13 = scmp.lt.u32.totalorder %s7042_s0, %s7485_s17 }
  0xe3   : > { %p7046_p6 = pneg %p7045_p9  ;;  %p7050_p8 = por %p7049_p4, %p7048_p2 }
  0xe5   : > { %p7052_p0 = por %p7051_p13, %p7050_p8 }
  0xe7   : > { %p7053_p11 = pnand %p7052_p0, %p7046_p6 }
  0xe9   : > { %7056 = shalt.err (!%p7053_p11)
}
  0xea   : > { %s7057_s26 = scalar_lea.vmem %s411_s2, 1024  ;;  %s7165_s27 = smov [#allocation11]  }
  0xeb   : > { %p7058_p12 = scmp.ne.s32.totalorder %s411_s2, %s7057_s26  ;;  %s7062_s15 = sshll.u32 %s7165_s27, 4  ;;  %s7063_s15 = int_to_ptr.vmem [resolvable:$false] %s7062_s15 }
  0xec   : > { %s7064_s14 = scalar_lea.vmem %s7063_s15, 2048  ;;  %p7065_p3 = scmp.lt.s32.totalorder %s411_s2, %s7063_s15 }
  0xed   : > { %p7060_p5 = pnand %p7058_p12, %p8115_p10  ;;  %p7066_p7 = scmp.lt.s32.totalorder %s7064_s14, %s7057_s26 }
  0xef   : > { %p7061_p1 = pneg %p7060_p5  ;;  %p7067_p9 = por %p7066_p7, %p7065_p3 }
  0xf1   : > { %p7068_p2 = pnand %p7067_p9, %p7061_p1 }
  0xf3   : > { %7071 = shalt.err (!%p7068_p2)
}
  0xf4   : > { %p8116_p4 = scmp.ne.s32.totalorder %s8101_s25, 0  ;;  %p8117_p6 = scmp.ne.s32.totalorder %s8099_s20, 0 }
  0xf5   : > { %p8118_p10 = scmp.eq.s32.totalorder (!%p8117_p6), %s7238_s13, 0 }
  0xf6   : > { %6753 = dma.hbm_to_vmem [thread:$0]  (!%p8116_p4), %s7485_s17, 1024, %s411_s2, %s7324_s29  }
  0xf7   : > { %419 = sbr.rel (%p8117_p6) target bundleno = 1450 (0x5aa), region = 56 }
  0xfe   : > { %7115 = dma.done.wait (%p8118_p10), [#allocation3], 288   ;;  %p8119_p8 = pmov %p8118_p10 }
 0x100   : > { %7117 = vsyncadd (%p8119_p8), [#allocation3], 4294967008  ;;  %p8120_p13 = pmov %p8119_p8 }
 0x101   : > { %p8121_p0 = pmov %p8119_p8 }
 0x102   : > { %7119 = dma.done.wait (%p8120_p13), [#allocation6], 32  }
 0x103   : > { %7121 = vsyncadd (%p8121_p0), [#allocation6], 4294967264  ;;  %s8122_s25 = sld [smem:[#allocation25_spill]]  ;;  %s429_s22 = sand.u32 1, %s7238_s13  }
 0x104   : > { %s431_s29 = sand.u32 1, %s7144_s10   ;;  %s430_s20 = scalar_lea.sflag [#allocation3], %s429_s22 }
 0x105   : > { %s6694_s17 = smul.u32 2160, %s431_s29 }
 0x107   : > { %s7537_s12 = scalar_lea.vmem [#allocation7], %s6694_s17 }
 0x109   : > { %p8123_p11 = scmp.ne.s32.totalorder %s8122_s25, 0 }
 0x10b   : > { %7123 = dma.done.wait (%p8123_p11), %s430_s20, 36864  }
 0x10c   : > { %7125 = vsyncadd (%p8123_p11), %s430_s20, 4294930432  ;;  %s5485_s30 = sshll.u32 %s431_s29, 6  ;;  %s5486_s19 = sshll.u32 %s431_s29, 3 }
 0x10d   : > { %s7543_s28 = scalar_lea.vmem [#allocation8], %s5485_s30  ;;  %s7545_s18 = scalar_lea.vmem [#allocation9], %s5486_s19 }
 0x10e   : > { %s7547_s21 = scalar_lea.vmem [#allocation10], %s5486_s19  ;;  %s7549_s2 = scalar_lea.vmem [#allocation11], %s5485_s30 }
 0x10f   : > { %p8124_p12 = pmov %p8121_p0 }
 0x110   : > { %p8125_p5 = pmov %p8121_p0 }
 0x111   : > { %7127 = dma.done.wait (%p8124_p12), [#allocation6], 16  }
 0x112   : > { %7129 = vsyncadd (%p8125_p5), [#allocation6], 4294967280  ;;  %p8126_p1 = pmov %p8121_p0 }
 0x113   : > { %p8127_p3 = pmov %p8121_p0 }
 0x114   : > { %7131 = dma.done.wait (%p8126_p1), [#allocation14], 16  }
 0x115   : > { %7133 = vsyncadd (%p8127_p3), [#allocation14], 4294967280  ;;  %p8128_p7 = scmp.ne.s32.totalorder %s7238_s13, 0 }
 0x116   : > { %v5492_v0 = vld [vmem:[#allocation13] ss:$0 sm:$0xff] (!%p8128_p7)  ;;  %vm543_vm0 = vcmask (!%p8128_p7), 254976  }
 0x117   : > { %535 = sbr.rel (%p8128_p7) target bundleno = 286 (0x11e), region = 96  ;;  %544 = vst.msk [vmem:[#allocation15] sm:$0x3] (!%p8128_p7), %vm543_vm0, %v5492_v0 }
 0x11e PF: > { %v2980_v1 = vld [vmem:[%s7543_s28 + $0x8] sm:$0xff]  ;;  %v2982_v2 = vld [vmem:[%s7543_s28 + $0x18] sm:$0xff]  ;;  %v2979_v3 = vld [vmem:[%s7543_s28] sm:$0xff]  ;;  %vm3051_vm1 = vcmask 261120   ;;  %v3346_v4 = vlaneseq  ;;  %v7166_v10 = vmov 0.0   ;;  %vm3391_vm2 = vcmask 457728  }
 0x11f   : > { %v5512_v5 = vunpack.c.l.s8.bf16 %v2980_v1  ;;  %v5516_v6 = vunpack.c.h.s8.bf16 %v2980_v1  ;;  %v5520_v7 = vunpack.c.l.s8.bf16 %v2982_v2  ;;  %v5524_v8 = vunpack.c.h.s8.bf16 %v2982_v2  ;;  %v2981_v9 = vld [vmem:[%s7543_s28 + $0x10] sm:$0xff]  ;;  %3119 = vmatprep.mubr.f32.mxu0 %v7166_v10  ;;  %3190 = vmatprep.mubr.f32.mxu1 %v7166_v10  ;;  %v7568_v11 = vld [vmem:[%s7543_s28 + $0x28] sm:$0xff]  ;;  %v7571_v12 = vld [vmem:[%s7543_s28 + $0x38] sm:$0xff]  ;;  %s7168_s0 = smov [#allocation15]   ;;  %p6763_p9 = scmp.eq.s32.totalorder %s7238_s13, 2 }
 0x120   : > { %v5514_v13 = vunpack.c.l.s8.bf16 %v2979_v3  ;;  %v5518_v14 = vunpack.c.h.s8.bf16 %v2979_v3  ;;  %v5522_v15 = vunpack.c.l.s8.bf16 %v2981_v9  ;;  %v5526_v16 = vunpack.c.h.s8.bf16 %v2981_v9  ;;  %v7574_v17 = vld [vmem:[%s7543_s28 + $0x20] sm:$0xff]  ;;  %v7577_v18 = vld [vmem:[%s7543_s28 + $0x30] sm:$0xff]  ;;  %v7591_v43 = vld [vmem:[#allocation5] sm:$0x3]  ;;  %s5293_s24 = sshll.u32 %s7168_s0, 4  ;;  %s5294_s24 = int_to_ptr.vmem [resolvable:$true] %s5293_s24 }
 0x121   : > { %5513 = vmatprep.subr.bf16.mxu0 %v5512_v5  ;;  %5521 = vmatprep.subr.bf16.mxu1 %v5520_v7  ;;  %v5528_v19 = vunpack.c.l.s8.bf16 %v7568_v11  ;;  %v5536_v20 = vunpack.c.l.s8.bf16 %v7571_v12  ;;  %v5530_v21 = vunpack.c.l.s8.bf16 %v7574_v17  ;;  %v5538_v22 = vunpack.c.l.s8.bf16 %v7577_v18  ;;  %v549_v23 = vld [vmem:[%s7537_s12] sm:$0xff]  ;;  %v551_v24 = vld [vmem:[%s7537_s12 + $0x10] sm:$0xff]  ;;  %s7072_s23 = scalar_lea.vmem %s5294_s24, 32  ;;  %p7079_p10 = scmp.lt.s32.totalorder %s5294_s24, %s5294_s24 }
 0x122   : > { %5515 = vmatpush1.bf16.msra.mxu0 %v5514_v13  ;;  %5523 = vmatpush1.bf16.msra.mxu1 %v5522_v15  ;;  %v5532_v25 = vunpack.c.h.s8.bf16 %v7568_v11  ;;  %v5540_v26 = vunpack.c.h.s8.bf16 %v7571_v12  ;;  %v5534_v27 = vunpack.c.h.s8.bf16 %v7574_v17  ;;  %v5542_v28 = vunpack.c.h.s8.bf16 %v7577_v18  ;;  %v553_v37 = vld [vmem:[%s7537_s12 + $0x20] sm:$0xff]  ;;  %v555_v38 = vld [vmem:[%s7537_s12 + $0x30] sm:$0xff]  ;;  %p7073_p2 = scmp.ne.s32.totalorder %s5294_s24, %s7072_s23  ;;  %p7080_p8 = scmp.lt.s32.totalorder %s7072_s23, %s7072_s23 }
 0x123   : > { %5517 = vmatprep.subr.bf16.mxu0 %v5516_v6  ;;  %5525 = vmatprep.subr.bf16.mxu1 %v5524_v8  ;;  %v820_v29 = vunpack.c.1.s8 %v549_v23  ;;  %v828_v30 = vunpack.c.1.s8 %v551_v24  ;;  %v822_v31 = vunpack.c.3.s8 %v549_v23  ;;  %v830_v32 = vunpack.c.3.s8 %v551_v24  ;;  %v557_v56 = vld [vmem:[%s7537_s12 + $0x40] sm:$0xff]  ;;  %v559_v61 = vld [vmem:[%s7537_s12 + $0x50] sm:$0xff] }
 0x124   : > { %v819_v33 = vunpack.c.0.s8 %v549_v23  ;;  %v827_v34 = vunpack.c.0.s8 %v551_v24  ;;  %v821_v35 = vunpack.c.2.s8 %v549_v23  ;;  %v829_v36 = vunpack.c.2.s8 %v551_v24  ;;  %v563_v23 = vld [vmem:[%s7537_s12 + $0x70] sm:$0xff]  ;;  %p7074_p4 = pnand %p7073_p2, %p6763_p9  ;;  %p7081_p13 = por %p7080_p8, %p7079_p10 }
 0x125   : > { %v1900_v39 = vcvt.s32.f32 %v820_v29  ;;  %v1908_v40 = vcvt.s32.f32 %v828_v30  ;;  %v1902_v41 = vcvt.s32.f32 %v822_v31  ;;  %v1910_v42 = vcvt.s32.f32 %v830_v32 }
 0x126   : > { %5519 = vmatpush1.bf16.msra.mxu0 %v5518_v14  ;;  %5527 = vmatpush1.bf16.msra.mxu1 %v5526_v16  ;;  %v7593_v44 = vcvt.s32.f32 %v819_v33  ;;  %v7595_v45 = vcvt.s32.f32 %v827_v34  ;;  %v7597_v46 = vcvt.s32.f32 %v821_v35  ;;  %v7599_v47 = vcvt.s32.f32 %v829_v36  ;;  %v561_v16 = vld [vmem:[%s7537_s12 + $0x60] sm:$0xff]  ;;  %p7075_p6 = pneg %p7074_p4 }
 0x127   : > { %5529 = vmatprep.subr.bf16.mxu0 %v5528_v19  ;;  %5537 = vmatprep.subr.bf16.mxu1 %v5536_v20  ;;  %v5544_v48 = vpack.c.bf16 %v1908_v40, %v1900_v39  ;;  %v5812_v49 = vpack.c.bf16 %v1910_v42, %v1902_v41  ;;  %v836_v50 = vunpack.c.1.s8 %v553_v37  ;;  %v844_v51 = vunpack.c.1.s8 %v555_v38 }
 0x128   : > { %v5546_v52 = vpack.c.bf16 %v7595_v45, %v7593_v44  ;;  %v5814_v53 = vpack.c.bf16 %v7599_v47, %v7597_v46  ;;  %v838_v54 = vunpack.c.3.s8 %v553_v37  ;;  %v846_v55 = vunpack.c.3.s8 %v555_v38  ;;  %v567_v44 = vld [vmem:[%s7537_s12 + $0x90] sm:$0xff]  ;;  %p7082_p0 = pnand %p7081_p13, %p7075_p6 }
 0x129   : > { %5493 = vmatmul.mubr.msk.f32.vlgmr.msra.gmra.mrb[0].mxu0 %vm3051_vm1, %v7591_v43  ;;  %5494 = vmatmul.mubr.msk.f32.vlgmr.msra.gmra.mrb[0].mxu1 %vm3051_vm1, %v7591_v43  ;;  %v1916_v57 = vcvt.s32.f32 %v836_v50  ;;  %v1924_v58 = vcvt.s32.f32 %v844_v51  ;;  %v835_v59 = vunpack.c.0.s8 %v553_v37  ;;  %v843_v60 = vunpack.c.0.s8 %v555_v38 }
 0x12a   : > { %5531 = vmatpush1.bf16.msra.mxu0 %v5530_v21  ;;  %5539 = vmatpush1.bf16.msra.mxu1 %v5538_v22  ;;  %v1918_v62 = vcvt.s32.f32 %v838_v54  ;;  %v1926_v63 = vcvt.s32.f32 %v846_v55  ;;  %v837_v0 = vunpack.c.2.s8 %v553_v37  ;;  %v845_v1 = vunpack.c.2.s8 %v555_v38  ;;  %v565_v38 = vld [vmem:[%s7537_s12 + $0x80] sm:$0xff] }
 0x12b   : > { %5533 = vmatprep.subr.bf16.mxu0 %v5532_v25  ;;  %5541 = vmatprep.subr.bf16.mxu1 %v5540_v26  ;;  %v5548_v2 = vpack.c.bf16 %v1924_v58, %v1916_v57  ;;  %v1915_v3 = vcvt.s32.f32 %v835_v59  ;;  %v1923_v5 = vcvt.s32.f32 %v843_v60  ;;  %v852_v6 = vunpack.c.1.s8 %v557_v56  ;;  %v569_v60 = vld [vmem:[%s7537_s12 + $0xa0] sm:$0xff] }
 0x12c   : > { %3261 = vmatprep.mubr.f32.mxu0 %v7166_v10  ;;  %3332 = vmatprep.mubr.f32.mxu1 %v7166_v10  ;;  %v5816_v7 = vpack.c.bf16 %v1926_v63, %v1918_v62  ;;  %v1917_v8 = vcvt.s32.f32 %v837_v0  ;;  %v1925_v9 = vcvt.s32.f32 %v845_v1  ;;  %v860_v11 = vunpack.c.1.s8 %v559_v61  ;;  %v571_v1 = vld [vmem:[%s7537_s12 + $0xb0] sm:$0xff] }
 0x12d   : > { %v5550_v12 = vpack.c.bf16 %v1923_v5, %v1915_v3  ;;  %v1932_v13 = vcvt.s32.f32 %v852_v6  ;;  %v854_v14 = vunpack.c.3.s8 %v557_v56  ;;  %v862_v15 = vunpack.c.3.s8 %v559_v61 }
 0x12e   : > { %5535 = vmatpush1.bf16.msra.mxu0 %v5534_v27  ;;  %5543 = vmatpush1.bf16.msra.mxu1 %v5542_v28  ;;  %v5818_v19 = vpack.c.bf16 %v1925_v9, %v1917_v8  ;;  %v1940_v20 = vcvt.s32.f32 %v860_v11  ;;  %v851_v21 = vunpack.c.0.s8 %v557_v56  ;;  %v859_v22 = vunpack.c.0.s8 %v559_v61 }
 0x12f   : > { %5545 = vmatprep.subr.bf16.mxu0 %v5544_v48  ;;  %5813 = vmatprep.subr.bf16.mxu1 %v5812_v49  ;;  %v1934_v24 = vcvt.s32.f32 %v854_v14  ;;  %v1942_v25 = vcvt.s32.f32 %v862_v15  ;;  %v853_v26 = vunpack.c.2.s8 %v557_v56  ;;  %v861_v29 = vunpack.c.2.s8 %v559_v61 }
 0x130   : > { %v5552_v30 = vpack.c.bf16 %v1940_v20, %v1932_v13  ;;  %v1931_v31 = vcvt.s32.f32 %v851_v21  ;;  %v1939_v32 = vcvt.s32.f32 %v859_v22  ;;  %v868_v17 = vunpack.c.1.s8 %v561_v16  ;;  %v573_v22 = vld [vmem:[%s7537_s12 + $0xc0] sm:$0xff] }
 0x131   : > { %5495 = vmatmul.mubr.msk.f32.vlgmr.msra.gmra.mrb[2].mxu0 %vm3051_vm1, %v7591_v43  ;;  %5496 = vmatmul.mubr.msk.f32.vlgmr.msra.gmra.mrb[2].mxu1 %vm3051_vm1, %v7591_v43  ;;  %v5820_v18 = vpack.c.bf16 %v1942_v25, %v1934_v24  ;;  %v1933_v27 = vcvt.s32.f32 %v853_v26  ;;  %v1941_v28 = vcvt.s32.f32 %v861_v29  ;;  %v876_v33 = vunpack.c.1.s8 %v563_v23  ;;  %v575_v29 = vld [vmem:[%s7537_s12 + $0xd0] sm:$0xff] }
 0x132   : > { %5547 = vmatpush1.bf16.msra.mxu0 %v5546_v52  ;;  %5815 = vmatpush1.bf16.msra.mxu1 %v5814_v53  ;;  %v5554_v34 = vpack.c.bf16 %v1939_v32, %v1931_v31  ;;  %v1948_v35 = vcvt.s32.f32 %v868_v17  ;;  %v870_v36 = vunpack.c.3.s8 %v561_v16  ;;  %v878_v37 = vunpack.c.3.s8 %v563_v23 }
 0x133   : > { %5549 = vmatprep.subr.bf16.mxu0 %v5548_v2  ;;  %5817 = vmatprep.subr.bf16.mxu1 %v5816_v7  ;;  %v5822_v39 = vpack.c.bf16 %v1941_v28, %v1933_v27  ;;  %v1956_v40 = vcvt.s32.f32 %v876_v33  ;;  %v867_v41 = vunpack.c.0.s8 %v561_v16  ;;  %v875_v42 = vunpack.c.0.s8 %v563_v23 }
 0x134   : > { %v1950_v43 = vcvt.s32.f32 %v870_v36  ;;  %v1958_v45 = vcvt.s32.f32 %v878_v37  ;;  %v869_v46 = vunpack.c.2.s8 %v561_v16  ;;  %v877_v47 = vunpack.c.2.s8 %v563_v23 }
 0x135   : > { %v5556_v48 = vpack.c.bf16 %v1956_v40, %v1948_v35  ;;  %v1947_v49 = vcvt.s32.f32 %v867_v41  ;;  %v1955_v50 = vcvt.s32.f32 %v875_v42  ;;  %v884_v51 = vunpack.c.1.s8 %v565_v38  ;;  %v577_v42 = vld [vmem:[%s7537_s12 + $0xe0] sm:$0xff] }
 0x136   : > { %5551 = vmatpush1.bf16.msra.mxu0 %v5550_v12  ;;  %5819 = vmatpush1.bf16.msra.mxu1 %v5818_v19  ;;  %v5824_v52 = vpack.c.bf16 %v1958_v45, %v1950_v43  ;;  %v1949_v53 = vcvt.s32.f32 %v869_v46  ;;  %v1957_v54 = vcvt.s32.f32 %v877_v47  ;;  %v892_v55 = vunpack.c.1.s8 %v567_v44  ;;  %v579_v47 = vld [vmem:[%s7537_s12 + $0xf0] sm:$0xff] }
 0x137   : > { %5553 = vmatprep.subr.bf16.mxu0 %v5552_v30  ;;  %5821 = vmatprep.subr.bf16.mxu1 %v5820_v18  ;;  %v5558_v56 = vpack.c.bf16 %v1955_v50, %v1947_v49  ;;  %v1964_v57 = vcvt.s32.f32 %v884_v51  ;;  %v886_v58 = vunpack.c.3.s8 %v565_v38  ;;  %v894_v59 = vunpack.c.3.s8 %v567_v44 }
 0x138   : > { %v5826_v61 = vpack.c.bf16 %v1957_v54, %v1949_v53  ;;  %v1972_v62 = vcvt.s32.f32 %v892_v55  ;;  %v883_v63 = vunpack.c.0.s8 %v565_v38  ;;  %v891_v0 = vunpack.c.0.s8 %v567_v44 }
 0x139   : > { %v1966_v2 = vcvt.s32.f32 %v886_v58  ;;  %v1974_v3 = vcvt.s32.f32 %v894_v59  ;;  %v885_v5 = vunpack.c.2.s8 %v565_v38  ;;  %v893_v6 = vunpack.c.2.s8 %v567_v44 }
 0x13a   : > { %5555 = vmatpush1.bf16.msra.mxu0 %v5554_v34  ;;  %5823 = vmatpush1.bf16.msra.mxu1 %v5822_v39  ;;  %v5560_v7 = vpack.c.bf16 %v1972_v62, %v1964_v57  ;;  %v1963_v8 = vcvt.s32.f32 %v883_v63  ;;  %v1971_v9 = vcvt.s32.f32 %v891_v0  ;;  %v900_v11 = vunpack.c.1.s8 %v569_v60  ;;  %v581_v0 = vld [vmem:[%s7537_s12 + $0x100] sm:$0xff] }
 0x13b   : > { %5557 = vmatprep.subr.bf16.mxu0 %v5556_v48  ;;  %5825 = vmatprep.subr.bf16.mxu1 %v5824_v52  ;;  %v5828_v12 = vpack.c.bf16 %v1974_v3, %v1966_v2  ;;  %v1965_v13 = vcvt.s32.f32 %v885_v5  ;;  %v1973_v14 = vcvt.s32.f32 %v893_v6  ;;  %v908_v15 = vunpack.c.1.s8 %v571_v1  ;;  %v583_v6 = vld [vmem:[%s7537_s12 + $0x110] sm:$0xff] }
 0x13c   : > { %v5562_v16 = vpack.c.bf16 %v1971_v9, %v1963_v8  ;;  %v1980_v19 = vcvt.s32.f32 %v900_v11  ;;  %v902_v20 = vunpack.c.3.s8 %v569_v60  ;;  %v910_v21 = vunpack.c.3.s8 %v571_v1 }
 0x13d   : > { %v5830_v23 = vpack.c.bf16 %v1973_v14, %v1965_v13  ;;  %v1988_v24 = vcvt.s32.f32 %v908_v15  ;;  %v899_v25 = vunpack.c.0.s8 %v569_v60  ;;  %v907_v26 = vunpack.c.0.s8 %v571_v1 }
 0x13e   : > { %5559 = vmatpush1.bf16.msra.mxu0 %v5558_v56  ;;  %5827 = vmatpush1.bf16.msra.mxu1 %v5826_v61  ;;  %v1982_v30 = vcvt.s32.f32 %v902_v20  ;;  %v1990_v31 = vcvt.s32.f32 %v910_v21  ;;  %v901_v32 = vunpack.c.2.s8 %v569_v60  ;;  %v909_v17 = vunpack.c.2.s8 %v571_v1 }
 0x13f   : > { %5561 = vmatprep.subr.bf16.mxu0 %v5560_v7  ;;  %5829 = vmatprep.subr.bf16.mxu1 %v5828_v12  ;;  %v5564_v18 = vpack.c.bf16 %v1988_v24, %v1980_v19  ;;  %v1979_v27 = vcvt.s32.f32 %v899_v25  ;;  %v1987_v28 = vcvt.s32.f32 %v907_v26  ;;  %v916_v33 = vunpack.c.1.s8 %v573_v22  ;;  %v585_v26 = vld [vmem:[%s7537_s12 + $0x120] sm:$0xff] }
 0x140   : > { %v5832_v34 = vpack.c.bf16 %v1990_v31, %v1982_v30  ;;  %v1981_v35 = vcvt.s32.f32 %v901_v32  ;;  %v1989_v36 = vcvt.s32.f32 %v909_v17  ;;  %v924_v37 = vunpack.c.1.s8 %v575_v29  ;;  %v587_v17 = vld [vmem:[%s7537_s12 + $0x130] sm:$0xff] }
 0x141   : > { %v5566_v38 = vpack.c.bf16 %v1987_v28, %v1979_v27  ;;  %v1996_v39 = vcvt.s32.f32 %v916_v33  ;;  %v918_v40 = vunpack.c.3.s8 %v573_v22  ;;  %v926_v41 = vunpack.c.3.s8 %v575_v29 }
 0x142   : > { %5563 = vmatpush1.bf16.msra.mxu0 %v5562_v16  ;;  %5831 = vmatpush1.bf16.msra.mxu1 %v5830_v23  ;;  %v5834_v44 = vpack.c.bf16 %v1989_v36, %v1981_v35  ;;  %v2004_v43 = vcvt.s32.f32 %v924_v37  ;;  %v915_v45 = vunpack.c.0.s8 %v573_v22  ;;  %v923_v46 = vunpack.c.0.s8 %v575_v29 }
 0x143   : > { %5565 = vmatprep.subr.bf16.mxu0 %v5564_v18  ;;  %5833 = vmatprep.subr.bf16.mxu1 %v5832_v34  ;;  %v1998_v48 = vcvt.s32.f32 %v918_v40  ;;  %v2006_v49 = vcvt.s32.f32 %v926_v41  ;;  %v917_v50 = vunpack.c.2.s8 %v573_v22  ;;  %v925_v51 = vunpack.c.2.s8 %v575_v29 }
 0x144   : > { %v5568_v52 = vpack.c.bf16 %v2004_v43, %v1996_v39  ;;  %v1995_v53 = vcvt.s32.f32 %v915_v45  ;;  %v2003_v54 = vcvt.s32.f32 %v923_v46  ;;  %v932_v55 = vunpack.c.1.s8 %v577_v42  ;;  %v589_v46 = vld [vmem:[%s7537_s12 + $0x140] sm:$0xff] }
 0x145   : > { %v5836_v56 = vpack.c.bf16 %v2006_v49, %v1998_v48  ;;  %v1997_v57 = vcvt.s32.f32 %v917_v50  ;;  %v2005_v58 = vcvt.s32.f32 %v925_v51  ;;  %v940_v59 = vunpack.c.1.s8 %v579_v47  ;;  %v591_v51 = vld [vmem:[%s7537_s12 + $0x150] sm:$0xff] }
 0x146   : > { %5567 = vmatpush1.bf16.msra.mxu0 %v5566_v38  ;;  %5835 = vmatpush1.bf16.msra.mxu1 %v5834_v44  ;;  %v5570_v60 = vpack.c.bf16 %v2003_v54, %v1995_v53  ;;  %v2012_v61 = vcvt.s32.f32 %v932_v55  ;;  %v934_v62 = vunpack.c.3.s8 %v577_v42  ;;  %v942_v63 = vunpack.c.3.s8 %v579_v47 }
 0x147   : > { %5569 = vmatprep.subr.bf16.mxu0 %v5568_v52  ;;  %5837 = vmatprep.subr.bf16.mxu1 %v5836_v56  ;;  %v5838_v1 = vpack.c.bf16 %v2005_v58, %v1997_v57  ;;  %v2020_v2 = vcvt.s32.f32 %v940_v59  ;;  %v931_v3 = vunpack.c.0.s8 %v577_v42  ;;  %v939_v5 = vunpack.c.0.s8 %v579_v47 }
 0x148   : > { %v2014_v7 = vcvt.s32.f32 %v934_v62  ;;  %v2022_v8 = vcvt.s32.f32 %v942_v63  ;;  %v933_v9 = vunpack.c.2.s8 %v577_v42  ;;  %v941_v11 = vunpack.c.2.s8 %v579_v47 }
 0x149   : > { %v5572_v12 = vpack.c.bf16 %v2020_v2, %v2012_v61  ;;  %v2011_v13 = vcvt.s32.f32 %v931_v3  ;;  %v2019_v14 = vcvt.s32.f32 %v939_v5  ;;  %v948_v15 = vunpack.c.1.s8 %v581_v0  ;;  %v593_v5 = vld [vmem:[%s7537_s12 + $0x160] sm:$0xff] }
 0x14a   : > { %5571 = vmatpush1.bf16.msra.mxu0 %v5570_v60  ;;  %5839 = vmatpush1.bf16.msra.mxu1 %v5838_v1  ;;  %v5840_v16 = vpack.c.bf16 %v2022_v8, %v2014_v7  ;;  %v2013_v19 = vcvt.s32.f32 %v933_v9  ;;  %v2021_v20 = vcvt.s32.f32 %v941_v11  ;;  %v956_v21 = vunpack.c.1.s8 %v583_v6  ;;  %v595_v11 = vld [vmem:[%s7537_s12 + $0x170] sm:$0xff] }
 0x14b   : > { %5573 = vmatprep.subr.bf16.mxu0 %v5572_v12  ;;  %v5574_v22 = vpack.c.bf16 %v2019_v14, %v2011_v13  ;;  %v2028_v23 = vcvt.s32.f32 %v948_v15  ;;  %v950_v24 = vunpack.c.3.s8 %v581_v0  ;;  %v958_v25 = vunpack.c.3.s8 %v583_v6 }
 0x14c   : > { %5841 = vmatprep.subr.bf16.mxu1 %v5840_v16  ;;  %v5842_v29 = vpack.c.bf16 %v2021_v20, %v2013_v19  ;;  %v2036_v30 = vcvt.s32.f32 %v956_v21  ;;  %v947_v31 = vunpack.c.0.s8 %v581_v0  ;;  %v955_v32 = vunpack.c.0.s8 %v583_v6 }
 0x14d   : > { %v2030_v18 = vcvt.s32.f32 %v950_v24  ;;  %v2038_v27 = vcvt.s32.f32 %v958_v25  ;;  %v949_v28 = vunpack.c.2.s8 %v581_v0  ;;  %v957_v33 = vunpack.c.2.s8 %v583_v6 }
 0x14e   : > { %5575 = vmatpush1.bf16.msra.mxu0 %v5574_v22  ;;  %5843 = vmatpush1.bf16.msra.mxu1 %v5842_v29  ;;  %v5576_v34 = vpack.c.bf16 %v2036_v30, %v2028_v23  ;;  %v2027_v35 = vcvt.s32.f32 %v947_v31  ;;  %v2035_v36 = vcvt.s32.f32 %v955_v32  ;;  %v964_v37 = vunpack.c.1.s8 %v585_v26  ;;  %v597_v32 = vld [vmem:[%s7537_s12 + $0x180] sm:$0xff] }
 0x14f   : > { %v5844_v38 = vpack.c.bf16 %v2038_v27, %v2030_v18  ;;  %v2029_v39 = vcvt.s32.f32 %v949_v28  ;;  %v2037_v40 = vcvt.s32.f32 %v957_v33  ;;  %v972_v41 = vunpack.c.1.s8 %v587_v17  ;;  %v599_v33 = vld [vmem:[%s7537_s12 + $0x190] sm:$0xff] }
 0x150   : > { %5577 = vmatprep.subr.bf16.mxu0 %v5576_v34  ;;  %v5578_v42 = vpack.c.bf16 %v2035_v36, %v2027_v35  ;;  %v2044_v44 = vcvt.s32.f32 %v964_v37  ;;  %v966_v43 = vunpack.c.3.s8 %v585_v26  ;;  %v974_v45 = vunpack.c.3.s8 %v587_v17 }
 0x151   : > { %5845 = vmatprep.subr.bf16.mxu1 %v5844_v38  ;;  %v5846_v47 = vpack.c.bf16 %v2037_v40, %v2029_v39  ;;  %v2052_v48 = vcvt.s32.f32 %v972_v41  ;;  %v963_v49 = vunpack.c.0.s8 %v585_v26  ;;  %v971_v50 = vunpack.c.0.s8 %v587_v17 }
 0x152   : > { %5579 = vmatpush1.bf16.msra.mxu0 %v5578_v42  ;;  %v2046_v52 = vcvt.s32.f32 %v966_v43  ;;  %v2054_v53 = vcvt.s32.f32 %v974_v45  ;;  %v965_v54 = vunpack.c.2.s8 %v585_v26  ;;  %v973_v55 = vunpack.c.2.s8 %v587_v17 }
 0x153   : > { %5847 = vmatpush1.bf16.msra.mxu1 %v5846_v47  ;;  %v5580_v56 = vpack.c.bf16 %v2052_v48, %v2044_v44  ;;  %v2043_v57 = vcvt.s32.f32 %v963_v49  ;;  %v2051_v58 = vcvt.s32.f32 %v971_v50  ;;  %v980_v59 = vunpack.c.1.s8 %v589_v46  ;;  %v601_v50 = vld [vmem:[%s7537_s12 + $0x1a0] sm:$0xff] }
 0x154   : > { %v5848_v60 = vpack.c.bf16 %v2054_v53, %v2046_v52  ;;  %v2045_v61 = vcvt.s32.f32 %v965_v54  ;;  %v2053_v62 = vcvt.s32.f32 %v973_v55  ;;  %v988_v63 = vunpack.c.1.s8 %v591_v51  ;;  %v603_v55 = vld [vmem:[%s7537_s12 + $0x1b0] sm:$0xff] }
 0x155   : > { %5581 = vmatprep.subr.bf16.mxu0 %v5580_v56  ;;  %v5582_v0 = vpack.c.bf16 %v2051_v58, %v2043_v57  ;;  %v2060_v1 = vcvt.s32.f32 %v980_v59  ;;  %v982_v2 = vunpack.c.3.s8 %v589_v46  ;;  %v990_v3 = vunpack.c.3.s8 %v591_v51 }
 0x156   : > { %5849 = vmatprep.subr.bf16.mxu1 %v5848_v60  ;;  %v5850_v6 = vpack.c.bf16 %v2053_v62, %v2045_v61  ;;  %v2068_v7 = vcvt.s32.f32 %v988_v63  ;;  %v979_v8 = vunpack.c.0.s8 %v589_v46  ;;  %v987_v9 = vunpack.c.0.s8 %v591_v51 }
 0x157   : > { %5583 = vmatpush1.bf16.msra.mxu0 %v5582_v0  ;;  %v2062_v12 = vcvt.s32.f32 %v982_v2  ;;  %v2070_v13 = vcvt.s32.f32 %v990_v3  ;;  %v981_v14 = vunpack.c.2.s8 %v589_v46  ;;  %v989_v15 = vunpack.c.2.s8 %v591_v51 }
 0x158   : > { %5851 = vmatpush1.bf16.msra.mxu1 %v5850_v6  ;;  %v5584_v16 = vpack.c.bf16 %v2068_v7, %v2060_v1  ;;  %v2059_v19 = vcvt.s32.f32 %v979_v8  ;;  %v2067_v20 = vcvt.s32.f32 %v987_v9  ;;  %v996_v21 = vunpack.c.1.s8 %v593_v5  ;;  %v605_v9 = vld [vmem:[%s7537_s12 + $0x1c0] sm:$0xff] }
 0x159   : > { %v5852_v22 = vpack.c.bf16 %v2070_v13, %v2062_v12  ;;  %v2061_v23 = vcvt.s32.f32 %v981_v14  ;;  %v2069_v24 = vcvt.s32.f32 %v989_v15  ;;  %v1004_v25 = vunpack.c.1.s8 %v595_v11  ;;  %v607_v15 = vld [vmem:[%s7537_s12 + $0x1d0] sm:$0xff] }
 0x15a   : > { %5585 = vmatprep.subr.bf16.mxu0 %v5584_v16  ;;  %v5586_v26 = vpack.c.bf16 %v2067_v20, %v2059_v19  ;;  %v2076_v29 = vcvt.s32.f32 %v996_v21  ;;  %v998_v30 = vunpack.c.3.s8 %v593_v5  ;;  %v1006_v31 = vunpack.c.3.s8 %v595_v11 }
 0x15b   : > { %5853 = vmatprep.subr.bf16.mxu1 %v5852_v22  ;;  %v5854_v17 = vpack.c.bf16 %v2069_v24, %v2061_v23  ;;  %v2084_v18 = vcvt.s32.f32 %v1004_v25  ;;  %v995_v27 = vunpack.c.0.s8 %v593_v5  ;;  %v1003_v28 = vunpack.c.0.s8 %v595_v11 }
 0x15c   : > { %5587 = vmatpush1.bf16.msra.mxu0 %v5586_v26  ;;  %v2078_v34 = vcvt.s32.f32 %v998_v30  ;;  %v2086_v35 = vcvt.s32.f32 %v1006_v31  ;;  %v997_v36 = vunpack.c.2.s8 %v593_v5  ;;  %v1005_v37 = vunpack.c.2.s8 %v595_v11 }
 0x15d   : > { %5855 = vmatpush1.bf16.msra.mxu1 %v5854_v17  ;;  %v5588_v38 = vpack.c.bf16 %v2084_v18, %v2076_v29  ;;  %v2075_v39 = vcvt.s32.f32 %v995_v27  ;;  %v2083_v40 = vcvt.s32.f32 %v1003_v28  ;;  %v1012_v41 = vunpack.c.1.s8 %v597_v32  ;;  %v609_v28 = vld [vmem:[%s7537_s12 + $0x1e0] sm:$0xff] }
 0x15e   : > { %v5856_v42 = vpack.c.bf16 %v2086_v35, %v2078_v34  ;;  %v2077_v44 = vcvt.s32.f32 %v997_v36  ;;  %v2085_v43 = vcvt.s32.f32 %v1005_v37  ;;  %v1020_v45 = vunpack.c.1.s8 %v599_v33  ;;  %v611_v37 = vld [vmem:[%s7537_s12 + $0x1f0] sm:$0xff] }
 0x15f   : > { %5589 = vmatprep.subr.bf16.mxu0 %v5588_v38  ;;  %v5590_v46 = vpack.c.bf16 %v2083_v40, %v2075_v39  ;;  %v2092_v47 = vcvt.s32.f32 %v1012_v41  ;;  %v1014_v48 = vunpack.c.3.s8 %v597_v32  ;;  %v1022_v49 = vunpack.c.3.s8 %v599_v33 }
 0x160   : > { %5857 = vmatprep.subr.bf16.mxu1 %v5856_v42  ;;  %v5858_v51 = vpack.c.bf16 %v2085_v43, %v2077_v44  ;;  %v2100_v52 = vcvt.s32.f32 %v1020_v45  ;;  %v1011_v53 = vunpack.c.0.s8 %v597_v32  ;;  %v1019_v54 = vunpack.c.0.s8 %v599_v33 }
 0x161   : > { %5591 = vmatpush1.bf16.msra.mxu0 %v5590_v46  ;;  %v2094_v56 = vcvt.s32.f32 %v1014_v48  ;;  %v2102_v57 = vcvt.s32.f32 %v1022_v49  ;;  %v1013_v58 = vunpack.c.2.s8 %v597_v32  ;;  %v1021_v59 = vunpack.c.2.s8 %v599_v33 }
 0x162   : > { %5859 = vmatpush1.bf16.msra.mxu1 %v5858_v51  ;;  %v5592_v60 = vpack.c.bf16 %v2100_v52, %v2092_v47  ;;  %v2091_v61 = vcvt.s32.f32 %v1011_v53  ;;  %v2099_v62 = vcvt.s32.f32 %v1019_v54  ;;  %v1028_v63 = vunpack.c.1.s8 %v601_v50 }
 0x163   : > { %v5860_v0 = vpack.c.bf16 %v2102_v57, %v2094_v56  ;;  %v2093_v1 = vcvt.s32.f32 %v1013_v58  ;;  %v2101_v2 = vcvt.s32.f32 %v1021_v59  ;;  %v1036_v3 = vunpack.c.1.s8 %v603_v55 }
 0x164   : > { %5593 = vmatprep.subr.bf16.mxu0 %v5592_v60  ;;  %v5594_v5 = vpack.c.bf16 %v2099_v62, %v2091_v61  ;;  %v2108_v6 = vcvt.s32.f32 %v1028_v63  ;;  %v1030_v7 = vunpack.c.3.s8 %v601_v50  ;;  %v1038_v8 = vunpack.c.3.s8 %v603_v55  ;;  %v613_v62 = vld [vmem:[%s7537_s12 + $0x200] sm:$0xff]  ;;  %v615_v63 = vld [vmem:[%s7537_s12 + $0x210] sm:$0xff] }
 0x165   : > { %5861 = vmatprep.subr.bf16.mxu1 %v5860_v0  ;;  %v5862_v11 = vpack.c.bf16 %v2101_v2, %v2093_v1  ;;  %v2116_v12 = vcvt.s32.f32 %v1036_v3  ;;  %v1027_v13 = vunpack.c.0.s8 %v601_v50  ;;  %v1035_v14 = vunpack.c.0.s8 %v603_v55 }
 0x166   : > { %5595 = vmatpush1.bf16.msra.mxu0 %v5594_v5  ;;  %v2110_v16 = vcvt.s32.f32 %v1030_v7  ;;  %v2118_v19 = vcvt.s32.f32 %v1038_v8  ;;  %v1029_v20 = vunpack.c.2.s8 %v601_v50  ;;  %v1037_v21 = vunpack.c.2.s8 %v603_v55 }
 0x167   : > { %5863 = vmatpush1.bf16.msra.mxu1 %v5862_v11  ;;  %v5596_v22 = vpack.c.bf16 %v2116_v12, %v2108_v6  ;;  %v2107_v23 = vcvt.s32.f32 %v1027_v13  ;;  %v2115_v24 = vcvt.s32.f32 %v1035_v14  ;;  %v1044_v25 = vunpack.c.1.s8 %v605_v9 }
 0x168   : > { %v5864_v26 = vpack.c.bf16 %v2118_v19, %v2110_v16  ;;  %v2109_v29 = vcvt.s32.f32 %v1029_v20  ;;  %v2117_v30 = vcvt.s32.f32 %v1037_v21  ;;  %v1052_v31 = vunpack.c.1.s8 %v607_v15  ;;  %v7652_v20 = vld [vmem:[#allocation2] sm:$0xff] }
 0x169   : > { %5597 = vmatprep.subr.bf16.mxu0 %v5596_v22  ;;  %v5598_v32 = vpack.c.bf16 %v2115_v24, %v2107_v23  ;;  %v2124_v17 = vcvt.s32.f32 %v1044_v25  ;;  %v1046_v18 = vunpack.c.3.s8 %v605_v9  ;;  %v1054_v27 = vunpack.c.3.s8 %v607_v15  ;;  %v617_v25 = vld [vmem:[%s7537_s12 + $0x220] sm:$0xff] }
 0x16a   : > { %5865 = vmatprep.subr.bf16.mxu1 %v5864_v26  ;;  %v5866_v33 = vpack.c.bf16 %v2117_v30, %v2109_v29  ;;  %v2132_v34 = vcvt.s32.f32 %v1052_v31  ;;  %v1043_v35 = vunpack.c.0.s8 %v605_v9  ;;  %v1051_v36 = vunpack.c.0.s8 %v607_v15  ;;  %v619_v31 = vld [vmem:[%s7537_s12 + $0x230] sm:$0xff] }
 0x16b   : > { %5599 = vmatpush1.bf16.msra.mxu0 %v5598_v32  ;;  %v2126_v38 = vcvt.s32.f32 %v1046_v18  ;;  %v2134_v39 = vcvt.s32.f32 %v1054_v27  ;;  %v1045_v40 = vunpack.c.2.s8 %v605_v9  ;;  %v1053_v41 = vunpack.c.2.s8 %v607_v15 }
 0x16c   : > { %5867 = vmatpush1.bf16.msra.mxu1 %v5866_v33  ;;  %v5600_v42 = vpack.c.bf16 %v2132_v34, %v2124_v17  ;;  %v2123_v44 = vcvt.s32.f32 %v1043_v35  ;;  %v2131_v43 = vcvt.s32.f32 %v1051_v36  ;;  %v1060_v45 = vunpack.c.1.s8 %v609_v28 }
 0x16d   : > { %v5868_v46 = vpack.c.bf16 %v2134_v39, %v2126_v38  ;;  %v2125_v47 = vcvt.s32.f32 %v1045_v40  ;;  %v2133_v48 = vcvt.s32.f32 %v1053_v41  ;;  %v1068_v49 = vunpack.c.1.s8 %v611_v37 }
 0x16e   : > { %5601 = vmatprep.subr.bf16.mxu0 %v5600_v42  ;;  %v5602_v50 = vpack.c.bf16 %v2131_v43, %v2123_v44  ;;  %v2140_v51 = vcvt.s32.f32 %v1060_v45  ;;  %v1062_v52 = vunpack.c.3.s8 %v609_v28  ;;  %v1070_v53 = vunpack.c.3.s8 %v611_v37  ;;  %v621_v43 = vld [vmem:[%s7537_s12 + $0x240] sm:$0xff]  ;;  %v623_v45 = vld [vmem:[%s7537_s12 + $0x250] sm:$0xff] }
 0x16f   : > { %5869 = vmatprep.subr.bf16.mxu1 %v5868_v46  ;;  %v5870_v54 = vpack.c.bf16 %v2133_v48, %v2125_v47  ;;  %v2148_v55 = vcvt.s32.f32 %v1068_v49  ;;  %v1059_v56 = vunpack.c.0.s8 %v609_v28  ;;  %v1067_v57 = vunpack.c.0.s8 %v611_v37 }
 0x170   : > { %5603 = vmatpush1.bf16.msra.mxu0 %v5602_v50  ;;  %v2142_v58 = vcvt.s32.f32 %v1062_v52  ;;  %v2150_v59 = vcvt.s32.f32 %v1070_v53  ;;  %v1061_v60 = vunpack.c.2.s8 %v609_v28  ;;  %v1069_v61 = vunpack.c.2.s8 %v611_v37 }
 0x171   : > { %5871 = vmatpush1.bf16.msra.mxu1 %v5870_v54  ;;  %v5604_v0 = vpack.c.bf16 %v2148_v55, %v2140_v51  ;;  %v2139_v1 = vcvt.s32.f32 %v1059_v56  ;;  %v2147_v2 = vcvt.s32.f32 %v1067_v57  ;;  %v7167_v7 = vmov 1983009808  }
 0x172   : > { %v5872_v3 = vpack.c.bf16 %v2150_v59, %v2142_v58  ;;  %v2141_v5 = vcvt.s32.f32 %v1061_v60  ;;  %v2149_v6 = vcvt.s32.f32 %v1069_v61  ;;  %v3344_v8 = vunpack.c.l.s4 %v7167_v7 }
 0x173   : > { %5605 = vmatprep.subr.bf16.mxu0 %v5604_v0  ;;  %v5606_v9 = vpack.c.bf16 %v2147_v2, %v2139_v1  ;;  %v7650_v11 = vshrl.u32 %v3346_v4, 7  ;;  %v1076_v12 = vunpack.c.1.s8 %v613_v62  ;;  %v1084_v13 = vunpack.c.1.s8 %v615_v63  ;;  %v625_v2 = vld [vmem:[%s7537_s12 + $0x260] sm:$0xff] }
 0x174   : > { %5873 = vmatprep.subr.bf16.mxu1 %v5872_v3  ;;  %v5874_v14 = vpack.c.bf16 %v2149_v6, %v2141_v5  ;;  %v3345_v15 = vunpack.c.0.s8 %v3344_v8  ;;  %v1078_v16 = vunpack.c.3.s8 %v613_v62  ;;  %v1086_v19 = vunpack.c.3.s8 %v615_v63  ;;  %v627_v3 = vld [vmem:[%s7537_s12 + $0x270] sm:$0xff] }
 0x175   : > { %5607 = vmatpush1.bf16.msra.mxu0 %v5606_v9  ;;  %v2156_v21 = vcvt.s32.f32 %v1076_v12  ;;  %v2164_v22 = vcvt.s32.f32 %v1084_v13  ;;  %v1075_v23 = vunpack.c.0.s8 %v613_v62  ;;  %v1083_v24 = vunpack.c.0.s8 %v615_v63 }
 0x176   : > { %5875 = vmatpush1.bf16.msra.mxu1 %v5874_v14  ;;  %v7656_v4 = vsub.s32 %v3345_v15, %v7650_v11  ;;  %v2158_v26 = vcvt.s32.f32 %v1078_v16  ;;  %v2166_v29 = vcvt.s32.f32 %v1086_v19  ;;  %v1077_v30 = vunpack.c.2.s8 %v613_v62 }
 0x177   : > { %v5608_v32 = vpack.c.bf16 %v2164_v22, %v2156_v21  ;;  %v2155_v17 = vcvt.s32.f32 %v1075_v23  ;;  %v2163_v18 = vcvt.s32.f32 %v1083_v24  ;;  %v1085_v27 = vunpack.c.2.s8 %v615_v63 }
 0x178   : > { %v7661_v28 = vrot.slane %v7652_v20, %v7656_v4  ;;  %v5876_v33 = vpack.c.bf16 %v2166_v29, %v2158_v26  ;;  %v2157_v34 = vcvt.s32.f32 %v1077_v30  ;;  %v1092_v35 = vunpack.c.1.s8 %v617_v25 }
 0x179   : > { %5609 = vmatprep.subr.bf16.mxu0 %v5608_v32  ;;  %v5610_v36 = vpack.c.bf16 %v2163_v18, %v2155_v17  ;;  %v2165_v37 = vcvt.s32.f32 %v1085_v27  ;;  %v1100_v38 = vunpack.c.1.s8 %v619_v31  ;;  %v1094_v39 = vunpack.c.3.s8 %v617_v25  ;;  %v629_v32 = vld [vmem:[%s7537_s12 + $0x280] sm:$0xff]  ;;  %v631_v17 = vld [vmem:[%s7537_s12 + $0x290] sm:$0xff] }
 0x17a   : > { %v7665_v40 = vcombine.high %v7661_v28, %v7661_v28  ;;  %5877 = vmatprep.subr.bf16.mxu1 %v5876_v33  ;;  %v2172_v41 = vcvt.s32.f32 %v1092_v35  ;;  %v1102_v42 = vunpack.c.3.s8 %v619_v31  ;;  %v1091_v44 = vunpack.c.0.s8 %v617_v25 }
 0x17b   : > { %v5878_v46 = vpack.c.bf16 %v2165_v37, %v2157_v34  ;;  %v2180_v47 = vcvt.s32.f32 %v1100_v38  ;;  %v2174_v48 = vcvt.s32.f32 %v1094_v39  ;;  %v1099_v49 = vunpack.c.0.s8 %v619_v31 }
 0x17c   : > { %3458 = vmatprep.mubr.f32.mxu0 %v7665_v40  ;;  %3813 = vmatprep.mubr.f32.mxu1 %v7665_v40  ;;  %v2182_v50 = vcvt.s32.f32 %v1102_v42  ;;  %v2171_v51 = vcvt.s32.f32 %v1091_v44  ;;  %v1093_v52 = vunpack.c.2.s8 %v617_v25  ;;  %v1101_v53 = vunpack.c.2.s8 %v619_v31 }
 0x17d   : > { %3459 = vmatmul.mubr.f32.vlgmr.msra.gmra.mrb[0].mxu0 %v7661_v28  ;;  %3814 = vmatmul.mubr.f32.vlgmr.msra.gmra.mrb[0].mxu1 %v7661_v28  ;;  %v5612_v54 = vpack.c.bf16 %v2180_v47, %v2172_v41  ;;  %v2179_v55 = vcvt.s32.f32 %v1099_v49  ;;  %v1108_v56 = vunpack.c.1.s8 %v621_v43  ;;  %v1116_v57 = vunpack.c.1.s8 %v623_v45 }
 0x17e   : > { %5611 = vmatpush1.bf16.msra.mxu0 %v5610_v36  ;;  %5879 = vmatpush1.bf16.msra.mxu1 %v5878_v46  ;;  %v5880_v58 = vpack.c.bf16 %v2182_v50, %v2174_v48  ;;  %v2173_v59 = vcvt.s32.f32 %v1093_v52  ;;  %v2181_v60 = vcvt.s32.f32 %v1101_v53  ;;  %v1110_v61 = vunpack.c.3.s8 %v621_v43  ;;  %v633_v52 = vld [vmem:[%s7537_s12 + $0x2a0] sm:$0xff]  ;;  %v635_v53 = vld [vmem:[%s7537_s12 + $0x2b0] sm:$0xff] }
 0x17f   : > { %5613 = vmatprep.subr.bf16.mxu0 %v5612_v54  ;;  %v5614_v62 = vpack.c.bf16 %v2179_v55, %v2171_v51  ;;  %v2188_v63 = vcvt.s32.f32 %v1108_v56  ;;  %v2196_v0 = vcvt.s32.f32 %v1116_v57  ;;  %v1118_v1 = vunpack.c.3.s8 %v623_v45 }
 0x180   : > { %5881 = vmatprep.subr.bf16.mxu1 %v5880_v58  ;;  %v5882_v5 = vpack.c.bf16 %v2181_v60, %v2173_v59  ;;  %v2190_v6 = vcvt.s32.f32 %v1110_v61  ;;  %v1107_v7 = vunpack.c.0.s8 %v621_v43  ;;  %v1115_v8 = vunpack.c.0.s8 %v623_v45 }
 0x181   : > { %v5616_v9 = vpack.c.bf16 %v2196_v0, %v2188_v63  ;;  %v2198_v12 = vcvt.s32.f32 %v1118_v1  ;;  %v1109_v13 = vunpack.c.2.s8 %v621_v43  ;;  %v1117_v14 = vunpack.c.2.s8 %v623_v45 }
 0x182   : > { %5615 = vmatpush1.bf16.msra.mxu0 %v5614_v62  ;;  %5883 = vmatpush1.bf16.msra.mxu1 %v5882_v5  ;;  %v2187_v15 = vcvt.s32.f32 %v1107_v7  ;;  %v2195_v16 = vcvt.s32.f32 %v1115_v8  ;;  %v1124_v19 = vunpack.c.1.s8 %v625_v2  ;;  %v1132_v21 = vunpack.c.1.s8 %v627_v3 }
 0x183   : > { %5617 = vmatprep.subr.bf16.mxu0 %v5616_v9  ;;  %v5884_v22 = vpack.c.bf16 %v2198_v12, %v2190_v6  ;;  %v2189_v23 = vcvt.s32.f32 %v1109_v13  ;;  %v2197_v24 = vcvt.s32.f32 %v1117_v14  ;;  %v1126_v25 = vunpack.c.3.s8 %v625_v2  ;;  %v637_v13 = vld [vmem:[%s7537_s12 + $0x2c0] sm:$0xff]  ;;  %v639_v14 = vld [vmem:[%s7537_s12 + $0x2d0] sm:$0xff] }
 0x184   : > { %v5618_v26 = vpack.c.bf16 %v2195_v16, %v2187_v15  ;;  %v2204_v29 = vcvt.s32.f32 %v1124_v19  ;;  %v2212_v30 = vcvt.s32.f32 %v1132_v21  ;;  %v1134_v31 = vunpack.c.3.s8 %v627_v3 }
 0x185   : > { %5885 = vmatprep.subr.bf16.mxu1 %v5884_v22  ;;  %v5886_v18 = vpack.c.bf16 %v2197_v24, %v2189_v23  ;;  %v2206_v27 = vcvt.s32.f32 %v1126_v25  ;;  %v1123_v33 = vunpack.c.0.s8 %v625_v2  ;;  %v1131_v34 = vunpack.c.0.s8 %v627_v3 }
 0x186   : > { %5619 = vmatpush1.bf16.msra.mxu0 %v5618_v26  ;;  %v5620_v35 = vpack.c.bf16 %v2212_v30, %v2204_v29  ;;  %v2214_v36 = vcvt.s32.f32 %v1134_v31  ;;  %v1125_v37 = vunpack.c.2.s8 %v625_v2  ;;  %v1133_v38 = vunpack.c.2.s8 %v627_v3 }
 0x187   : > { %5887 = vmatpush1.bf16.msra.mxu1 %v5886_v18  ;;  %v2203_v39 = vcvt.s32.f32 %v1123_v33  ;;  %v2211_v41 = vcvt.s32.f32 %v1131_v34  ;;  %v1140_v42 = vunpack.c.1.s8 %v629_v32  ;;  %v1148_v44 = vunpack.c.1.s8 %v631_v17 }
 0x188   : > { %5621 = vmatprep.subr.bf16.mxu0 %v5620_v35  ;;  %v5888_v43 = vpack.c.bf16 %v2214_v36, %v2206_v27  ;;  %v2205_v45 = vcvt.s32.f32 %v1125_v37  ;;  %v2213_v46 = vcvt.s32.f32 %v1133_v38  ;;  %v1142_v47 = vunpack.c.3.s8 %v629_v32  ;;  %v641_v37 = vld [vmem:[%s7537_s12 + $0x2e0] sm:$0xff]  ;;  %v643_v38 = vld [vmem:[%s7537_s12 + $0x2f0] sm:$0xff] }
 0x189   : > { %v5622_v48 = vpack.c.bf16 %v2211_v41, %v2203_v39  ;;  %v2220_v49 = vcvt.s32.f32 %v1140_v42  ;;  %v2228_v50 = vcvt.s32.f32 %v1148_v44  ;;  %v1150_v51 = vunpack.c.3.s8 %v631_v17 }
 0x18a   : > { %5889 = vmatprep.subr.bf16.mxu1 %v5888_v43  ;;  %v5890_v54 = vpack.c.bf16 %v2213_v46, %v2205_v45  ;;  %v2222_v55 = vcvt.s32.f32 %v1142_v47  ;;  %v1139_v56 = vunpack.c.0.s8 %v629_v32  ;;  %v1147_v57 = vunpack.c.0.s8 %v631_v17 }
 0x18b   : > { %5623 = vmatpush1.bf16.msra.mxu0 %v5622_v48  ;;  %v5624_v58 = vpack.c.bf16 %v2228_v50, %v2220_v49  ;;  %v2230_v59 = vcvt.s32.f32 %v1150_v51  ;;  %v1141_v60 = vunpack.c.2.s8 %v629_v32  ;;  %v1149_v61 = vunpack.c.2.s8 %v631_v17 }
 0x18c   : > { %5891 = vmatpush1.bf16.msra.mxu1 %v5890_v54  ;;  %v2219_v62 = vcvt.s32.f32 %v1139_v56  ;;  %v2227_v63 = vcvt.s32.f32 %v1147_v57  ;;  %v1156_v0 = vunpack.c.1.s8 %v633_v52  ;;  %v1164_v1 = vunpack.c.1.s8 %v635_v53 }
 0x18d   : > { %5625 = vmatprep.subr.bf16.mxu0 %v5624_v58  ;;  %v5892_v2 = vpack.c.bf16 %v2230_v59, %v2222_v55  ;;  %v2221_v3 = vcvt.s32.f32 %v1141_v60  ;;  %v2229_v5 = vcvt.s32.f32 %v1149_v61  ;;  %v1158_v6 = vunpack.c.3.s8 %v633_v52  ;;  %v645_v60 = vld [vmem:[%s7537_s12 + $0x300] sm:$0xff]  ;;  %v647_v61 = vld [vmem:[%s7537_s12 + $0x310] sm:$0xff] }
 0x18e   : > { %v5626_v7 = vpack.c.bf16 %v2227_v63, %v2219_v62  ;;  %v2236_v8 = vcvt.s32.f32 %v1156_v0  ;;  %v2244_v9 = vcvt.s32.f32 %v1164_v1  ;;  %v1166_v12 = vunpack.c.3.s8 %v635_v53 }
 0x18f   : > { %5893 = vmatprep.subr.bf16.mxu1 %v5892_v2  ;;  %v5894_v15 = vpack.c.bf16 %v2229_v5, %v2221_v3  ;;  %v2238_v16 = vcvt.s32.f32 %v1158_v6  ;;  %v1155_v19 = vunpack.c.0.s8 %v633_v52  ;;  %v1163_v21 = vunpack.c.0.s8 %v635_v53 }
 0x190   : > { %5627 = vmatpush1.bf16.msra.mxu0 %v5626_v7  ;;  %v5628_v22 = vpack.c.bf16 %v2244_v9, %v2236_v8  ;;  %v2246_v23 = vcvt.s32.f32 %v1166_v12  ;;  %v1157_v24 = vunpack.c.2.s8 %v633_v52  ;;  %v1165_v25 = vunpack.c.2.s8 %v635_v53 }
 0x191   : > { %5895 = vmatpush1.bf16.msra.mxu1 %v5894_v15  ;;  %v2235_v26 = vcvt.s32.f32 %v1155_v19  ;;  %v2243_v29 = vcvt.s32.f32 %v1163_v21  ;;  %v1172_v30 = vunpack.c.1.s8 %v637_v13  ;;  %v1180_v31 = vunpack.c.1.s8 %v639_v14 }
 0x192   : > { %5629 = vmatprep.subr.bf16.mxu0 %v5628_v22  ;;  %v5896_v32 = vpack.c.bf16 %v2246_v23, %v2238_v16  ;;  %v2237_v17 = vcvt.s32.f32 %v1157_v24  ;;  %v2245_v18 = vcvt.s32.f32 %v1165_v25  ;;  %v1174_v27 = vunpack.c.3.s8 %v637_v13  ;;  %v649_v24 = vld [vmem:[%s7537_s12 + $0x320] sm:$0xff]  ;;  %v651_v25 = vld [vmem:[%s7537_s12 + $0x330] sm:$0xff] }
 0x193   : > { %v5630_v33 = vpack.c.bf16 %v2243_v29, %v2235_v26  ;;  %v2252_v34 = vcvt.s32.f32 %v1172_v30  ;;  %v2260_v35 = vcvt.s32.f32 %v1180_v31  ;;  %v1182_v36 = vunpack.c.3.s8 %v639_v14 }
 0x194   : > { %5897 = vmatprep.subr.bf16.mxu1 %v5896_v32  ;;  %v5898_v39 = vpack.c.bf16 %v2245_v18, %v2237_v17  ;;  %v2254_v41 = vcvt.s32.f32 %v1174_v27  ;;  %v1171_v42 = vunpack.c.0.s8 %v637_v13  ;;  %v1179_v44 = vunpack.c.0.s8 %v639_v14 }
 0x195   : > { %5631 = vmatpush1.bf16.msra.mxu0 %v5630_v33  ;;  %v5632_v43 = vpack.c.bf16 %v2260_v35, %v2252_v34  ;;  %v2262_v45 = vcvt.s32.f32 %v1182_v36  ;;  %v1173_v46 = vunpack.c.2.s8 %v637_v13  ;;  %v1181_v47 = vunpack.c.2.s8 %v639_v14 }
 0x196   : > { %5899 = vmatpush1.bf16.msra.mxu1 %v5898_v39  ;;  %v2251_v48 = vcvt.s32.f32 %v1171_v42  ;;  %v2259_v49 = vcvt.s32.f32 %v1179_v44  ;;  %v1188_v50 = vunpack.c.1.s8 %v641_v37  ;;  %v1196_v51 = vunpack.c.1.s8 %v643_v38 }
 0x197   : > { %5633 = vmatprep.subr.bf16.mxu0 %v5632_v43  ;;  %v5900_v52 = vpack.c.bf16 %v2262_v45, %v2254_v41  ;;  %v2253_v53 = vcvt.s32.f32 %v1173_v46  ;;  %v2261_v54 = vcvt.s32.f32 %v1181_v47  ;;  %v1190_v55 = vunpack.c.3.s8 %v641_v37  ;;  %v653_v46 = vld [vmem:[%s7537_s12 + $0x340] sm:$0xff]  ;;  %v655_v47 = vld [vmem:[%s7537_s12 + $0x350] sm:$0xff] }
 0x198   : > { %v5634_v56 = vpack.c.bf16 %v2259_v49, %v2251_v48  ;;  %v2268_v57 = vcvt.s32.f32 %v1188_v50  ;;  %v2276_v58 = vcvt.s32.f32 %v1196_v51  ;;  %v1198_v59 = vunpack.c.3.s8 %v643_v38 }
 0x199   : > { %5901 = vmatprep.subr.bf16.mxu1 %v5900_v52  ;;  %v5902_v62 = vpack.c.bf16 %v2261_v54, %v2253_v53  ;;  %v2270_v63 = vcvt.s32.f32 %v1190_v55  ;;  %v1187_v0 = vunpack.c.0.s8 %v641_v37  ;;  %v1195_v1 = vunpack.c.0.s8 %v643_v38 }
 0x19a   : > { %5635 = vmatpush1.bf16.msra.mxu0 %v5634_v56  ;;  %v5636_v2 = vpack.c.bf16 %v2276_v58, %v2268_v57  ;;  %v2278_v3 = vcvt.s32.f32 %v1198_v59  ;;  %v1189_v5 = vunpack.c.2.s8 %v641_v37  ;;  %v1197_v6 = vunpack.c.2.s8 %v643_v38 }
 0x19b   : > { %5903 = vmatpush1.bf16.msra.mxu1 %v5902_v62  ;;  %v2267_v7 = vcvt.s32.f32 %v1187_v0  ;;  %v2275_v8 = vcvt.s32.f32 %v1195_v1  ;;  %v1204_v9 = vunpack.c.1.s8 %v645_v60  ;;  %v1212_v12 = vunpack.c.1.s8 %v647_v61 }
 0x19c   : > { %5637 = vmatprep.subr.bf16.mxu0 %v5636_v2  ;;  %v5904_v13 = vpack.c.bf16 %v2278_v3, %v2270_v63  ;;  %v2269_v14 = vcvt.s32.f32 %v1189_v5  ;;  %v2277_v15 = vcvt.s32.f32 %v1197_v6  ;;  %v1206_v16 = vunpack.c.3.s8 %v645_v60  ;;  %v657_v5 = vld [vmem:[%s7537_s12 + $0x360] sm:$0xff]  ;;  %v659_v6 = vld [vmem:[%s7537_s12 + $0x370] sm:$0xff] }
 0x19d   : > { %v5638_v19 = vpack.c.bf16 %v2275_v8, %v2267_v7  ;;  %v2284_v21 = vcvt.s32.f32 %v1204_v9  ;;  %v2292_v22 = vcvt.s32.f32 %v1212_v12  ;;  %v1214_v23 = vunpack.c.3.s8 %v647_v61 }
 0x19e   : > { %5905 = vmatprep.subr.bf16.mxu1 %v5904_v13  ;;  %v5906_v26 = vpack.c.bf16 %v2277_v15, %v2269_v14  ;;  %v2286_v29 = vcvt.s32.f32 %v1206_v16  ;;  %v1203_v30 = vunpack.c.0.s8 %v645_v60  ;;  %v1211_v31 = vunpack.c.0.s8 %v647_v61 }
 0x19f   : > { %5639 = vmatpush1.bf16.msra.mxu0 %v5638_v19  ;;  %v5640_v32 = vpack.c.bf16 %v2292_v22, %v2284_v21  ;;  %v2294_v17 = vcvt.s32.f32 %v1214_v23  ;;  %v1205_v18 = vunpack.c.2.s8 %v645_v60  ;;  %v1213_v27 = vunpack.c.2.s8 %v647_v61 }
 0x1a0   : > { %5907 = vmatpush1.bf16.msra.mxu1 %v5906_v26  ;;  %v2283_v33 = vcvt.s32.f32 %v1203_v30  ;;  %v2291_v34 = vcvt.s32.f32 %v1211_v31  ;;  %v1220_v35 = vunpack.c.1.s8 %v649_v24  ;;  %v1228_v36 = vunpack.c.1.s8 %v651_v25 }
 0x1a1   : > { %5641 = vmatprep.subr.bf16.mxu0 %v5640_v32  ;;  %v5908_v37 = vpack.c.bf16 %v2294_v17, %v2286_v29  ;;  %v2285_v38 = vcvt.s32.f32 %v1205_v18  ;;  %v2293_v39 = vcvt.s32.f32 %v1213_v27  ;;  %v1222_v41 = vunpack.c.3.s8 %v649_v24  ;;  %v661_v18 = vld [vmem:[%s7537_s12 + $0x380] sm:$0xff]  ;;  %v663_v27 = vld [vmem:[%s7537_s12 + $0x390] sm:$0xff] }
 0x1a2   : > { %v5642_v42 = vpack.c.bf16 %v2291_v34, %v2283_v33  ;;  %v2300_v44 = vcvt.s32.f32 %v1220_v35  ;;  %v2308_v43 = vcvt.s32.f32 %v1228_v36  ;;  %v1230_v45 = vunpack.c.3.s8 %v651_v25 }
 0x1a3   : > { %5909 = vmatprep.subr.bf16.mxu1 %v5908_v37  ;;  %v5910_v48 = vpack.c.bf16 %v2293_v39, %v2285_v38  ;;  %v2302_v49 = vcvt.s32.f32 %v1222_v41  ;;  %v1219_v50 = vunpack.c.0.s8 %v649_v24  ;;  %v1227_v51 = vunpack.c.0.s8 %v651_v25 }
 0x1a4   : > { %5643 = vmatpush1.bf16.msra.mxu0 %v5642_v42  ;;  %v5644_v52 = vpack.c.bf16 %v2308_v43, %v2300_v44  ;;  %v2310_v53 = vcvt.s32.f32 %v1230_v45  ;;  %v1221_v54 = vunpack.c.2.s8 %v649_v24  ;;  %v1229_v55 = vunpack.c.2.s8 %v651_v25 }
 0x1a5   : > { %5911 = vmatpush1.bf16.msra.mxu1 %v5910_v48  ;;  %v2299_v56 = vcvt.s32.f32 %v1219_v50  ;;  %v2307_v57 = vcvt.s32.f32 %v1227_v51  ;;  %v1236_v58 = vunpack.c.1.s8 %v653_v46  ;;  %v1244_v59 = vunpack.c.1.s8 %v655_v47 }
 0x1a6   : > { %5645 = vmatprep.subr.bf16.mxu0 %v5644_v52  ;;  %v5912_v60 = vpack.c.bf16 %v2310_v53, %v2302_v49  ;;  %v2301_v61 = vcvt.s32.f32 %v1221_v54  ;;  %v2309_v62 = vcvt.s32.f32 %v1229_v55  ;;  %v1238_v63 = vunpack.c.3.s8 %v653_v46  ;;  %v665_v54 = vld [vmem:[%s7537_s12 + $0x3a0] sm:$0xff]  ;;  %v667_v55 = vld [vmem:[%s7537_s12 + $0x3b0] sm:$0xff] }
 0x1a7   : > { %v5646_v0 = vpack.c.bf16 %v2307_v57, %v2299_v56  ;;  %v2316_v1 = vcvt.s32.f32 %v1236_v58  ;;  %v2324_v2 = vcvt.s32.f32 %v1244_v59  ;;  %v1246_v3 = vunpack.c.3.s8 %v655_v47 }
 0x1a8   : > { %5913 = vmatprep.subr.bf16.mxu1 %v5912_v60  ;;  %v5914_v7 = vpack.c.bf16 %v2309_v62, %v2301_v61  ;;  %v2318_v8 = vcvt.s32.f32 %v1238_v63  ;;  %v1235_v9 = vunpack.c.0.s8 %v653_v46  ;;  %v1243_v12 = vunpack.c.0.s8 %v655_v47 }
 0x1a9   : > { %5647 = vmatpush1.bf16.msra.mxu0 %v5646_v0  ;;  %v5648_v13 = vpack.c.bf16 %v2324_v2, %v2316_v1  ;;  %v2326_v14 = vcvt.s32.f32 %v1246_v3  ;;  %v1237_v15 = vunpack.c.2.s8 %v653_v46  ;;  %v1245_v16 = vunpack.c.2.s8 %v655_v47 }
 0x1aa   : > { %5915 = vmatpush1.bf16.msra.mxu1 %v5914_v7  ;;  %v2315_v19 = vcvt.s32.f32 %v1235_v9  ;;  %v2323_v21 = vcvt.s32.f32 %v1243_v12  ;;  %v1252_v22 = vunpack.c.1.s8 %v657_v5  ;;  %v1260_v23 = vunpack.c.1.s8 %v659_v6 }
 0x1ab   : > { %5649 = vmatprep.subr.bf16.mxu0 %v5648_v13  ;;  %v5916_v24 = vpack.c.bf16 %v2326_v14, %v2318_v8  ;;  %v2317_v25 = vcvt.s32.f32 %v1237_v15  ;;  %v2325_v26 = vcvt.s32.f32 %v1245_v16  ;;  %v1254_v29 = vunpack.c.3.s8 %v657_v5  ;;  %v669_v15 = vld [vmem:[%s7537_s12 + $0x3c0] sm:$0xff]  ;;  %v671_v16 = vld [vmem:[%s7537_s12 + $0x3d0] sm:$0xff] }
 0x1ac   : > { %v5650_v30 = vpack.c.bf16 %v2323_v21, %v2315_v19  ;;  %v2332_v31 = vcvt.s32.f32 %v1252_v22  ;;  %v2340_v32 = vcvt.s32.f32 %v1260_v23  ;;  %v1262_v17 = vunpack.c.3.s8 %v659_v6 }
 0x1ad   : > { %5917 = vmatprep.subr.bf16.mxu1 %v5916_v24  ;;  %v5918_v33 = vpack.c.bf16 %v2325_v26, %v2317_v25  ;;  %v2334_v34 = vcvt.s32.f32 %v1254_v29  ;;  %v1251_v35 = vunpack.c.0.s8 %v657_v5  ;;  %v1259_v36 = vunpack.c.0.s8 %v659_v6 }
 0x1ae   : > { %5651 = vmatpush1.bf16.msra.mxu0 %v5650_v30  ;;  %v5652_v37 = vpack.c.bf16 %v2340_v32, %v2332_v31  ;;  %v2342_v38 = vcvt.s32.f32 %v1262_v17  ;;  %v1253_v39 = vunpack.c.2.s8 %v657_v5  ;;  %v1261_v41 = vunpack.c.2.s8 %v659_v6 }
 0x1af   : > { %5919 = vmatpush1.bf16.msra.mxu1 %v5918_v33  ;;  %v2331_v42 = vcvt.s32.f32 %v1251_v35  ;;  %v2339_v44 = vcvt.s32.f32 %v1259_v36  ;;  %v1268_v43 = vunpack.c.1.s8 %v661_v18  ;;  %v1276_v45 = vunpack.c.1.s8 %v663_v27 }
 0x1b0   : > { %5653 = vmatprep.subr.bf16.mxu0 %v5652_v37  ;;  %v5920_v46 = vpack.c.bf16 %v2342_v38, %v2334_v34  ;;  %v2333_v47 = vcvt.s32.f32 %v1253_v39  ;;  %v2341_v48 = vcvt.s32.f32 %v1261_v41  ;;  %v1270_v49 = vunpack.c.3.s8 %v661_v18  ;;  %v673_v39 = vld [vmem:[%s7537_s12 + $0x3e0] sm:$0xff]  ;;  %v675_v41 = vld [vmem:[%s7537_s12 + $0x3f0] sm:$0xff] }
 0x1b1   : > { %v5654_v50 = vpack.c.bf16 %v2339_v44, %v2331_v42  ;;  %v2348_v51 = vcvt.s32.f32 %v1268_v43  ;;  %v2356_v52 = vcvt.s32.f32 %v1276_v45  ;;  %v1278_v53 = vunpack.c.3.s8 %v663_v27 }
 0x1b2   : > { %5921 = vmatprep.subr.bf16.mxu1 %v5920_v46  ;;  %v5922_v56 = vpack.c.bf16 %v2341_v48, %v2333_v47  ;;  %v2350_v57 = vcvt.s32.f32 %v1270_v49  ;;  %v1267_v58 = vunpack.c.0.s8 %v661_v18  ;;  %v1275_v59 = vunpack.c.0.s8 %v663_v27 }
 0x1b3   : > { %5655 = vmatpush1.bf16.msra.mxu0 %v5654_v50  ;;  %v5656_v60 = vpack.c.bf16 %v2356_v52, %v2348_v51  ;;  %v2358_v61 = vcvt.s32.f32 %v1278_v53  ;;  %v1269_v62 = vunpack.c.2.s8 %v661_v18  ;;  %v1277_v63 = vunpack.c.2.s8 %v663_v27 }
 0x1b4   : > { %5923 = vmatpush1.bf16.msra.mxu1 %v5922_v56  ;;  %v2347_v0 = vcvt.s32.f32 %v1267_v58  ;;  %v2355_v1 = vcvt.s32.f32 %v1275_v59  ;;  %v1284_v2 = vunpack.c.1.s8 %v665_v54  ;;  %v1292_v3 = vunpack.c.1.s8 %v667_v55 }
 0x1b5   : > { %5657 = vmatprep.subr.bf16.mxu0 %v5656_v60  ;;  %v5924_v5 = vpack.c.bf16 %v2358_v61, %v2350_v57  ;;  %v2349_v6 = vcvt.s32.f32 %v1269_v62  ;;  %v2357_v7 = vcvt.s32.f32 %v1277_v63  ;;  %v1286_v8 = vunpack.c.3.s8 %v665_v54  ;;  %v677_v62 = vld [vmem:[%s7537_s12 + $0x400] sm:$0xff] }
 0x1b6   : > { %v5658_v9 = vpack.c.bf16 %v2355_v1, %v2347_v0  ;;  %v2364_v12 = vcvt.s32.f32 %v1284_v2  ;;  %v2372_v13 = vcvt.s32.f32 %v1292_v3  ;;  %v1294_v14 = vunpack.c.3.s8 %v667_v55  ;;  %v679_v3 = vld [vmem:[%s7537_s12 + $0x410] sm:$0xff] }
 0x1b7   : > { %5925 = vmatprep.subr.bf16.mxu1 %v5924_v5  ;;  %v5926_v19 = vpack.c.bf16 %v2357_v7, %v2349_v6  ;;  %v2366_v21 = vcvt.s32.f32 %v1286_v8  ;;  %v1283_v22 = vunpack.c.0.s8 %v665_v54  ;;  %v1291_v23 = vunpack.c.0.s8 %v667_v55 }
 0x1b8   : > { %5659 = vmatpush1.bf16.msra.mxu0 %v5658_v9  ;;  %v5660_v24 = vpack.c.bf16 %v2372_v13, %v2364_v12  ;;  %v2374_v25 = vcvt.s32.f32 %v1294_v14  ;;  %v1285_v26 = vunpack.c.2.s8 %v665_v54  ;;  %v1293_v29 = vunpack.c.2.s8 %v667_v55 }
 0x1b9   : > { %5927 = vmatpush1.bf16.msra.mxu1 %v5926_v19  ;;  %v2363_v30 = vcvt.s32.f32 %v1283_v22  ;;  %v2371_v31 = vcvt.s32.f32 %v1291_v23  ;;  %v1300_v32 = vunpack.c.1.s8 %v669_v15  ;;  %v1308_v17 = vunpack.c.1.s8 %v671_v16 }
 0x1ba   : > { %5661 = vmatprep.subr.bf16.mxu0 %v5660_v24  ;;  %v5928_v18 = vpack.c.bf16 %v2374_v25, %v2366_v21  ;;  %v2365_v27 = vcvt.s32.f32 %v1285_v26  ;;  %v2373_v33 = vcvt.s32.f32 %v1293_v29  ;;  %v1302_v34 = vunpack.c.3.s8 %v669_v15 }
 0x1bb   : > { %v5662_v35 = vpack.c.bf16 %v2371_v31, %v2363_v30  ;;  %v2380_v36 = vcvt.s32.f32 %v1300_v32  ;;  %v2388_v37 = vcvt.s32.f32 %v1308_v17  ;;  %v1310_v38 = vunpack.c.3.s8 %v671_v16  ;;  %v683_v32 = vld [vmem:[%s7537_s12 + $0x430] sm:$0xff] }
 0x1bc   : > { %5929 = vmatprep.subr.bf16.mxu1 %v5928_v18  ;;  %v5930_v42 = vpack.c.bf16 %v2373_v33, %v2365_v27  ;;  %v2382_v44 = vcvt.s32.f32 %v1302_v34  ;;  %v1299_v43 = vunpack.c.0.s8 %v669_v15  ;;  %v1307_v45 = vunpack.c.0.s8 %v671_v16 }
 0x1bd   : > { %5663 = vmatpush1.bf16.msra.mxu0 %v5662_v35  ;;  %v5664_v46 = vpack.c.bf16 %v2388_v37, %v2380_v36  ;;  %v2390_v47 = vcvt.s32.f32 %v1310_v38  ;;  %v1301_v48 = vunpack.c.2.s8 %v669_v15  ;;  %v1309_v49 = vunpack.c.2.s8 %v671_v16 }
 0x1be   : > { %5931 = vmatpush1.bf16.msra.mxu1 %v5930_v42  ;;  %v2379_v50 = vcvt.s32.f32 %v1299_v43  ;;  %v2387_v51 = vcvt.s32.f32 %v1307_v45  ;;  %v1316_v52 = vunpack.c.1.s8 %v673_v39  ;;  %v1324_v53 = vunpack.c.1.s8 %v675_v41 }
 0x1bf   : > { %5665 = vmatprep.subr.bf16.mxu0 %v5664_v46  ;;  %v5932_v54 = vpack.c.bf16 %v2390_v47, %v2382_v44  ;;  %v2381_v55 = vcvt.s32.f32 %v1301_v48  ;;  %v2389_v56 = vcvt.s32.f32 %v1309_v49  ;;  %v1318_v57 = vunpack.c.3.s8 %v673_v39 }
 0x1c0   : > { %v5666_v58 = vpack.c.bf16 %v2387_v51, %v2379_v50  ;;  %v2396_v59 = vcvt.s32.f32 %v1316_v52  ;;  %v2404_v60 = vcvt.s32.f32 %v1324_v53  ;;  %v1326_v61 = vunpack.c.3.s8 %v675_v41  ;;  %v685_v51 = vld [vmem:[%s7537_s12 + $0x440] sm:$0xff]  ;;  %v687_v52 = vld [vmem:[%s7537_s12 + $0x450] sm:$0xff] }
 0x1c1   : > { %5933 = vmatprep.subr.bf16.mxu1 %v5932_v54  ;;  %v5934_v63 = vpack.c.bf16 %v2389_v56, %v2381_v55  ;;  %v2398_v0 = vcvt.s32.f32 %v1318_v57  ;;  %v1315_v1 = vunpack.c.0.s8 %v673_v39  ;;  %v1323_v2 = vunpack.c.0.s8 %v675_v41 }
 0x1c2   : > { %5667 = vmatpush1.bf16.msra.mxu0 %v5666_v58  ;;  %v5668_v5 = vpack.c.bf16 %v2404_v60, %v2396_v59  ;;  %v2406_v6 = vcvt.s32.f32 %v1326_v61  ;;  %v1317_v7 = vunpack.c.2.s8 %v673_v39  ;;  %v1325_v8 = vunpack.c.2.s8 %v675_v41 }
 0x1c3   : > { %5935 = vmatpush1.bf16.msra.mxu1 %v5934_v63  ;;  %v2395_v9 = vcvt.s32.f32 %v1315_v1  ;;  %v2403_v12 = vcvt.s32.f32 %v1323_v2  ;;  %v3342_v13 = vcombine.high %v7652_v20, %v7652_v20  ;;  %v1332_v14 = vunpack.c.1.s8 %v677_v62  ;;  %v681_v20 = vld [vmem:[%s7537_s12 + $0x420] sm:$0xff] }
 0x1c4   : > { %5669 = vmatprep.subr.bf16.mxu0 %v5668_v5  ;;  %v5936_v15 = vpack.c.bf16 %v2406_v6, %v2398_v0  ;;  %v2397_v16 = vcvt.s32.f32 %v1317_v7  ;;  %v2405_v19 = vcvt.s32.f32 %v1325_v8  ;;  %v1340_v21 = vunpack.c.1.s8 %v679_v3 }
 0x1c5   : > { %v5670_v22 = vpack.c.bf16 %v2403_v12, %v2395_v9  ;;  %v7704_v23 = vrot.slane %v3342_v13, %v7656_v4  ;;  %v2412_v24 = vcvt.s32.f32 %v1332_v14  ;;  %v1334_v25 = vunpack.c.3.s8 %v677_v62  ;;  %v689_v12 = vld [vmem:[%s7537_s12 + $0x460] sm:$0xff]  ;;  %v691_v13 = vld [vmem:[%s7537_s12 + $0x470] sm:$0xff] }
 0x1c6   : > { %5937 = vmatprep.subr.bf16.mxu1 %v5936_v15  ;;  %v5938_v26 = vpack.c.bf16 %v2405_v19, %v2397_v16  ;;  %v2420_v29 = vcvt.s32.f32 %v1340_v21  ;;  %v1342_v30 = vunpack.c.3.s8 %v679_v3  ;;  %v1331_v31 = vunpack.c.0.s8 %v677_v62 }
 0x1c7   : > { %5671 = vmatpush1.bf16.msra.mxu0 %v5670_v22  ;;  %v7710_v17 = vcombine.high %v7704_v23, %v7704_v23  ;;  %v2414_v18 = vcvt.s32.f32 %v1334_v25  ;;  %v1339_v27 = vunpack.c.0.s8 %v679_v3  ;;  %v1333_v33 = vunpack.c.2.s8 %v677_v62 }
 0x1c8   : > { %5939 = vmatpush1.bf16.msra.mxu1 %v5938_v26  ;;  %v5672_v34 = vpack.c.bf16 %v2420_v29, %v2412_v24  ;;  %v2422_v35 = vcvt.s32.f32 %v1342_v30  ;;  %v2411_v36 = vcvt.s32.f32 %v1331_v31  ;;  %v1341_v37 = vunpack.c.2.s8 %v679_v3 }
 0x1c9   : > { %3529 = vmatprep.mubr.f32.mxu0 %v7710_v17  ;;  %3884 = vmatprep.mubr.f32.mxu1 %v7710_v17  ;;  %v2419_v38 = vcvt.s32.f32 %v1339_v27  ;;  %v2413_v39 = vcvt.s32.f32 %v1333_v33  ;;  %v1348_v41 = vunpack.c.1.s8 %v681_v20  ;;  %v1356_v42 = vunpack.c.1.s8 %v683_v32 }
 0x1ca   : > { %5673 = vmatprep.subr.bf16.mxu0 %v5672_v34  ;;  %v5940_v44 = vpack.c.bf16 %v2422_v35, %v2414_v18  ;;  %3530 = vmatmul.mubr.f32.vlgmr.msra.gmra.mrb[0].mxu0 %v7704_v23  ;;  %v2421_v43 = vcvt.s32.f32 %v1341_v37  ;;  %v1350_v45 = vunpack.c.3.s8 %v681_v20  ;;  %v1358_v46 = vunpack.c.3.s8 %v683_v32  ;;  %v693_v37 = vld [vmem:[%s7537_s12 + $0x480] sm:$0xff] }
 0x1cb   : > { %v5674_v47 = vpack.c.bf16 %v2419_v38, %v2411_v36  ;;  %3885 = vmatmul.mubr.f32.vlgmr.msra.gmra.mrb[0].mxu1 %v7704_v23  ;;  %v2428_v48 = vcvt.s32.f32 %v1348_v41  ;;  %v2436_v49 = vcvt.s32.f32 %v1356_v42  ;;  %v1347_v50 = vunpack.c.0.s8 %v681_v20  ;;  %v695_v38 = vld [vmem:[%s7537_s12 + $0x490] sm:$0xff] }
 0x1cc   : > { %5941 = vmatprep.subr.bf16.mxu1 %v5940_v44  ;;  %v5942_v53 = vpack.c.bf16 %v2421_v43, %v2413_v39  ;;  %v2430_v54 = vcvt.s32.f32 %v1350_v45  ;;  %v2438_v55 = vcvt.s32.f32 %v1358_v46  ;;  %v1355_v56 = vunpack.c.0.s8 %v683_v32 }
 0x1cd   : > { %5675 = vmatpush1.bf16.msra.mxu0 %v5674_v47  ;;  %v5676_v57 = vpack.c.bf16 %v2436_v49, %v2428_v48  ;;  %v2427_v58 = vcvt.s32.f32 %v1347_v50  ;;  %v1349_v59 = vunpack.c.2.s8 %v681_v20  ;;  %v1357_v60 = vunpack.c.2.s8 %v683_v32 }
 0x1ce   : > { %5943 = vmatpush1.bf16.msra.mxu1 %v5942_v53  ;;  %v5944_v61 = vpack.c.bf16 %v2438_v55, %v2430_v54  ;;  %v2435_v62 = vcvt.s32.f32 %v1355_v56  ;;  %v1364_v63 = vunpack.c.1.s8 %v685_v51  ;;  %v1372_v0 = vunpack.c.1.s8 %v687_v52 }
 0x1cf   : > { %5677 = vmatprep.subr.bf16.mxu0 %v5676_v57  ;;  %v2429_v1 = vcvt.s32.f32 %v1349_v59  ;;  %v2437_v2 = vcvt.s32.f32 %v1357_v60  ;;  %v1366_v3 = vunpack.c.3.s8 %v685_v51  ;;  %v1374_v5 = vunpack.c.3.s8 %v687_v52  ;;  %v697_v60 = vld [vmem:[%s7537_s12 + $0x4a0] sm:$0xff] }
 0x1d0   : > { %5945 = vmatprep.subr.bf16.mxu1 %v5944_v61  ;;  %v5678_v6 = vpack.c.bf16 %v2435_v62, %v2427_v58  ;;  %v2444_v7 = vcvt.s32.f32 %v1364_v63  ;;  %v2452_v8 = vcvt.s32.f32 %v1372_v0  ;;  %v1363_v9 = vunpack.c.0.s8 %v685_v51  ;;  %v699_v61 = vld [vmem:[%s7537_s12 + $0x4b0] sm:$0xff] }
 0x1d1   : > { %v5946_v14 = vpack.c.bf16 %v2437_v2, %v2429_v1  ;;  %v2446_v15 = vcvt.s32.f32 %v1366_v3  ;;  %v2454_v16 = vcvt.s32.f32 %v1374_v5  ;;  %v1371_v19 = vunpack.c.0.s8 %v687_v52 }
 0x1d2   : > { %5679 = vmatpush1.bf16.msra.mxu0 %v5678_v6  ;;  %v5680_v21 = vpack.c.bf16 %v2452_v8, %v2444_v7  ;;  %v2443_v22 = vcvt.s32.f32 %v1363_v9  ;;  %v1365_v24 = vunpack.c.2.s8 %v685_v51  ;;  %v1373_v25 = vunpack.c.2.s8 %v687_v52 }
 0x1d3   : > { %5947 = vmatpush1.bf16.msra.mxu1 %v5946_v14  ;;  %v5948_v26 = vpack.c.bf16 %v2454_v16, %v2446_v15  ;;  %v2451_v29 = vcvt.s32.f32 %v1371_v19  ;;  %v1380_v30 = vunpack.c.1.s8 %v689_v12  ;;  %v1388_v31 = vunpack.c.1.s8 %v691_v13 }
 0x1d4   : > { %5681 = vmatprep.subr.bf16.mxu0 %v5680_v21  ;;  %v2445_v20 = vcvt.s32.f32 %v1365_v24  ;;  %v2453_v32 = vcvt.s32.f32 %v1373_v25  ;;  %v1382_v18 = vunpack.c.3.s8 %v689_v12  ;;  %v1390_v27 = vunpack.c.3.s8 %v691_v13  ;;  %v701_v25 = vld [vmem:[%s7537_s12 + $0x4c0] sm:$0xff] }
 0x1d5   : > { %5949 = vmatprep.subr.bf16.mxu1 %v5948_v26  ;;  %v5682_v33 = vpack.c.bf16 %v2451_v29, %v2443_v22  ;;  %v2460_v34 = vcvt.s32.f32 %v1380_v30  ;;  %v2468_v35 = vcvt.s32.f32 %v1388_v31  ;;  %v1379_v36 = vunpack.c.0.s8 %v689_v12  ;;  %v703_v26 = vld [vmem:[%s7537_s12 + $0x4d0] sm:$0xff] }
 0x1d6   : > { %v5950_v39 = vpack.c.bf16 %v2453_v32, %v2445_v20  ;;  %v2462_v41 = vcvt.s32.f32 %v1382_v18  ;;  %v2470_v42 = vcvt.s32.f32 %v1390_v27  ;;  %v1387_v44 = vunpack.c.0.s8 %v691_v13 }
 0x1d7   : > { %5683 = vmatpush1.bf16.msra.mxu0 %v5682_v33  ;;  %v5684_v43 = vpack.c.bf16 %v2468_v35, %v2460_v34  ;;  %v2459_v45 = vcvt.s32.f32 %v1379_v36  ;;  %v1381_v46 = vunpack.c.2.s8 %v689_v12  ;;  %v1389_v47 = vunpack.c.2.s8 %v691_v13 }
 0x1d8   : > { %5951 = vmatpush1.bf16.msra.mxu1 %v5950_v39  ;;  %v5952_v48 = vpack.c.bf16 %v2470_v42, %v2462_v41  ;;  %v2467_v49 = vcvt.s32.f32 %v1387_v44  ;;  %v1396_v50 = vunpack.c.1.s8 %v693_v37  ;;  %v1404_v51 = vunpack.c.1.s8 %v695_v38 }
 0x1d9   : > { %5685 = vmatprep.subr.bf16.mxu0 %v5684_v43  ;;  %v2461_v52 = vcvt.s32.f32 %v1381_v46  ;;  %v2469_v53 = vcvt.s32.f32 %v1389_v47  ;;  %v1398_v54 = vunpack.c.3.s8 %v693_v37  ;;  %v1406_v55 = vunpack.c.3.s8 %v695_v38  ;;  %v705_v47 = vld [vmem:[%s7537_s12 + $0x4e0] sm:$0xff] }
 0x1da   : > { %5953 = vmatprep.subr.bf16.mxu1 %v5952_v48  ;;  %v5686_v56 = vpack.c.bf16 %v2467_v49, %v2459_v45  ;;  %v2476_v57 = vcvt.s32.f32 %v1396_v50  ;;  %v2484_v58 = vcvt.s32.f32 %v1404_v51  ;;  %v1395_v59 = vunpack.c.0.s8 %v693_v37  ;;  %v707_v48 = vld [vmem:[%s7537_s12 + $0x4f0] sm:$0xff] }
 0x1db   : > { %v5954_v62 = vpack.c.bf16 %v2469_v53, %v2461_v52  ;;  %v2478_v63 = vcvt.s32.f32 %v1398_v54  ;;  %v2486_v0 = vcvt.s32.f32 %v1406_v55  ;;  %v1403_v1 = vunpack.c.0.s8 %v695_v38 }
 0x1dc   : > { %5687 = vmatpush1.bf16.msra.mxu0 %v5686_v56  ;;  %v5688_v2 = vpack.c.bf16 %v2484_v58, %v2476_v57  ;;  %v2475_v3 = vcvt.s32.f32 %v1395_v59  ;;  %v1397_v5 = vunpack.c.2.s8 %v693_v37  ;;  %v1405_v6 = vunpack.c.2.s8 %v695_v38 }
 0x1dd   : > { %5955 = vmatpush1.bf16.msra.mxu1 %v5954_v62  ;;  %v5956_v7 = vpack.c.bf16 %v2486_v0, %v2478_v63  ;;  %v2483_v8 = vcvt.s32.f32 %v1403_v1  ;;  %v1412_v9 = vunpack.c.1.s8 %v697_v60  ;;  %v1420_v12 = vunpack.c.1.s8 %v699_v61 }
 0x1de   : > { %5689 = vmatprep.subr.bf16.mxu0 %v5688_v2  ;;  %v2477_v13 = vcvt.s32.f32 %v1397_v5  ;;  %v2485_v14 = vcvt.s32.f32 %v1405_v6  ;;  %v1414_v15 = vunpack.c.3.s8 %v697_v60  ;;  %v1422_v16 = vunpack.c.3.s8 %v699_v61  ;;  %v709_v6 = vld [vmem:[%s7537_s12 + $0x500] sm:$0xff] }
 0x1df   : > { %5957 = vmatprep.subr.bf16.mxu1 %v5956_v7  ;;  %v5690_v19 = vpack.c.bf16 %v2483_v8, %v2475_v3  ;;  %v2492_v21 = vcvt.s32.f32 %v1412_v9  ;;  %v2500_v22 = vcvt.s32.f32 %v1420_v12  ;;  %v1411_v24 = vunpack.c.0.s8 %v697_v60  ;;  %v711_v7 = vld [vmem:[%s7537_s12 + $0x510] sm:$0xff] }
 0x1e0   : > { %v5958_v29 = vpack.c.bf16 %v2485_v14, %v2477_v13  ;;  %v2494_v30 = vcvt.s32.f32 %v1414_v15  ;;  %v2502_v31 = vcvt.s32.f32 %v1422_v16  ;;  %v1419_v20 = vunpack.c.0.s8 %v699_v61 }
 0x1e1   : > { %5691 = vmatpush1.bf16.msra.mxu0 %v5690_v19  ;;  %v5692_v32 = vpack.c.bf16 %v2500_v22, %v2492_v21  ;;  %v2491_v18 = vcvt.s32.f32 %v1411_v24  ;;  %v1413_v27 = vunpack.c.2.s8 %v697_v60  ;;  %v1421_v33 = vunpack.c.2.s8 %v699_v61 }
 0x1e2   : > { %5959 = vmatpush1.bf16.msra.mxu1 %v5958_v29  ;;  %v5960_v34 = vpack.c.bf16 %v2502_v31, %v2494_v30  ;;  %v2499_v35 = vcvt.s32.f32 %v1419_v20  ;;  %v1428_v36 = vunpack.c.1.s8 %v701_v25  ;;  %v1436_v37 = vunpack.c.1.s8 %v703_v26 }
 0x1e3   : > { %5693 = vmatprep.subr.bf16.mxu0 %v5692_v32  ;;  %v2493_v38 = vcvt.s32.f32 %v1413_v27  ;;  %v2501_v39 = vcvt.s32.f32 %v1421_v33  ;;  %v1430_v41 = vunpack.c.3.s8 %v701_v25  ;;  %v1438_v42 = vunpack.c.3.s8 %v703_v26  ;;  %v713_v33 = vld [vmem:[%s7537_s12 + $0x520] sm:$0xff] }
 0x1e4   : > { %5961 = vmatprep.subr.bf16.mxu1 %v5960_v34  ;;  %v5694_v44 = vpack.c.bf16 %v2499_v35, %v2491_v18  ;;  %v2508_v43 = vcvt.s32.f32 %v1428_v36  ;;  %v2516_v45 = vcvt.s32.f32 %v1436_v37  ;;  %v1427_v46 = vunpack.c.0.s8 %v701_v25  ;;  %v715_v34 = vld [vmem:[%s7537_s12 + $0x530] sm:$0xff] }
 0x1e5   : > { %v5962_v49 = vpack.c.bf16 %v2501_v39, %v2493_v38  ;;  %v2510_v50 = vcvt.s32.f32 %v1430_v41  ;;  %v2518_v51 = vcvt.s32.f32 %v1438_v42  ;;  %v1435_v52 = vunpack.c.0.s8 %v703_v26 }
 0x1e6   : > { %5695 = vmatpush1.bf16.msra.mxu0 %v5694_v44  ;;  %v5696_v53 = vpack.c.bf16 %v2516_v45, %v2508_v43  ;;  %v2507_v54 = vcvt.s32.f32 %v1427_v46  ;;  %v1429_v55 = vunpack.c.2.s8 %v701_v25  ;;  %v1437_v56 = vunpack.c.2.s8 %v703_v26 }
 0x1e7   : > { %5963 = vmatpush1.bf16.msra.mxu1 %v5962_v49  ;;  %v5964_v57 = vpack.c.bf16 %v2518_v51, %v2510_v50  ;;  %v2515_v58 = vcvt.s32.f32 %v1435_v52  ;;  %v1444_v59 = vunpack.c.1.s8 %v705_v47  ;;  %v1452_v60 = vunpack.c.1.s8 %v707_v48 }
 0x1e8   : > { %5697 = vmatprep.subr.bf16.mxu0 %v5696_v53  ;;  %v2509_v61 = vcvt.s32.f32 %v1429_v55  ;;  %v2517_v62 = vcvt.s32.f32 %v1437_v56  ;;  %v1446_v63 = vunpack.c.3.s8 %v705_v47  ;;  %v1454_v0 = vunpack.c.3.s8 %v707_v48  ;;  %v717_v56 = vld [vmem:[%s7537_s12 + $0x540] sm:$0xff] }
 0x1e9   : > { %5965 = vmatprep.subr.bf16.mxu1 %v5964_v57  ;;  %v5698_v1 = vpack.c.bf16 %v2515_v58, %v2507_v54  ;;  %v2524_v2 = vcvt.s32.f32 %v1444_v59  ;;  %v2532_v3 = vcvt.s32.f32 %v1452_v60  ;;  %v1443_v5 = vunpack.c.0.s8 %v705_v47  ;;  %v719_v57 = vld [vmem:[%s7537_s12 + $0x550] sm:$0xff] }
 0x1ea   : > { %v5966_v8 = vpack.c.bf16 %v2517_v62, %v2509_v61  ;;  %v2526_v9 = vcvt.s32.f32 %v1446_v63  ;;  %v2534_v12 = vcvt.s32.f32 %v1454_v0  ;;  %v1451_v13 = vunpack.c.0.s8 %v707_v48 }
 0x1eb   : > { %5699 = vmatpush1.bf16.msra.mxu0 %v5698_v1  ;;  %v5700_v14 = vpack.c.bf16 %v2532_v3, %v2524_v2  ;;  %v2523_v15 = vcvt.s32.f32 %v1443_v5  ;;  %v1445_v16 = vunpack.c.2.s8 %v705_v47  ;;  %v1453_v19 = vunpack.c.2.s8 %v707_v48 }
 0x1ec   : > { %5967 = vmatpush1.bf16.msra.mxu1 %v5966_v8  ;;  %v5968_v21 = vpack.c.bf16 %v2534_v12, %v2526_v9  ;;  %v2531_v22 = vcvt.s32.f32 %v1451_v13  ;;  %v1460_v24 = vunpack.c.1.s8 %v709_v6  ;;  %v1468_v25 = vunpack.c.1.s8 %v711_v7 }
 0x1ed   : > { %5701 = vmatprep.subr.bf16.mxu0 %v5700_v14  ;;  %v2525_v26 = vcvt.s32.f32 %v1445_v16  ;;  %v2533_v29 = vcvt.s32.f32 %v1453_v19  ;;  %v1462_v30 = vunpack.c.3.s8 %v709_v6  ;;  %v1470_v31 = vunpack.c.3.s8 %v711_v7  ;;  %v721_v19 = vld [vmem:[%s7537_s12 + $0x560] sm:$0xff] }
 0x1ee   : > { %5969 = vmatprep.subr.bf16.mxu1 %v5968_v21  ;;  %v5702_v20 = vpack.c.bf16 %v2531_v22, %v2523_v15  ;;  %v2540_v32 = vcvt.s32.f32 %v1460_v24  ;;  %v2548_v18 = vcvt.s32.f32 %v1468_v25  ;;  %v1459_v27 = vunpack.c.0.s8 %v709_v6  ;;  %v723_v21 = vld [vmem:[%s7537_s12 + $0x570] sm:$0xff] }
 0x1ef   : > { %v5970_v35 = vpack.c.bf16 %v2533_v29, %v2525_v26  ;;  %v2542_v36 = vcvt.s32.f32 %v1462_v30  ;;  %v2550_v37 = vcvt.s32.f32 %v1470_v31  ;;  %v1467_v38 = vunpack.c.0.s8 %v711_v7 }
 0x1f0   : > { %5703 = vmatpush1.bf16.msra.mxu0 %v5702_v20  ;;  %v5704_v39 = vpack.c.bf16 %v2548_v18, %v2540_v32  ;;  %v2539_v41 = vcvt.s32.f32 %v1459_v27  ;;  %v1461_v42 = vunpack.c.2.s8 %v709_v6  ;;  %v1469_v44 = vunpack.c.2.s8 %v711_v7 }
 0x1f1   : > { %5971 = vmatpush1.bf16.msra.mxu1 %v5970_v35  ;;  %v5972_v43 = vpack.c.bf16 %v2550_v37, %v2542_v36  ;;  %v2547_v45 = vcvt.s32.f32 %v1467_v38  ;;  %v1476_v46 = vunpack.c.1.s8 %v713_v33  ;;  %v1484_v47 = vunpack.c.1.s8 %v715_v34 }
 0x1f2   : > { %5705 = vmatprep.subr.bf16.mxu0 %v5704_v39  ;;  %v2541_v48 = vcvt.s32.f32 %v1461_v42  ;;  %v2549_v49 = vcvt.s32.f32 %v1469_v44  ;;  %v1478_v50 = vunpack.c.3.s8 %v713_v33  ;;  %v1486_v51 = vunpack.c.3.s8 %v715_v34  ;;  %v725_v44 = vld [vmem:[%s7537_s12 + $0x580] sm:$0xff] }
 0x1f3   : > { %5973 = vmatprep.subr.bf16.mxu1 %v5972_v43  ;;  %v5706_v52 = vpack.c.bf16 %v2547_v45, %v2539_v41  ;;  %v2556_v53 = vcvt.s32.f32 %v1476_v46  ;;  %v2564_v54 = vcvt.s32.f32 %v1484_v47  ;;  %v1475_v55 = vunpack.c.0.s8 %v713_v33  ;;  %v727_v43 = vld [vmem:[%s7537_s12 + $0x590] sm:$0xff] }
 0x1f4   : > { %v5974_v58 = vpack.c.bf16 %v2549_v49, %v2541_v48  ;;  %v2558_v59 = vcvt.s32.f32 %v1478_v50  ;;  %v2566_v60 = vcvt.s32.f32 %v1486_v51  ;;  %v1483_v61 = vunpack.c.0.s8 %v715_v34 }
 0x1f5   : > { %5707 = vmatpush1.bf16.msra.mxu0 %v5706_v52  ;;  %v5708_v62 = vpack.c.bf16 %v2564_v54, %v2556_v53  ;;  %v2555_v63 = vcvt.s32.f32 %v1475_v55  ;;  %v1477_v0 = vunpack.c.2.s8 %v713_v33  ;;  %v1485_v1 = vunpack.c.2.s8 %v715_v34 }
 0x1f6   : > { %5975 = vmatpush1.bf16.msra.mxu1 %v5974_v58  ;;  %v5976_v2 = vpack.c.bf16 %v2566_v60, %v2558_v59  ;;  %v2563_v3 = vcvt.s32.f32 %v1483_v61  ;;  %v1492_v5 = vunpack.c.1.s8 %v717_v56  ;;  %v1500_v6 = vunpack.c.1.s8 %v719_v57 }
 0x1f7   : > { %5709 = vmatprep.subr.bf16.mxu0 %v5708_v62  ;;  %v2557_v7 = vcvt.s32.f32 %v1477_v0  ;;  %v2565_v8 = vcvt.s32.f32 %v1485_v1  ;;  %v1494_v9 = vunpack.c.3.s8 %v717_v56  ;;  %v1502_v12 = vunpack.c.3.s8 %v719_v57  ;;  %v729_v1 = vld [vmem:[%s7537_s12 + $0x5a0] sm:$0xff] }
 0x1f8   : > { %5977 = vmatprep.subr.bf16.mxu1 %v5976_v2  ;;  %v5710_v13 = vpack.c.bf16 %v2563_v3, %v2555_v63  ;;  %v2572_v14 = vcvt.s32.f32 %v1492_v5  ;;  %v2580_v15 = vcvt.s32.f32 %v1500_v6  ;;  %v1491_v16 = vunpack.c.0.s8 %v717_v56  ;;  %v731_v2 = vld [vmem:[%s7537_s12 + $0x5b0] sm:$0xff] }
 0x1f9   : > { %v5978_v22 = vpack.c.bf16 %v2565_v8, %v2557_v7  ;;  %v2574_v24 = vcvt.s32.f32 %v1494_v9  ;;  %v2582_v25 = vcvt.s32.f32 %v1502_v12  ;;  %v1499_v26 = vunpack.c.0.s8 %v719_v57 }
 0x1fa   : > { %5711 = vmatpush1.bf16.msra.mxu0 %v5710_v13  ;;  %v5712_v29 = vpack.c.bf16 %v2580_v15, %v2572_v14  ;;  %v2571_v30 = vcvt.s32.f32 %v1491_v16  ;;  %v1493_v31 = vunpack.c.2.s8 %v717_v56  ;;  %v1501_v20 = vunpack.c.2.s8 %v719_v57 }
 0x1fb   : > { %5979 = vmatpush1.bf16.msra.mxu1 %v5978_v22  ;;  %v5980_v32 = vpack.c.bf16 %v2582_v25, %v2574_v24  ;;  %v2579_v18 = vcvt.s32.f32 %v1499_v26  ;;  %v1508_v27 = vunpack.c.1.s8 %v721_v19  ;;  %v1516_v33 = vunpack.c.1.s8 %v723_v21 }
 0x1fc   : > { %5713 = vmatprep.subr.bf16.mxu0 %v5712_v29  ;;  %v2573_v34 = vcvt.s32.f32 %v1493_v31  ;;  %v2581_v35 = vcvt.s32.f32 %v1501_v20  ;;  %v1510_v36 = vunpack.c.3.s8 %v721_v19  ;;  %v1518_v37 = vunpack.c.3.s8 %v723_v21  ;;  %v733_v20 = vld [vmem:[%s7537_s12 + $0x5c0] sm:$0xff] }
 0x1fd   : > { %5981 = vmatprep.subr.bf16.mxu1 %v5980_v32  ;;  %v5714_v38 = vpack.c.bf16 %v2579_v18, %v2571_v30  ;;  %v2588_v39 = vcvt.s32.f32 %v1508_v27  ;;  %v2596_v41 = vcvt.s32.f32 %v1516_v33  ;;  %v1507_v42 = vunpack.c.0.s8 %v721_v19  ;;  %v735_v32 = vld [vmem:[%s7537_s12 + $0x5d0] sm:$0xff] }
 0x1fe   : > { %v5982_v45 = vpack.c.bf16 %v2581_v35, %v2573_v34  ;;  %v2590_v46 = vcvt.s32.f32 %v1510_v36  ;;  %v2598_v47 = vcvt.s32.f32 %v1518_v37  ;;  %v1515_v48 = vunpack.c.0.s8 %v723_v21 }
 0x1ff   : > { %5715 = vmatpush1.bf16.msra.mxu0 %v5714_v38  ;;  %v5716_v49 = vpack.c.bf16 %v2596_v41, %v2588_v39  ;;  %v2587_v50 = vcvt.s32.f32 %v1507_v42  ;;  %v1509_v51 = vunpack.c.2.s8 %v721_v19  ;;  %v1517_v52 = vunpack.c.2.s8 %v723_v21 }
 0x200   : > { %5983 = vmatpush1.bf16.msra.mxu1 %v5982_v45  ;;  %v5984_v53 = vpack.c.bf16 %v2598_v47, %v2590_v46  ;;  %v2595_v54 = vcvt.s32.f32 %v1515_v48  ;;  %v1524_v55 = vunpack.c.1.s8 %v725_v44  ;;  %v1532_v56 = vunpack.c.1.s8 %v727_v43 }
 0x201   : > { %5717 = vmatprep.subr.bf16.mxu0 %v5716_v49  ;;  %v2589_v57 = vcvt.s32.f32 %v1509_v51  ;;  %v2597_v58 = vcvt.s32.f32 %v1517_v52  ;;  %v1526_v59 = vunpack.c.3.s8 %v725_v44  ;;  %v1534_v60 = vunpack.c.3.s8 %v727_v43  ;;  %v737_v52 = vld [vmem:[%s7537_s12 + $0x5e0] sm:$0xff] }
 0x202   : > { %5985 = vmatprep.subr.bf16.mxu1 %v5984_v53  ;;  %v5718_v61 = vpack.c.bf16 %v2595_v54, %v2587_v50  ;;  %v2604_v62 = vcvt.s32.f32 %v1524_v55  ;;  %v2612_v63 = vcvt.s32.f32 %v1532_v56  ;;  %v1523_v0 = vunpack.c.0.s8 %v725_v44  ;;  %v739_v53 = vld [vmem:[%s7537_s12 + $0x5f0] sm:$0xff] }
 0x203   : > { %v5986_v3 = vpack.c.bf16 %v2597_v58, %v2589_v57  ;;  %v2606_v5 = vcvt.s32.f32 %v1526_v59  ;;  %v2614_v6 = vcvt.s32.f32 %v1534_v60  ;;  %v1531_v7 = vunpack.c.0.s8 %v727_v43 }
 0x204   : > { %5719 = vmatpush1.bf16.msra.mxu0 %v5718_v61  ;;  %v5720_v8 = vpack.c.bf16 %v2612_v63, %v2604_v62  ;;  %v2603_v9 = vcvt.s32.f32 %v1523_v0  ;;  %v1525_v12 = vunpack.c.2.s8 %v725_v44  ;;  %v1533_v13 = vunpack.c.2.s8 %v727_v43 }
 0x205   : > { %5987 = vmatpush1.bf16.msra.mxu1 %v5986_v3  ;;  %v5988_v14 = vpack.c.bf16 %v2614_v6, %v2606_v5  ;;  %v2611_v15 = vcvt.s32.f32 %v1531_v7  ;;  %v1540_v16 = vunpack.c.1.s8 %v729_v1  ;;  %v1548_v19 = vunpack.c.1.s8 %v731_v2 }
 0x206   : > { %5721 = vmatprep.subr.bf16.mxu0 %v5720_v8  ;;  %v2605_v21 = vcvt.s32.f32 %v1525_v12  ;;  %v2613_v22 = vcvt.s32.f32 %v1533_v13  ;;  %v1542_v24 = vunpack.c.3.s8 %v729_v1  ;;  %v1550_v25 = vunpack.c.3.s8 %v731_v2  ;;  %v7744_v13 = vld [vmem:[#allocation2 + $0x8] sm:$0xff] }
 0x207   : > { %5989 = vmatprep.subr.bf16.mxu1 %v5988_v14  ;;  %v5722_v26 = vpack.c.bf16 %v2611_v15, %v2603_v9  ;;  %v2620_v29 = vcvt.s32.f32 %v1540_v16  ;;  %v2628_v30 = vcvt.s32.f32 %v1548_v19  ;;  %v1539_v31 = vunpack.c.0.s8 %v729_v1  ;;  %v741_v14 = vld [vmem:[%s7537_s12 + $0x600] sm:$0xff] }
 0x208   : > { %v5990_v18 = vpack.c.bf16 %v2613_v22, %v2605_v21  ;;  %v2622_v27 = vcvt.s32.f32 %v1542_v24  ;;  %v2630_v33 = vcvt.s32.f32 %v1550_v25  ;;  %v1547_v34 = vunpack.c.0.s8 %v731_v2  ;;  %v743_v22 = vld [vmem:[%s7537_s12 + $0x610] sm:$0xff] }
 0x209   : > { %5723 = vmatpush1.bf16.msra.mxu0 %v5722_v26  ;;  %v5724_v35 = vpack.c.bf16 %v2628_v30, %v2620_v29  ;;  %v2619_v36 = vcvt.s32.f32 %v1539_v31  ;;  %v1541_v37 = vunpack.c.2.s8 %v729_v1  ;;  %v1549_v38 = vunpack.c.2.s8 %v731_v2 }
 0x20a   : > { %5991 = vmatpush1.bf16.msra.mxu1 %v5990_v18  ;;  %v5992_v39 = vpack.c.bf16 %v2630_v33, %v2622_v27  ;;  %v2627_v41 = vcvt.s32.f32 %v1547_v34  ;;  %v1556_v42 = vunpack.c.1.s8 %v733_v20  ;;  %v1564_v44 = vunpack.c.1.s8 %v735_v32 }
 0x20b   : > { %5725 = vmatprep.subr.bf16.mxu0 %v5724_v35  ;;  %v2621_v43 = vcvt.s32.f32 %v1541_v37  ;;  %v2629_v45 = vcvt.s32.f32 %v1549_v38  ;;  %v1558_v46 = vunpack.c.3.s8 %v733_v20  ;;  %v1566_v47 = vunpack.c.3.s8 %v735_v32 }
 0x20c   : > { %5993 = vmatprep.subr.bf16.mxu1 %v5992_v39  ;;  %v5726_v48 = vpack.c.bf16 %v2627_v41, %v2619_v36  ;;  %v2636_v49 = vcvt.s32.f32 %v1556_v42  ;;  %v2644_v50 = vcvt.s32.f32 %v1564_v44  ;;  %v1555_v51 = vunpack.c.0.s8 %v733_v20  ;;  %v745_v39 = vld [vmem:[%s7537_s12 + $0x620] sm:$0xff]  ;;  %v747_v41 = vld [vmem:[%s7537_s12 + $0x630] sm:$0xff] }
 0x20d   : > { %v5994_v54 = vpack.c.bf16 %v2629_v45, %v2621_v43  ;;  %v2638_v55 = vcvt.s32.f32 %v1558_v46  ;;  %v2646_v56 = vcvt.s32.f32 %v1566_v47  ;;  %v1563_v57 = vunpack.c.0.s8 %v735_v32 }
 0x20e   : > { %5727 = vmatpush1.bf16.msra.mxu0 %v5726_v48  ;;  %v5728_v58 = vpack.c.bf16 %v2644_v50, %v2636_v49  ;;  %v2635_v59 = vcvt.s32.f32 %v1555_v51  ;;  %v1557_v60 = vunpack.c.2.s8 %v733_v20  ;;  %v1565_v61 = vunpack.c.2.s8 %v735_v32 }
 0x20f   : > { %5995 = vmatpush1.bf16.msra.mxu1 %v5994_v54  ;;  %v5996_v62 = vpack.c.bf16 %v2646_v56, %v2638_v55  ;;  %v2643_v63 = vcvt.s32.f32 %v1563_v57  ;;  %v1572_v0 = vunpack.c.1.s8 %v737_v52  ;;  %v1580_v1 = vunpack.c.1.s8 %v739_v53 }
 0x210   : > { %5729 = vmatprep.subr.bf16.mxu0 %v5728_v58  ;;  %v2637_v2 = vcvt.s32.f32 %v1557_v60  ;;  %v2645_v3 = vcvt.s32.f32 %v1565_v61  ;;  %v1574_v5 = vunpack.c.3.s8 %v737_v52  ;;  %v1582_v6 = vunpack.c.3.s8 %v739_v53 }
 0x211   : > { %5997 = vmatprep.subr.bf16.mxu1 %v5996_v62  ;;  %v5730_v7 = vpack.c.bf16 %v2643_v63, %v2635_v59  ;;  %v2652_v8 = vcvt.s32.f32 %v1572_v0  ;;  %v2660_v9 = vcvt.s32.f32 %v1580_v1  ;;  %v1571_v12 = vunpack.c.0.s8 %v737_v52  ;;  %v749_v62 = vld [vmem:[%s7537_s12 + $0x640] sm:$0xff] }
 0x212   : > { %v5998_v15 = vpack.c.bf16 %v2645_v3, %v2637_v2  ;;  %v2654_v16 = vcvt.s32.f32 %v1574_v5  ;;  %v2662_v19 = vcvt.s32.f32 %v1582_v6  ;;  %v1579_v21 = vunpack.c.0.s8 %v739_v53  ;;  %v751_v3 = vld [vmem:[%s7537_s12 + $0x650] sm:$0xff] }
 0x213   : > { %5731 = vmatpush1.bf16.msra.mxu0 %v5730_v7  ;;  %v5732_v24 = vpack.c.bf16 %v2660_v9, %v2652_v8  ;;  %v2651_v25 = vcvt.s32.f32 %v1571_v12  ;;  %v1573_v26 = vunpack.c.2.s8 %v737_v52  ;;  %v1581_v29 = vunpack.c.2.s8 %v739_v53 }
 0x214   : > { %5999 = vmatpush1.bf16.msra.mxu1 %v5998_v15  ;;  %v6000_v30 = vpack.c.bf16 %v2662_v19, %v2654_v16  ;;  %v2659_v31 = vcvt.s32.f32 %v1579_v21  ;;  %v7750_v20 = vrot.slane %v7744_v13, %v7656_v4  ;;  %v1588_v32 = vunpack.c.1.s8 %v741_v14 }
 0x215   : > { %5733 = vmatprep.subr.bf16.mxu0 %v5732_v24  ;;  %v2653_v18 = vcvt.s32.f32 %v1573_v26  ;;  %v2661_v27 = vcvt.s32.f32 %v1581_v29  ;;  %v1596_v33 = vunpack.c.1.s8 %v743_v22  ;;  %v1590_v34 = vunpack.c.3.s8 %v741_v14 }
 0x216   : > { %6001 = vmatprep.subr.bf16.mxu1 %v6000_v30  ;;  %v5734_v35 = vpack.c.bf16 %v2659_v31, %v2651_v25  ;;  %v7754_v36 = vcombine.high %v7750_v20, %v7750_v20  ;;  %v2668_v37 = vcvt.s32.f32 %v1588_v32  ;;  %v1598_v38 = vunpack.c.3.s8 %v743_v22  ;;  %v753_v30 = vld [vmem:[%s7537_s12 + $0x660] sm:$0xff] }
 0x217   : > { %v6002_v42 = vpack.c.bf16 %v2661_v27, %v2653_v18  ;;  %v2676_v44 = vcvt.s32.f32 %v1596_v33  ;;  %v2670_v43 = vcvt.s32.f32 %v1590_v34  ;;  %v1587_v45 = vunpack.c.0.s8 %v741_v14  ;;  %v755_v33 = vld [vmem:[%s7537_s12 + $0x670] sm:$0xff] }
 0x218   : > { %5735 = vmatpush1.bf16.msra.mxu0 %v5734_v35  ;;  %3600 = vmatprep.mubr.f32.mxu0 %v7754_v36  ;;  %v2678_v46 = vcvt.s32.f32 %v1598_v38  ;;  %v1595_v47 = vunpack.c.0.s8 %v743_v22  ;;  %v1589_v48 = vunpack.c.2.s8 %v741_v14  ;;  %v1597_v49 = vunpack.c.2.s8 %v743_v22 }
 0x219   : > { %6003 = vmatpush1.bf16.msra.mxu1 %v6002_v42  ;;  %v5736_v50 = vpack.c.bf16 %v2676_v44, %v2668_v37  ;;  %3955 = vmatprep.mubr.f32.mxu1 %v7754_v36  ;;  %v2667_v51 = vcvt.s32.f32 %v1587_v45  ;;  %v1604_v52 = vunpack.c.1.s8 %v745_v39  ;;  %v1612_v53 = vunpack.c.1.s8 %v747_v41 }
 0x21a   : > { %v6004_v54 = vpack.c.bf16 %v2678_v46, %v2670_v43  ;;  %v2675_v55 = vcvt.s32.f32 %v1595_v47  ;;  %v2669_v56 = vcvt.s32.f32 %v1589_v48  ;;  %v2677_v57 = vcvt.s32.f32 %v1597_v49 }
 0x21b   : > { %5737 = vmatprep.subr.bf16.mxu0 %v5736_v50  ;;  %3601 = vmatmul.mubr.f32.vlgmr.msra.gmra.mrb[0].mxu0 %v7750_v20  ;;  %v2684_v58 = vcvt.s32.f32 %v1604_v52  ;;  %v2692_v59 = vcvt.s32.f32 %v1612_v53  ;;  %v1606_v60 = vunpack.c.3.s8 %v745_v39  ;;  %v1614_v61 = vunpack.c.3.s8 %v747_v41  ;;  %v757_v52 = vld [vmem:[%s7537_s12 + $0x680] sm:$0xff] }
 0x21c   : > { %6005 = vmatprep.subr.bf16.mxu1 %v6004_v54  ;;  %v5738_v63 = vpack.c.bf16 %v2675_v55, %v2667_v51  ;;  %3956 = vmatmul.mubr.f32.vlgmr.msra.gmra.mrb[0].mxu1 %v7750_v20  ;;  %v6006_v0 = vpack.c.bf16 %v2677_v57, %v2669_v56  ;;  %v1603_v1 = vunpack.c.0.s8 %v745_v39  ;;  %v1611_v2 = vunpack.c.0.s8 %v747_v41  ;;  %v759_v57 = vld [vmem:[%s7537_s12 + $0x690] sm:$0xff] }
 0x21d   : > { %v5740_v5 = vpack.c.bf16 %v2692_v59, %v2684_v58  ;;  %v2686_v6 = vcvt.s32.f32 %v1606_v60  ;;  %v2694_v7 = vcvt.s32.f32 %v1614_v61  ;;  %v1605_v8 = vunpack.c.2.s8 %v745_v39 }
 0x21e   : > { %5739 = vmatpush1.bf16.msra.mxu0 %v5738_v63  ;;  %6007 = vmatpush1.bf16.msra.mxu1 %v6006_v0  ;;  %v2683_v9 = vcvt.s32.f32 %v1603_v1  ;;  %v2691_v12 = vcvt.s32.f32 %v1611_v2  ;;  %v1613_v14 = vunpack.c.2.s8 %v747_v41  ;;  %v1620_v15 = vunpack.c.1.s8 %v749_v62 }
 0x21f   : > { %5741 = vmatprep.subr.bf16.mxu0 %v5740_v5  ;;  %v6008_v16 = vpack.c.bf16 %v2694_v7, %v2686_v6  ;;  %v2685_v19 = vcvt.s32.f32 %v1605_v8  ;;  %v1628_v21 = vunpack.c.1.s8 %v751_v3  ;;  %v1622_v22 = vunpack.c.3.s8 %v749_v62 }
 0x220   : > { %v5742_v24 = vpack.c.bf16 %v2691_v12, %v2683_v9  ;;  %v2693_v25 = vcvt.s32.f32 %v1613_v14  ;;  %v2700_v26 = vcvt.s32.f32 %v1620_v15  ;;  %v1630_v29 = vunpack.c.3.s8 %v751_v3  ;;  %v761_v14 = vld [vmem:[%s7537_s12 + $0x6a0] sm:$0xff] }
 0x221   : > { %6009 = vmatprep.subr.bf16.mxu1 %v6008_v16  ;;  %v2708_v31 = vcvt.s32.f32 %v1628_v21  ;;  %v2702_v32 = vcvt.s32.f32 %v1622_v22  ;;  %v1619_v18 = vunpack.c.0.s8 %v749_v62  ;;  %v1627_v27 = vunpack.c.0.s8 %v751_v3  ;;  %v763_v22 = vld [vmem:[%s7537_s12 + $0x6b0] sm:$0xff] }
 0x222   : > { %5743 = vmatpush1.bf16.msra.mxu0 %v5742_v24  ;;  %v6010_v34 = vpack.c.bf16 %v2693_v25, %v2685_v19  ;;  %v2710_v35 = vcvt.s32.f32 %v1630_v29  ;;  %v1621_v37 = vunpack.c.2.s8 %v749_v62  ;;  %v1629_v38 = vunpack.c.2.s8 %v751_v3 }
 0x223   : > { %v5744_v39 = vpack.c.bf16 %v2708_v31, %v2700_v26  ;;  %v2699_v41 = vcvt.s32.f32 %v1619_v18  ;;  %v2707_v42 = vcvt.s32.f32 %v1627_v27  ;;  %v1636_v44 = vunpack.c.1.s8 %v753_v30 }
 0x224   : > { %6011 = vmatpush1.bf16.msra.mxu1 %v6010_v34  ;;  %v6012_v43 = vpack.c.bf16 %v2710_v35, %v2702_v32  ;;  %v2701_v45 = vcvt.s32.f32 %v1621_v37  ;;  %v2709_v46 = vcvt.s32.f32 %v1629_v38  ;;  %v1644_v47 = vunpack.c.1.s8 %v755_v33 }
 0x225   : > { %5745 = vmatprep.subr.bf16.mxu0 %v5744_v39  ;;  %v5746_v48 = vpack.c.bf16 %v2707_v42, %v2699_v41  ;;  %v2716_v49 = vcvt.s32.f32 %v1636_v44  ;;  %v1638_v50 = vunpack.c.3.s8 %v753_v30  ;;  %v1646_v51 = vunpack.c.3.s8 %v755_v33  ;;  %v765_v42 = vld [vmem:[%s7537_s12 + $0x6c0] sm:$0xff] }
 0x226   : > { %6013 = vmatprep.subr.bf16.mxu1 %v6012_v43  ;;  %v6014_v53 = vpack.c.bf16 %v2709_v46, %v2701_v45  ;;  %v2724_v54 = vcvt.s32.f32 %v1644_v47  ;;  %v1635_v55 = vunpack.c.0.s8 %v753_v30  ;;  %v1643_v56 = vunpack.c.0.s8 %v755_v33  ;;  %v767_v47 = vld [vmem:[%s7537_s12 + $0x6d0] sm:$0xff] }
 0x227   : > { %5747 = vmatpush1.bf16.msra.mxu0 %v5746_v48  ;;  %v2718_v58 = vcvt.s32.f32 %v1638_v50  ;;  %v2726_v59 = vcvt.s32.f32 %v1646_v51  ;;  %v1637_v60 = vunpack.c.2.s8 %v753_v30  ;;  %v1645_v61 = vunpack.c.2.s8 %v755_v33 }
 0x228   : > { %6015 = vmatpush1.bf16.msra.mxu1 %v6014_v53  ;;  %v5748_v62 = vpack.c.bf16 %v2724_v54, %v2716_v49  ;;  %v2715_v63 = vcvt.s32.f32 %v1635_v55  ;;  %v2723_v0 = vcvt.s32.f32 %v1643_v56  ;;  %v1652_v1 = vunpack.c.1.s8 %v757_v52 }
 0x229   : > { %v6016_v2 = vpack.c.bf16 %v2726_v59, %v2718_v58  ;;  %v2717_v3 = vcvt.s32.f32 %v1637_v60  ;;  %v2725_v5 = vcvt.s32.f32 %v1645_v61  ;;  %v1660_v6 = vunpack.c.1.s8 %v759_v57 }
 0x22a   : > { %5749 = vmatprep.subr.bf16.mxu0 %v5748_v62  ;;  %v5750_v7 = vpack.c.bf16 %v2723_v0, %v2715_v63  ;;  %v2732_v8 = vcvt.s32.f32 %v1652_v1  ;;  %v1654_v9 = vunpack.c.3.s8 %v757_v52  ;;  %v1662_v12 = vunpack.c.3.s8 %v759_v57  ;;  %v769_v0 = vld [vmem:[%s7537_s12 + $0x6e0] sm:$0xff] }
 0x22b   : > { %6017 = vmatprep.subr.bf16.mxu1 %v6016_v2  ;;  %v6018_v15 = vpack.c.bf16 %v2725_v5, %v2717_v3  ;;  %v2740_v16 = vcvt.s32.f32 %v1660_v6  ;;  %v1651_v19 = vunpack.c.0.s8 %v757_v52  ;;  %v1659_v21 = vunpack.c.0.s8 %v759_v57  ;;  %v771_v6 = vld [vmem:[%s7537_s12 + $0x6f0] sm:$0xff] }
 0x22c   : > { %5751 = vmatpush1.bf16.msra.mxu0 %v5750_v7  ;;  %v2734_v24 = vcvt.s32.f32 %v1654_v9  ;;  %v2742_v25 = vcvt.s32.f32 %v1662_v12  ;;  %v1653_v26 = vunpack.c.2.s8 %v757_v52  ;;  %v1661_v29 = vunpack.c.2.s8 %v759_v57 }
 0x22d   : > { %6019 = vmatpush1.bf16.msra.mxu1 %v6018_v15  ;;  %v5752_v30 = vpack.c.bf16 %v2740_v16, %v2732_v8  ;;  %v2731_v31 = vcvt.s32.f32 %v1651_v19  ;;  %v2739_v32 = vcvt.s32.f32 %v1659_v21  ;;  %v1668_v18 = vunpack.c.1.s8 %v761_v14 }
 0x22e   : > { %v6020_v27 = vpack.c.bf16 %v2742_v25, %v2734_v24  ;;  %v2733_v33 = vcvt.s32.f32 %v1653_v26  ;;  %v2741_v34 = vcvt.s32.f32 %v1661_v29  ;;  %v1676_v35 = vunpack.c.1.s8 %v763_v22 }
 0x22f   : > { %5753 = vmatprep.subr.bf16.mxu0 %v5752_v30  ;;  %v5754_v37 = vpack.c.bf16 %v2739_v32, %v2731_v31  ;;  %v2748_v38 = vcvt.s32.f32 %v1668_v18  ;;  %v1670_v39 = vunpack.c.3.s8 %v761_v14  ;;  %v1678_v41 = vunpack.c.3.s8 %v763_v22  ;;  %v773_v32 = vld [vmem:[%s7537_s12 + $0x700] sm:$0xff] }
 0x230   : > { %6021 = vmatprep.subr.bf16.mxu1 %v6020_v27  ;;  %v6022_v44 = vpack.c.bf16 %v2741_v34, %v2733_v33  ;;  %v2756_v43 = vcvt.s32.f32 %v1676_v35  ;;  %v1667_v45 = vunpack.c.0.s8 %v761_v14  ;;  %v1675_v46 = vunpack.c.0.s8 %v763_v22  ;;  %v775_v35 = vld [vmem:[%s7537_s12 + $0x710] sm:$0xff] }
 0x231   : > { %5755 = vmatpush1.bf16.msra.mxu0 %v5754_v37  ;;  %v2750_v48 = vcvt.s32.f32 %v1670_v39  ;;  %v2758_v49 = vcvt.s32.f32 %v1678_v41  ;;  %v1669_v50 = vunpack.c.2.s8 %v761_v14  ;;  %v1677_v51 = vunpack.c.2.s8 %v763_v22 }
 0x232   : > { %6023 = vmatpush1.bf16.msra.mxu1 %v6022_v44  ;;  %v5756_v52 = vpack.c.bf16 %v2756_v43, %v2748_v38  ;;  %v2747_v53 = vcvt.s32.f32 %v1667_v45  ;;  %v2755_v54 = vcvt.s32.f32 %v1675_v46  ;;  %v1684_v55 = vunpack.c.1.s8 %v765_v42 }
 0x233   : > { %v6024_v56 = vpack.c.bf16 %v2758_v49, %v2750_v48  ;;  %v2749_v57 = vcvt.s32.f32 %v1669_v50  ;;  %v2757_v58 = vcvt.s32.f32 %v1677_v51  ;;  %v1692_v59 = vunpack.c.1.s8 %v767_v47 }
 0x234   : > { %5757 = vmatprep.subr.bf16.mxu0 %v5756_v52  ;;  %v5758_v60 = vpack.c.bf16 %v2755_v54, %v2747_v53  ;;  %v2764_v61 = vcvt.s32.f32 %v1684_v55  ;;  %v1686_v62 = vunpack.c.3.s8 %v765_v42  ;;  %v1694_v63 = vunpack.c.3.s8 %v767_v47  ;;  %v777_v54 = vld [vmem:[%s7537_s12 + $0x720] sm:$0xff] }
 0x235   : > { %6025 = vmatprep.subr.bf16.mxu1 %v6024_v56  ;;  %v6026_v1 = vpack.c.bf16 %v2757_v58, %v2749_v57  ;;  %v2772_v2 = vcvt.s32.f32 %v1692_v59  ;;  %v1683_v3 = vunpack.c.0.s8 %v765_v42  ;;  %v1691_v5 = vunpack.c.0.s8 %v767_v47  ;;  %v779_v59 = vld [vmem:[%s7537_s12 + $0x730] sm:$0xff] }
 0x236   : > { %5759 = vmatpush1.bf16.msra.mxu0 %v5758_v60  ;;  %v2766_v7 = vcvt.s32.f32 %v1686_v62  ;;  %v2774_v8 = vcvt.s32.f32 %v1694_v63  ;;  %v1685_v9 = vunpack.c.2.s8 %v765_v42  ;;  %v1693_v12 = vunpack.c.2.s8 %v767_v47 }
 0x237   : > { %6027 = vmatpush1.bf16.msra.mxu1 %v6026_v1  ;;  %v5760_v14 = vpack.c.bf16 %v2772_v2, %v2764_v61  ;;  %v2763_v15 = vcvt.s32.f32 %v1683_v3  ;;  %v2771_v16 = vcvt.s32.f32 %v1691_v5  ;;  %v1700_v19 = vunpack.c.1.s8 %v769_v0 }
 0x238   : > { %v6028_v21 = vpack.c.bf16 %v2774_v8, %v2766_v7  ;;  %v2765_v22 = vcvt.s32.f32 %v1685_v9  ;;  %v2773_v24 = vcvt.s32.f32 %v1693_v12  ;;  %v1708_v25 = vunpack.c.1.s8 %v771_v6 }
 0x239   : > { %5761 = vmatprep.subr.bf16.mxu0 %v5760_v14  ;;  %v5762_v26 = vpack.c.bf16 %v2771_v16, %v2763_v15  ;;  %v2780_v29 = vcvt.s32.f32 %v1700_v19  ;;  %v1702_v30 = vunpack.c.3.s8 %v769_v0  ;;  %v1710_v31 = vunpack.c.3.s8 %v771_v6  ;;  %v781_v16 = vld [vmem:[%s7537_s12 + $0x740] sm:$0xff] }
 0x23a   : > { %6029 = vmatprep.subr.bf16.mxu1 %v6028_v21  ;;  %v6030_v18 = vpack.c.bf16 %v2773_v24, %v2765_v22  ;;  %v2788_v27 = vcvt.s32.f32 %v1708_v25  ;;  %v1699_v33 = vunpack.c.0.s8 %v769_v0  ;;  %v1707_v34 = vunpack.c.0.s8 %v771_v6  ;;  %v783_v25 = vld [vmem:[%s7537_s12 + $0x750] sm:$0xff] }
 0x23b   : > { %5763 = vmatpush1.bf16.msra.mxu0 %v5762_v26  ;;  %v2782_v37 = vcvt.s32.f32 %v1702_v30  ;;  %v2790_v38 = vcvt.s32.f32 %v1710_v31  ;;  %v1701_v39 = vunpack.c.2.s8 %v769_v0  ;;  %v1709_v41 = vunpack.c.2.s8 %v771_v6 }
 0x23c   : > { %6031 = vmatpush1.bf16.msra.mxu1 %v6030_v18  ;;  %v5764_v42 = vpack.c.bf16 %v2788_v27, %v2780_v29  ;;  %v2779_v44 = vcvt.s32.f32 %v1699_v33  ;;  %v2787_v43 = vcvt.s32.f32 %v1707_v34  ;;  %v1716_v45 = vunpack.c.1.s8 %v773_v32 }
 0x23d   : > { %v6032_v46 = vpack.c.bf16 %v2790_v38, %v2782_v37  ;;  %v2781_v47 = vcvt.s32.f32 %v1701_v39  ;;  %v2789_v48 = vcvt.s32.f32 %v1709_v41  ;;  %v1724_v49 = vunpack.c.1.s8 %v775_v35 }
 0x23e   : > { %5765 = vmatprep.subr.bf16.mxu0 %v5764_v42  ;;  %v5766_v50 = vpack.c.bf16 %v2787_v43, %v2779_v44  ;;  %v2796_v51 = vcvt.s32.f32 %v1716_v45  ;;  %v1718_v52 = vunpack.c.3.s8 %v773_v32  ;;  %v1726_v53 = vunpack.c.3.s8 %v775_v35  ;;  %v785_v43 = vld [vmem:[%s7537_s12 + $0x760] sm:$0xff] }
 0x23f   : > { %6033 = vmatprep.subr.bf16.mxu1 %v6032_v46  ;;  %v6034_v55 = vpack.c.bf16 %v2789_v48, %v2781_v47  ;;  %v2804_v56 = vcvt.s32.f32 %v1724_v49  ;;  %v1715_v57 = vunpack.c.0.s8 %v773_v32  ;;  %v1723_v58 = vunpack.c.0.s8 %v775_v35  ;;  %v787_v49 = vld [vmem:[%s7537_s12 + $0x770] sm:$0xff] }
 0x240   : > { %5767 = vmatpush1.bf16.msra.mxu0 %v5766_v50  ;;  %v2798_v60 = vcvt.s32.f32 %v1718_v52  ;;  %v2806_v61 = vcvt.s32.f32 %v1726_v53  ;;  %v1717_v62 = vunpack.c.2.s8 %v773_v32  ;;  %v1725_v63 = vunpack.c.2.s8 %v775_v35 }
 0x241   : > { %6035 = vmatpush1.bf16.msra.mxu1 %v6034_v55  ;;  %v5768_v0 = vpack.c.bf16 %v2804_v56, %v2796_v51  ;;  %v2795_v1 = vcvt.s32.f32 %v1715_v57  ;;  %v2803_v2 = vcvt.s32.f32 %v1723_v58  ;;  %v1732_v3 = vunpack.c.1.s8 %v777_v54 }
 0x242   : > { %v6036_v5 = vpack.c.bf16 %v2806_v61, %v2798_v60  ;;  %v2797_v6 = vcvt.s32.f32 %v1717_v62  ;;  %v2805_v7 = vcvt.s32.f32 %v1725_v63  ;;  %v1740_v8 = vunpack.c.1.s8 %v779_v59 }
 0x243   : > { %5769 = vmatprep.subr.bf16.mxu0 %v5768_v0  ;;  %v5770_v9 = vpack.c.bf16 %v2803_v2, %v2795_v1  ;;  %v2812_v12 = vcvt.s32.f32 %v1732_v3  ;;  %v1734_v14 = vunpack.c.3.s8 %v777_v54  ;;  %v1742_v15 = vunpack.c.3.s8 %v779_v59  ;;  %v789_v2 = vld [vmem:[%s7537_s12 + $0x780] sm:$0xff] }
 0x244   : > { %6037 = vmatprep.subr.bf16.mxu1 %v6036_v5  ;;  %v6038_v19 = vpack.c.bf16 %v2805_v7, %v2797_v6  ;;  %v2820_v21 = vcvt.s32.f32 %v1740_v8  ;;  %v1731_v22 = vunpack.c.0.s8 %v777_v54  ;;  %v1739_v24 = vunpack.c.0.s8 %v779_v59  ;;  %v791_v8 = vld [vmem:[%s7537_s12 + $0x790] sm:$0xff] }
 0x245   : > { %5771 = vmatpush1.bf16.msra.mxu0 %v5770_v9  ;;  %v2814_v26 = vcvt.s32.f32 %v1734_v14  ;;  %v2822_v29 = vcvt.s32.f32 %v1742_v15  ;;  %v1733_v30 = vunpack.c.2.s8 %v777_v54  ;;  %v1741_v31 = vunpack.c.2.s8 %v779_v59 }
 0x246   : > { %6039 = vmatpush1.bf16.msra.mxu1 %v6038_v19  ;;  %v5772_v32 = vpack.c.bf16 %v2820_v21, %v2812_v12  ;;  %v2811_v18 = vcvt.s32.f32 %v1731_v22  ;;  %v2819_v27 = vcvt.s32.f32 %v1739_v24  ;;  %v1748_v33 = vunpack.c.1.s8 %v781_v16 }
 0x247   : > { %v6040_v34 = vpack.c.bf16 %v2822_v29, %v2814_v26  ;;  %v2813_v35 = vcvt.s32.f32 %v1733_v30  ;;  %v2821_v37 = vcvt.s32.f32 %v1741_v31  ;;  %v1756_v38 = vunpack.c.1.s8 %v783_v25 }
 0x248   : > { %5773 = vmatprep.subr.bf16.mxu0 %v5772_v32  ;;  %v5774_v39 = vpack.c.bf16 %v2819_v27, %v2811_v18  ;;  %v2828_v41 = vcvt.s32.f32 %v1748_v33  ;;  %v1750_v42 = vunpack.c.3.s8 %v781_v16  ;;  %v1758_v44 = vunpack.c.3.s8 %v783_v25  ;;  %v793_v27 = vld [vmem:[%s7537_s12 + $0x7a0] sm:$0xff] }
 0x249   : > { %6041 = vmatprep.subr.bf16.mxu1 %v6040_v34  ;;  %v6042_v45 = vpack.c.bf16 %v2821_v37, %v2813_v35  ;;  %v2836_v46 = vcvt.s32.f32 %v1756_v38  ;;  %v1747_v47 = vunpack.c.0.s8 %v781_v16  ;;  %v1755_v48 = vunpack.c.0.s8 %v783_v25  ;;  %v795_v38 = vld [vmem:[%s7537_s12 + $0x7b0] sm:$0xff] }
 0x24a   : > { %5775 = vmatpush1.bf16.msra.mxu0 %v5774_v39  ;;  %v2830_v50 = vcvt.s32.f32 %v1750_v42  ;;  %v2838_v51 = vcvt.s32.f32 %v1758_v44  ;;  %v1749_v52 = vunpack.c.2.s8 %v781_v16  ;;  %v1757_v53 = vunpack.c.2.s8 %v783_v25 }
 0x24b   : > { %6043 = vmatpush1.bf16.msra.mxu1 %v6042_v45  ;;  %v5776_v54 = vpack.c.bf16 %v2836_v46, %v2828_v41  ;;  %v2827_v55 = vcvt.s32.f32 %v1747_v47  ;;  %v2835_v56 = vcvt.s32.f32 %v1755_v48  ;;  %v1764_v57 = vunpack.c.1.s8 %v785_v43 }
 0x24c   : > { %v6044_v58 = vpack.c.bf16 %v2838_v51, %v2830_v50  ;;  %v2829_v59 = vcvt.s32.f32 %v1749_v52  ;;  %v2837_v60 = vcvt.s32.f32 %v1757_v53  ;;  %v1772_v61 = vunpack.c.1.s8 %v787_v49 }
 0x24d   : > { %5777 = vmatprep.subr.bf16.mxu0 %v5776_v54  ;;  %v5778_v62 = vpack.c.bf16 %v2835_v56, %v2827_v55  ;;  %v2844_v63 = vcvt.s32.f32 %v1764_v57  ;;  %v1766_v0 = vunpack.c.3.s8 %v785_v43  ;;  %v1774_v1 = vunpack.c.3.s8 %v787_v49  ;;  %v797_v56 = vld [vmem:[%s7537_s12 + $0x7c0] sm:$0xff] }
 0x24e   : > { %6045 = vmatprep.subr.bf16.mxu1 %v6044_v58  ;;  %v6046_v3 = vpack.c.bf16 %v2837_v60, %v2829_v59  ;;  %v2852_v5 = vcvt.s32.f32 %v1772_v61  ;;  %v1763_v6 = vunpack.c.0.s8 %v785_v43  ;;  %v1771_v7 = vunpack.c.0.s8 %v787_v49  ;;  %v799_v61 = vld [vmem:[%s7537_s12 + $0x7d0] sm:$0xff] }
 0x24f   : > { %5779 = vmatpush1.bf16.msra.mxu0 %v5778_v62  ;;  %v2846_v9 = vcvt.s32.f32 %v1766_v0  ;;  %v2854_v12 = vcvt.s32.f32 %v1774_v1  ;;  %v1765_v14 = vunpack.c.2.s8 %v785_v43  ;;  %v1773_v15 = vunpack.c.2.s8 %v787_v49 }
 0x250   : > { %6047 = vmatpush1.bf16.msra.mxu1 %v6046_v3  ;;  %v5780_v16 = vpack.c.bf16 %v2852_v5, %v2844_v63  ;;  %v2843_v19 = vcvt.s32.f32 %v1763_v6  ;;  %v2851_v21 = vcvt.s32.f32 %v1771_v7  ;;  %v1780_v22 = vunpack.c.1.s8 %v789_v2 }
 0x251   : > { %v6048_v24 = vpack.c.bf16 %v2854_v12, %v2846_v9  ;;  %v2845_v25 = vcvt.s32.f32 %v1765_v14  ;;  %v2853_v26 = vcvt.s32.f32 %v1773_v15  ;;  %v1788_v29 = vunpack.c.1.s8 %v791_v8 }
 0x252   : > { %5781 = vmatprep.subr.bf16.mxu0 %v5780_v16  ;;  %v5782_v30 = vpack.c.bf16 %v2851_v21, %v2843_v19  ;;  %v2860_v31 = vcvt.s32.f32 %v1780_v22  ;;  %v1782_v32 = vunpack.c.3.s8 %v789_v2  ;;  %v1790_v18 = vunpack.c.3.s8 %v791_v8  ;;  %v801_v21 = vld [vmem:[%s7537_s12 + $0x7e0] sm:$0xff] }
 0x253   : > { %6049 = vmatprep.subr.bf16.mxu1 %v6048_v24  ;;  %v6050_v33 = vpack.c.bf16 %v2853_v26, %v2845_v25  ;;  %v2868_v34 = vcvt.s32.f32 %v1788_v29  ;;  %v1779_v35 = vunpack.c.0.s8 %v789_v2  ;;  %v1787_v37 = vunpack.c.0.s8 %v791_v8  ;;  %v803_v29 = vld [vmem:[%s7537_s12 + $0x7f0] sm:$0xff] }
 0x254   : > { %5783 = vmatpush1.bf16.msra.mxu0 %v5782_v30  ;;  %v2862_v39 = vcvt.s32.f32 %v1782_v32  ;;  %v2870_v41 = vcvt.s32.f32 %v1790_v18  ;;  %v1781_v42 = vunpack.c.2.s8 %v789_v2  ;;  %v1789_v44 = vunpack.c.2.s8 %v791_v8 }
 0x255   : > { %6051 = vmatpush1.bf16.msra.mxu1 %v6050_v33  ;;  %v5784_v43 = vpack.c.bf16 %v2868_v34, %v2860_v31  ;;  %v2859_v45 = vcvt.s32.f32 %v1779_v35  ;;  %v2867_v46 = vcvt.s32.f32 %v1787_v37  ;;  %v1796_v47 = vunpack.c.1.s8 %v793_v27 }
 0x256   : > { %v6052_v48 = vpack.c.bf16 %v2870_v41, %v2862_v39  ;;  %v2861_v49 = vcvt.s32.f32 %v1781_v42  ;;  %v2869_v50 = vcvt.s32.f32 %v1789_v44  ;;  %v1804_v51 = vunpack.c.1.s8 %v795_v38 }
 0x257   : > { %5785 = vmatprep.subr.bf16.mxu0 %v5784_v43  ;;  %v5786_v52 = vpack.c.bf16 %v2867_v46, %v2859_v45  ;;  %v2876_v53 = vcvt.s32.f32 %v1796_v47  ;;  %v1798_v54 = vunpack.c.3.s8 %v793_v27  ;;  %v1806_v55 = vunpack.c.3.s8 %v795_v38 }
 0x258   : > { %6053 = vmatprep.subr.bf16.mxu1 %v6052_v48  ;;  %v6054_v57 = vpack.c.bf16 %v2869_v50, %v2861_v49  ;;  %v2884_v58 = vcvt.s32.f32 %v1804_v51  ;;  %v1795_v59 = vunpack.c.0.s8 %v793_v27  ;;  %v1803_v60 = vunpack.c.0.s8 %v795_v38  ;;  %v805_v50 = vld [vmem:[%s7537_s12 + $0x800] sm:$0xff] }
 0x259   : > { %5787 = vmatpush1.bf16.msra.mxu0 %v5786_v52  ;;  %v2878_v62 = vcvt.s32.f32 %v1798_v54  ;;  %v2886_v63 = vcvt.s32.f32 %v1806_v55  ;;  %v1797_v0 = vunpack.c.2.s8 %v793_v27  ;;  %v1805_v1 = vunpack.c.2.s8 %v795_v38  ;;  %v807_v55 = vld [vmem:[%s7537_s12 + $0x810] sm:$0xff] }
 0x25a   : > { %6055 = vmatpush1.bf16.msra.mxu1 %v6054_v57  ;;  %v5788_v2 = vpack.c.bf16 %v2884_v58, %v2876_v53  ;;  %v2875_v3 = vcvt.s32.f32 %v1795_v59  ;;  %v2883_v5 = vcvt.s32.f32 %v1803_v60  ;;  %v1812_v6 = vunpack.c.1.s8 %v797_v56 }
 0x25b   : > { %v6056_v7 = vpack.c.bf16 %v2886_v63, %v2878_v62  ;;  %v2877_v8 = vcvt.s32.f32 %v1797_v0  ;;  %v2885_v9 = vcvt.s32.f32 %v1805_v1  ;;  %v1820_v12 = vunpack.c.1.s8 %v799_v61 }
 0x25c   : > { %5789 = vmatprep.subr.bf16.mxu0 %v5788_v2  ;;  %v5790_v14 = vpack.c.bf16 %v2883_v5, %v2875_v3  ;;  %v2892_v15 = vcvt.s32.f32 %v1812_v6  ;;  %v1814_v16 = vunpack.c.3.s8 %v797_v56  ;;  %v1822_v19 = vunpack.c.3.s8 %v799_v61 }
 0x25d   : > { %6057 = vmatprep.subr.bf16.mxu1 %v6056_v7  ;;  %v6058_v22 = vpack.c.bf16 %v2885_v9, %v2877_v8  ;;  %v2900_v24 = vcvt.s32.f32 %v1820_v12  ;;  %v1811_v25 = vunpack.c.0.s8 %v797_v56  ;;  %v1819_v26 = vunpack.c.0.s8 %v799_v61  ;;  %v809_v9 = vld [vmem:[%s7537_s12 + $0x820] sm:$0xff]  ;;  %v811_v12 = vld [vmem:[%s7537_s12 + $0x830] sm:$0xff] }
 0x25e   : > { %5791 = vmatpush1.bf16.msra.mxu0 %v5790_v14  ;;  %v2894_v30 = vcvt.s32.f32 %v1814_v16  ;;  %v2902_v31 = vcvt.s32.f32 %v1822_v19  ;;  %v1813_v32 = vunpack.c.2.s8 %v797_v56  ;;  %v1821_v18 = vunpack.c.2.s8 %v799_v61 }
 0x25f   : > { %6059 = vmatpush1.bf16.msra.mxu1 %v6058_v22  ;;  %v5792_v27 = vpack.c.bf16 %v2900_v24, %v2892_v15  ;;  %v2891_v33 = vcvt.s32.f32 %v1811_v25  ;;  %v2899_v34 = vcvt.s32.f32 %v1819_v26  ;;  %v1828_v35 = vunpack.c.1.s8 %v801_v21 }
 0x260   : > { %v6060_v37 = vpack.c.bf16 %v2902_v31, %v2894_v30  ;;  %v2893_v38 = vcvt.s32.f32 %v1813_v32  ;;  %v2901_v39 = vcvt.s32.f32 %v1821_v18  ;;  %v1836_v41 = vunpack.c.1.s8 %v803_v29 }
 0x261   : > { %5793 = vmatprep.subr.bf16.mxu0 %v5792_v27  ;;  %v5794_v42 = vpack.c.bf16 %v2899_v34, %v2891_v33  ;;  %v2908_v44 = vcvt.s32.f32 %v1828_v35  ;;  %v1830_v43 = vunpack.c.3.s8 %v801_v21  ;;  %v1838_v45 = vunpack.c.3.s8 %v803_v29 }
 0x262   : > { %6061 = vmatprep.subr.bf16.mxu1 %v6060_v37  ;;  %v6062_v46 = vpack.c.bf16 %v2901_v39, %v2893_v38  ;;  %v2916_v47 = vcvt.s32.f32 %v1836_v41  ;;  %v1827_v48 = vunpack.c.0.s8 %v801_v21  ;;  %v1835_v49 = vunpack.c.0.s8 %v803_v29  ;;  %v813_v37 = vld [vmem:[%s7537_s12 + $0x840] sm:$0xff]  ;;  %v815_v38 = vld [vmem:[%s7537_s12 + $0x850] sm:$0xff] }
 0x263   : > { %5795 = vmatpush1.bf16.msra.mxu0 %v5794_v42  ;;  %v2910_v51 = vcvt.s32.f32 %v1830_v43  ;;  %v2918_v52 = vcvt.s32.f32 %v1838_v45  ;;  %v1829_v53 = vunpack.c.2.s8 %v801_v21  ;;  %v1837_v54 = vunpack.c.2.s8 %v803_v29 }
 0x264   : > { %6063 = vmatpush1.bf16.msra.mxu1 %v6062_v46  ;;  %v5796_v56 = vpack.c.bf16 %v2916_v47, %v2908_v44  ;;  %v2907_v57 = vcvt.s32.f32 %v1827_v48  ;;  %v2915_v58 = vcvt.s32.f32 %v1835_v49  ;;  %v3359_v59 = vcombine.high %v7744_v13, %v7744_v13 }
 0x265   : > { %v6064_v60 = vpack.c.bf16 %v2918_v52, %v2910_v51  ;;  %v2909_v61 = vcvt.s32.f32 %v1829_v53  ;;  %v2917_v62 = vcvt.s32.f32 %v1837_v54  ;;  %v1844_v63 = vunpack.c.1.s8 %v805_v50 }
 0x266   : > { %5797 = vmatprep.subr.bf16.mxu0 %v5796_v56  ;;  %v5798_v0 = vpack.c.bf16 %v2915_v58, %v2907_v57  ;;  %v7795_v1 = vrot.slane %v3359_v59, %v7656_v4  ;;  %v1852_v2 = vunpack.c.1.s8 %v807_v55  ;;  %v1846_v3 = vunpack.c.3.s8 %v805_v50 }
 0x267   : > { %6065 = vmatprep.subr.bf16.mxu1 %v6064_v60  ;;  %v6066_v5 = vpack.c.bf16 %v2917_v62, %v2909_v61  ;;  %v2924_v6 = vcvt.s32.f32 %v1844_v63  ;;  %v1854_v7 = vunpack.c.3.s8 %v807_v55  ;;  %v1843_v8 = vunpack.c.0.s8 %v805_v50  ;;  %v817_v60 = vld [vmem:[%s7537_s12 + $0x860] sm:$0xff] }
 0x268   : > { %5799 = vmatpush1.bf16.msra.mxu0 %v5798_v0  ;;  %v7801_v13 = vcombine.high %v7795_v1, %v7795_v1  ;;  %v2932_v14 = vcvt.s32.f32 %v1852_v2  ;;  %v2926_v15 = vcvt.s32.f32 %v1846_v3  ;;  %v1851_v16 = vunpack.c.0.s8 %v807_v55 }
 0x269   : > { %6067 = vmatpush1.bf16.msra.mxu1 %v6066_v5  ;;  %v2934_v4 = vcvt.s32.f32 %v1854_v7  ;;  %v2923_v19 = vcvt.s32.f32 %v1843_v8  ;;  %v1845_v21 = vunpack.c.2.s8 %v805_v50  ;;  %v1853_v22 = vunpack.c.2.s8 %v807_v55 }
 0x26a   : > { %3671 = vmatprep.mubr.f32.mxu0 %v7801_v13  ;;  %v5800_v24 = vpack.c.bf16 %v2932_v14, %v2924_v6  ;;  %4026 = vmatprep.mubr.f32.mxu1 %v7801_v13  ;;  %v2931_v25 = vcvt.s32.f32 %v1851_v16  ;;  %v1860_v26 = vunpack.c.1.s8 %v809_v9  ;;  %v1868_v29 = vunpack.c.1.s8 %v811_v12  ;;  %v550_v14 = vld [vmem:[%s7537_s12 + $0x8] sm:$0xff] }
 0x26b   : > { %v6068_v30 = vpack.c.bf16 %v2934_v4, %v2926_v15  ;;  %3672 = vmatmul.mubr.f32.vlgmr.msra.gmra.mrb[0].mxu0 %v7795_v1  ;;  %v2925_v31 = vcvt.s32.f32 %v1845_v21  ;;  %v2933_v32 = vcvt.s32.f32 %v1853_v22  ;;  %v1862_v18 = vunpack.c.3.s8 %v809_v9  ;;  %v552_v21 = vld [vmem:[%s7537_s12 + $0x18] sm:$0xff] }
 0x26c   : > { %5801 = vmatprep.subr.bf16.mxu0 %v5800_v24  ;;  %v5802_v27 = vpack.c.bf16 %v2931_v25, %v2923_v19  ;;  %4027 = vmatmul.mubr.f32.vlgmr.msra.gmra.mrb[0].mxu1 %v7795_v1  ;;  %v2940_v33 = vcvt.s32.f32 %v1860_v26  ;;  %v2948_v34 = vcvt.s32.f32 %v1868_v29  ;;  %v1870_v35 = vunpack.c.3.s8 %v811_v12 }
 0x26d   : > { %6069 = vmatprep.subr.bf16.mxu1 %v6068_v30  ;;  %v6070_v39 = vpack.c.bf16 %v2933_v32, %v2925_v31  ;;  %v2942_v41 = vcvt.s32.f32 %v1862_v18  ;;  %v1859_v42 = vunpack.c.0.s8 %v809_v9  ;;  %v1867_v44 = vunpack.c.0.s8 %v811_v12  ;;  %3742 = vmatprep.mubr.f32.mxu0 %v7166_v10 }
 0x26e   : > { %5803 = vmatpush1.bf16.msra.mxu0 %v5802_v27  ;;  %v5804_v43 = vpack.c.bf16 %v2948_v34, %v2940_v33  ;;  %v2950_v45 = vcvt.s32.f32 %v1870_v35  ;;  %v1861_v46 = vunpack.c.2.s8 %v809_v9  ;;  %v1869_v47 = vunpack.c.2.s8 %v811_v12  ;;  %4097 = vmatprep.mubr.f32.mxu1 %v7166_v10  ;;  %v554_v34 = vld [vmem:[%s7537_s12 + $0x28] sm:$0xff] }
 0x26f   : > { %6071 = vmatpush1.bf16.msra.mxu1 %v6070_v39  ;;  %v2939_v48 = vcvt.s32.f32 %v1859_v42  ;;  %v2947_v49 = vcvt.s32.f32 %v1867_v44  ;;  %v1876_v50 = vunpack.c.1.s8 %v813_v37  ;;  %v1884_v51 = vunpack.c.1.s8 %v815_v38  ;;  %v5497_v42 = vld.sshfl [vmem:[#allocation2 + $0x10] sm:$0x3 pattern:$0x76325410] }
 0x270   : > { %5805 = vmatprep.subr.bf16.mxu0 %v5804_v43  ;;  %v6072_v52 = vpack.c.bf16 %v2950_v45, %v2942_v41  ;;  %v2941_v53 = vcvt.s32.f32 %v1861_v46  ;;  %v2949_v54 = vcvt.s32.f32 %v1869_v47  ;;  %v1878_v55 = vunpack.c.3.s8 %v813_v37  ;;  %v556_v41 = vld [vmem:[%s7537_s12 + $0x38] sm:$0xff] }
 0x271   : > { %v5806_v56 = vpack.c.bf16 %v2947_v49, %v2939_v48  ;;  %v2956_v57 = vcvt.s32.f32 %v1876_v50  ;;  %v2964_v58 = vcvt.s32.f32 %v1884_v51  ;;  %v1886_v59 = vunpack.c.3.s8 %v815_v38 }
 0x272   : > { %6073 = vmatprep.subr.bf16.mxu1 %v6072_v52  ;;  %v6074_v61 = vpack.c.bf16 %v2949_v54, %v2941_v53  ;;  %v2958_v62 = vcvt.s32.f32 %v1878_v55  ;;  %v1875_v63 = vunpack.c.0.s8 %v813_v37  ;;  %v1883_v0 = vunpack.c.0.s8 %v815_v38 }
 0x273   : > { %5807 = vmatpush1.bf16.msra.mxu0 %v5806_v56  ;;  %v5808_v2 = vpack.c.bf16 %v2964_v58, %v2956_v57  ;;  %v2966_v3 = vcvt.s32.f32 %v1886_v59  ;;  %v1877_v5 = vunpack.c.2.s8 %v813_v37  ;;  %v1885_v6 = vunpack.c.2.s8 %v815_v38  ;;  %v558_v59 = vld [vmem:[%s7537_s12 + $0x48] sm:$0xff] }
 0x274   : > { %6075 = vmatpush1.bf16.msra.mxu1 %v6074_v61  ;;  %v2955_v7 = vcvt.s32.f32 %v1875_v63  ;;  %v2963_v8 = vcvt.s32.f32 %v1883_v0  ;;  %v1892_v9 = vunpack.c.1.s8 %v817_v60  ;;  %v1894_v12 = vunpack.c.3.s8 %v817_v60  ;;  %v560_v0 = vld [vmem:[%s7537_s12 + $0x58] sm:$0xff] }
 0x275   : > { %5809 = vmatprep.subr.bf16.mxu0 %v5808_v2  ;;  %v6076_v15 = vpack.c.bf16 %v2966_v3, %v2958_v62  ;;  %v2957_v16 = vcvt.s32.f32 %v1877_v5  ;;  %v2965_v4 = vcvt.s32.f32 %v1885_v6  ;;  %v1891_v19 = vunpack.c.0.s8 %v817_v60 }
 0x276   : > { %v5810_v22 = vpack.c.bf16 %v2963_v8, %v2955_v7  ;;  %v2972_v24 = vcvt.s32.f32 %v1892_v9  ;;  %v2974_v25 = vcvt.s32.f32 %v1894_v12  ;;  %v1893_v26 = vunpack.c.2.s8 %v817_v60 }
 0x277   : > { %6077 = vmatprep.subr.bf16.mxu1 %v6076_v15  ;;  %v6078_v29 = vpack.c.bf16 %v2965_v4, %v2957_v16  ;;  %v2971_v30 = vcvt.s32.f32 %v1891_v19  ;;  %v824_v31 = vunpack.c.1.s8 %v550_v14  ;;  %v832_v18 = vunpack.c.1.s8 %v552_v21 }
 0x278   : > { %5811 = vmatpush1.bf16.msra.mxu0 %v5810_v22  ;;  %v2973_v32 = vcvt.s32.f32 %v1893_v26  ;;  %v826_v27 = vunpack.c.3.s8 %v550_v14  ;;  %v834_v33 = vunpack.c.3.s8 %v552_v21  ;;  %v823_v37 = vunpack.c.0.s8 %v550_v14 }
 0x279   : > { %6079 = vmatpush1.bf16.msra.mxu1 %v6078_v29  ;;  %3690 = vmatprep.subr.mxu0 %v2972_v24  ;;  %v1904_v35 = vcvt.s32.f32 %v824_v31  ;;  %v831_v38 = vunpack.c.0.s8 %v552_v21  ;;  %v825_v39 = vunpack.c.2.s8 %v550_v14  ;;  %v1912_v44 = vcvt.s32.f32 %v832_v18 }
 0x27a   : > { %4045 = vmatprep.subr.mxu1 %v2974_v25  ;;  %v1906_v43 = vcvt.s32.f32 %v826_v27  ;;  %v1914_v45 = vcvt.s32.f32 %v834_v33  ;;  %v833_v46 = vunpack.c.2.s8 %v552_v21  ;;  %v1903_v47 = vcvt.s32.f32 %v823_v37  ;;  %v562_v25 = vld [vmem:[%s7537_s12 + $0x68] sm:$0xff] }
 0x27b   : > { %v1911_v48 = vcvt.s32.f32 %v831_v38  ;;  %v1905_v49 = vcvt.s32.f32 %v825_v39  ;;  %v840_v50 = vunpack.c.1.s8 %v554_v34  ;;  %v6080_v51 = vpack.c.bf16 %v1912_v44, %v1904_v35 }
 0x27c   : > { %3691 = vmatpush1.msra.mxu0 %v2971_v30  ;;  %v6348_v52 = vpack.c.bf16 %v1914_v45, %v1906_v43  ;;  %v1913_v53 = vcvt.s32.f32 %v833_v46  ;;  %v848_v54 = vunpack.c.1.s8 %v556_v41  ;;  %v842_v57 = vunpack.c.3.s8 %v554_v34 }
 0x27d   : > { %4046 = vmatpush1.msra.mxu1 %v2973_v32  ;;  %5498 = vmatmul.mubr.msk.f32.vlgmr.msra.gmra.mrb[0].mxu0 %vm3391_vm2, %v5497_v42  ;;  %v6082_v55 = vpack.c.bf16 %v1911_v48, %v1903_v47  ;;  %v1920_v56 = vcvt.s32.f32 %v840_v50  ;;  %v850_v58 = vunpack.c.3.s8 %v556_v41  ;;  %v839_v62 = vunpack.c.0.s8 %v554_v34  ;;  %v564_v32 = vld [vmem:[%s7537_s12 + $0x78] sm:$0xff]  ;;  %v566_v48 = vld [vmem:[%s7537_s12 + $0x88] sm:$0xff] }
 0x27e   : > { %5499 = vmatmul.mubr.msk.f32.vlgmr.msra.gmra.mrb[0].mxu1 %vm3391_vm2, %v5497_v42  ;;  %6081 = vmatprep.subr.bf16.mxu0 %v6080_v51  ;;  %v6350_v60 = vpack.c.bf16 %v1913_v53, %v1905_v49  ;;  %v1928_v61 = vcvt.s32.f32 %v848_v54  ;;  %v847_v63 = vunpack.c.0.s8 %v556_v41  ;;  %v1922_v2 = vcvt.s32.f32 %v842_v57  ;;  %v568_v53 = vld [vmem:[%s7537_s12 + $0x98] sm:$0xff] }
 0x27f   : > { %6349 = vmatprep.subr.bf16.mxu1 %v6348_v52  ;;  %6083 = vmatpush1.bf16.msra.mxu0 %v6082_v55  ;;  %v1930_v3 = vcvt.s32.f32 %v850_v58  ;;  %v841_v5 = vunpack.c.2.s8 %v554_v34  ;;  %v849_v6 = vunpack.c.2.s8 %v556_v41  ;;  %v1919_v8 = vcvt.s32.f32 %v839_v62 }
 0x280   : > { %6351 = vmatpush1.bf16.msra.mxu1 %v6350_v60  ;;  %v6084_v7 = vpack.c.bf16 %v1928_v61, %v1920_v56  ;;  %v1927_v9 = vcvt.s32.f32 %v847_v63  ;;  %v856_v12 = vunpack.c.1.s8 %v558_v59  ;;  %4168 = vmatprep.mubr.f32.mxu0 %v7665_v40  ;;  %v864_v4 = vunpack.c.1.s8 %v560_v0 }
 0x281   : > { %v6352_v14 = vpack.c.bf16 %v1930_v3, %v1922_v2  ;;  %v1921_v15 = vcvt.s32.f32 %v841_v5  ;;  %v1929_v16 = vcvt.s32.f32 %v849_v6  ;;  %4523 = vmatprep.mubr.f32.mxu1 %v7665_v40  ;;  %v858_v22 = vunpack.c.3.s8 %v558_v59 }
 0x282   : > { %6085 = vmatprep.subr.bf16.mxu0 %v6084_v7  ;;  %v6086_v19 = vpack.c.bf16 %v1927_v9, %v1919_v8  ;;  %v1936_v21 = vcvt.s32.f32 %v856_v12  ;;  %v866_v24 = vunpack.c.3.s8 %v560_v0  ;;  %v1944_v29 = vcvt.s32.f32 %v864_v4  ;;  %v570_v8 = vld [vmem:[%s7537_s12 + $0xa8] sm:$0xff] }
 0x283   : > { %6353 = vmatprep.subr.bf16.mxu1 %v6352_v14  ;;  %v6354_v26 = vpack.c.bf16 %v1929_v16, %v1921_v15  ;;  %v855_v30 = vunpack.c.0.s8 %v558_v59  ;;  %v863_v31 = vunpack.c.0.s8 %v560_v0  ;;  %v1938_v18 = vcvt.s32.f32 %v858_v22  ;;  %v572_v16 = vld [vmem:[%s7537_s12 + $0xb8] sm:$0xff] }
 0x284   : > { %6087 = vmatpush1.bf16.msra.mxu0 %v6086_v19  ;;  %v1946_v27 = vcvt.s32.f32 %v866_v24  ;;  %v857_v33 = vunpack.c.2.s8 %v558_v59  ;;  %v865_v34 = vunpack.c.2.s8 %v560_v0  ;;  %v6088_v40 = vpack.c.bf16 %v1944_v29, %v1936_v21 }
 0x285   : > { %6355 = vmatpush1.bf16.msra.mxu1 %v6354_v26  ;;  %v1935_v35 = vcvt.s32.f32 %v855_v30  ;;  %v1943_v37 = vcvt.s32.f32 %v863_v31  ;;  %v872_v38 = vunpack.c.1.s8 %v562_v25  ;;  %v880_v44 = vunpack.c.1.s8 %v564_v32 }
 0x286   : > { %v6356_v39 = vpack.c.bf16 %v1946_v27, %v1938_v18  ;;  %v1937_v41 = vcvt.s32.f32 %v857_v33  ;;  %v1945_v42 = vcvt.s32.f32 %v865_v34  ;;  %6089 = vmatprep.subr.bf16.mxu0 %v6088_v40  ;;  %v874_v46 = vunpack.c.3.s8 %v562_v25 }
 0x287   : > { %v6090_v43 = vpack.c.bf16 %v1943_v37, %v1935_v35  ;;  %v1952_v45 = vcvt.s32.f32 %v872_v38  ;;  %v882_v47 = vunpack.c.3.s8 %v564_v32  ;;  %v1960_v50 = vcvt.s32.f32 %v880_v44  ;;  %v574_v35 = vld [vmem:[%s7537_s12 + $0xc8] sm:$0xff] }
 0x288   : > { %6357 = vmatprep.subr.bf16.mxu1 %v6356_v39  ;;  %v6358_v49 = vpack.c.bf16 %v1945_v42, %v1937_v41  ;;  %v871_v51 = vunpack.c.0.s8 %v562_v25  ;;  %v879_v52 = vunpack.c.0.s8 %v564_v32  ;;  %v1954_v54 = vcvt.s32.f32 %v874_v46  ;;  %v576_v42 = vld [vmem:[%s7537_s12 + $0xd8] sm:$0xff] }
 0x289   : > { %6091 = vmatpush1.bf16.msra.mxu0 %v6090_v43  ;;  %v1962_v55 = vcvt.s32.f32 %v882_v47  ;;  %v873_v56 = vunpack.c.2.s8 %v562_v25  ;;  %v881_v57 = vunpack.c.2.s8 %v564_v32  ;;  %v6092_v58 = vpack.c.bf16 %v1960_v50, %v1952_v45 }
 0x28a   : > { %6359 = vmatpush1.bf16.msra.mxu1 %v6358_v49  ;;  %v1951_v59 = vcvt.s32.f32 %v871_v51  ;;  %v1959_v60 = vcvt.s32.f32 %v879_v52  ;;  %v888_v61 = vunpack.c.1.s8 %v566_v48  ;;  %v896_v2 = vunpack.c.1.s8 %v568_v53 }
 0x28b   : > { %v6360_v62 = vpack.c.bf16 %v1962_v55, %v1954_v54  ;;  %v1953_v63 = vcvt.s32.f32 %v873_v56  ;;  %v1961_v0 = vcvt.s32.f32 %v881_v57  ;;  %6093 = vmatprep.subr.bf16.mxu0 %v6092_v58  ;;  %v890_v6 = vunpack.c.3.s8 %v566_v48 }
 0x28c   : > { %v6094_v3 = vpack.c.bf16 %v1959_v60, %v1951_v59  ;;  %v1968_v5 = vcvt.s32.f32 %v888_v61  ;;  %v898_v7 = vunpack.c.3.s8 %v568_v53  ;;  %v1976_v12 = vcvt.s32.f32 %v896_v2  ;;  %v578_v59 = vld [vmem:[%s7537_s12 + $0xe8] sm:$0xff] }
 0x28d   : > { %6361 = vmatprep.subr.bf16.mxu1 %v6360_v62  ;;  %v6362_v9 = vpack.c.bf16 %v1961_v0, %v1953_v63  ;;  %v887_v14 = vunpack.c.0.s8 %v566_v48  ;;  %v895_v15 = vunpack.c.0.s8 %v568_v53  ;;  %v1970_v4 = vcvt.s32.f32 %v890_v6  ;;  %v580_v0 = vld [vmem:[%s7537_s12 + $0xf8] sm:$0xff] }
 0x28e   : > { %6095 = vmatpush1.bf16.msra.mxu0 %v6094_v3  ;;  %v1978_v19 = vcvt.s32.f32 %v898_v7  ;;  %v889_v21 = vunpack.c.2.s8 %v566_v48  ;;  %v897_v22 = vunpack.c.2.s8 %v568_v53  ;;  %v6096_v24 = vpack.c.bf16 %v1976_v12, %v1968_v5 }
 0x28f   : > { %6363 = vmatpush1.bf16.msra.mxu1 %v6362_v9  ;;  %v1967_v25 = vcvt.s32.f32 %v887_v14  ;;  %v1975_v26 = vcvt.s32.f32 %v895_v15  ;;  %v904_v29 = vunpack.c.1.s8 %v570_v8  ;;  %v912_v18 = vunpack.c.1.s8 %v572_v16 }
 0x290   : > { %v6364_v30 = vpack.c.bf16 %v1978_v19, %v1970_v4  ;;  %v1969_v31 = vcvt.s32.f32 %v889_v21  ;;  %v1977_v32 = vcvt.s32.f32 %v897_v22  ;;  %6097 = vmatprep.subr.bf16.mxu0 %v6096_v24  ;;  %v906_v34 = vunpack.c.3.s8 %v570_v8 }
 0x291   : > { %v6098_v27 = vpack.c.bf16 %v1975_v26, %v1967_v25  ;;  %v1984_v33 = vcvt.s32.f32 %v904_v29  ;;  %v914_v40 = vunpack.c.3.s8 %v572_v16  ;;  %v1992_v38 = vcvt.s32.f32 %v912_v18  ;;  %v582_v25 = vld [vmem:[%s7537_s12 + $0x108] sm:$0xff] }
 0x292   : > { %6365 = vmatprep.subr.bf16.mxu1 %v6364_v30  ;;  %v6366_v37 = vpack.c.bf16 %v1977_v32, %v1969_v31  ;;  %v903_v39 = vunpack.c.0.s8 %v570_v8  ;;  %v911_v41 = vunpack.c.0.s8 %v572_v16  ;;  %v1986_v44 = vcvt.s32.f32 %v906_v34  ;;  %v584_v32 = vld [vmem:[%s7537_s12 + $0x118] sm:$0xff] }
 0x293   : > { %6099 = vmatpush1.bf16.msra.mxu0 %v6098_v27  ;;  %v1994_v43 = vcvt.s32.f32 %v914_v40  ;;  %v905_v45 = vunpack.c.2.s8 %v570_v8  ;;  %v913_v46 = vunpack.c.2.s8 %v572_v16  ;;  %v6100_v47 = vpack.c.bf16 %v1992_v38, %v1984_v33 }
 0x294   : > { %6367 = vmatpush1.bf16.msra.mxu1 %v6366_v37  ;;  %v1983_v48 = vcvt.s32.f32 %v903_v39  ;;  %v1991_v49 = vcvt.s32.f32 %v911_v41  ;;  %v920_v50 = vunpack.c.1.s8 %v574_v35  ;;  %v928_v54 = vunpack.c.1.s8 %v576_v42 }
 0x295   : > { %v6368_v51 = vpack.c.bf16 %v1994_v43, %v1986_v44  ;;  %v1985_v52 = vcvt.s32.f32 %v905_v45  ;;  %v1993_v53 = vcvt.s32.f32 %v913_v46  ;;  %6101 = vmatprep.subr.bf16.mxu0 %v6100_v47  ;;  %v922_v57 = vunpack.c.3.s8 %v574_v35 }
 0x296   : > { %v6102_v55 = vpack.c.bf16 %v1991_v49, %v1983_v48  ;;  %v2000_v56 = vcvt.s32.f32 %v920_v50  ;;  %v930_v58 = vunpack.c.3.s8 %v576_v42  ;;  %v2008_v61 = vcvt.s32.f32 %v928_v54  ;;  %v586_v48 = vld [vmem:[%s7537_s12 + $0x128] sm:$0xff] }
 0x297   : > { %6369 = vmatprep.subr.bf16.mxu1 %v6368_v51  ;;  %v6370_v60 = vpack.c.bf16 %v1993_v53, %v1985_v52  ;;  %v919_v62 = vunpack.c.0.s8 %v574_v35  ;;  %v927_v63 = vunpack.c.0.s8 %v576_v42  ;;  %v2002_v2 = vcvt.s32.f32 %v922_v57  ;;  %v588_v53 = vld [vmem:[%s7537_s12 + $0x138] sm:$0xff] }
 0x298   : > { %6103 = vmatpush1.bf16.msra.mxu0 %v6102_v55  ;;  %v2010_v3 = vcvt.s32.f32 %v930_v58  ;;  %v921_v5 = vunpack.c.2.s8 %v574_v35  ;;  %v929_v6 = vunpack.c.2.s8 %v576_v42  ;;  %v6104_v7 = vpack.c.bf16 %v2008_v61, %v2000_v56 }
 0x299   : > { %6371 = vmatpush1.bf16.msra.mxu1 %v6370_v60  ;;  %v1999_v8 = vcvt.s32.f32 %v919_v62  ;;  %v2007_v9 = vcvt.s32.f32 %v927_v63  ;;  %v936_v12 = vunpack.c.1.s8 %v578_v59  ;;  %v944_v4 = vunpack.c.1.s8 %v580_v0 }
 0x29a   : > { %v6372_v14 = vpack.c.bf16 %v2010_v3, %v2002_v2  ;;  %v2001_v15 = vcvt.s32.f32 %v921_v5  ;;  %v2009_v16 = vcvt.s32.f32 %v929_v6  ;;  %6105 = vmatprep.subr.bf16.mxu0 %v6104_v7  ;;  %v938_v22 = vunpack.c.3.s8 %v578_v59 }
 0x29b   : > { %v6106_v19 = vpack.c.bf16 %v2007_v9, %v1999_v8  ;;  %v2016_v21 = vcvt.s32.f32 %v936_v12  ;;  %v946_v24 = vunpack.c.3.s8 %v580_v0  ;;  %v2024_v29 = vcvt.s32.f32 %v944_v4  ;;  %v590_v8 = vld [vmem:[%s7537_s12 + $0x148] sm:$0xff] }
 0x29c   : > { %6373 = vmatprep.subr.bf16.mxu1 %v6372_v14  ;;  %v6374_v26 = vpack.c.bf16 %v2009_v16, %v2001_v15  ;;  %v935_v30 = vunpack.c.0.s8 %v578_v59  ;;  %v943_v31 = vunpack.c.0.s8 %v580_v0  ;;  %v2018_v18 = vcvt.s32.f32 %v938_v22  ;;  %v592_v16 = vld [vmem:[%s7537_s12 + $0x158] sm:$0xff] }
 0x29d   : > { %6107 = vmatpush1.bf16.msra.mxu0 %v6106_v19  ;;  %v2026_v27 = vcvt.s32.f32 %v946_v24  ;;  %v937_v33 = vunpack.c.2.s8 %v578_v59  ;;  %v945_v34 = vunpack.c.2.s8 %v580_v0  ;;  %v6108_v40 = vpack.c.bf16 %v2024_v29, %v2016_v21 }
 0x29e   : > { %6375 = vmatpush1.bf16.msra.mxu1 %v6374_v26  ;;  %v2015_v35 = vcvt.s32.f32 %v935_v30  ;;  %v2023_v37 = vcvt.s32.f32 %v943_v31  ;;  %v952_v38 = vunpack.c.1.s8 %v582_v25  ;;  %v960_v44 = vunpack.c.1.s8 %v584_v32 }
 0x29f   : > { %v6376_v39 = vpack.c.bf16 %v2026_v27, %v2018_v18  ;;  %v2017_v41 = vcvt.s32.f32 %v937_v33  ;;  %v2025_v42 = vcvt.s32.f32 %v945_v34  ;;  %6109 = vmatprep.subr.bf16.mxu0 %v6108_v40  ;;  %v954_v46 = vunpack.c.3.s8 %v582_v25 }
 0x2a0   : > { %v6110_v43 = vpack.c.bf16 %v2023_v37, %v2015_v35  ;;  %v2032_v45 = vcvt.s32.f32 %v952_v38  ;;  %v962_v47 = vunpack.c.3.s8 %v584_v32  ;;  %v2040_v50 = vcvt.s32.f32 %v960_v44  ;;  %v594_v35 = vld [vmem:[%s7537_s12 + $0x168] sm:$0xff] }
 0x2a1   : > { %6377 = vmatprep.subr.bf16.mxu1 %v6376_v39  ;;  %v6378_v49 = vpack.c.bf16 %v2025_v42, %v2017_v41  ;;  %v951_v51 = vunpack.c.0.s8 %v582_v25  ;;  %v959_v52 = vunpack.c.0.s8 %v584_v32  ;;  %v2034_v54 = vcvt.s32.f32 %v954_v46  ;;  %v596_v42 = vld [vmem:[%s7537_s12 + $0x178] sm:$0xff] }
 0x2a2   : > { %6111 = vmatpush1.bf16.msra.mxu0 %v6110_v43  ;;  %v2042_v55 = vcvt.s32.f32 %v962_v47  ;;  %v953_v56 = vunpack.c.2.s8 %v582_v25  ;;  %v961_v57 = vunpack.c.2.s8 %v584_v32  ;;  %v6112_v58 = vpack.c.bf16 %v2040_v50, %v2032_v45 }
 0x2a3   : > { %6379 = vmatpush1.bf16.msra.mxu1 %v6378_v49  ;;  %v2031_v59 = vcvt.s32.f32 %v951_v51  ;;  %v2039_v60 = vcvt.s32.f32 %v959_v52  ;;  %v968_v61 = vunpack.c.1.s8 %v586_v48  ;;  %v976_v2 = vunpack.c.1.s8 %v588_v53 }
 0x2a4   : > { %v6380_v62 = vpack.c.bf16 %v2042_v55, %v2034_v54  ;;  %v2033_v63 = vcvt.s32.f32 %v953_v56  ;;  %v2041_v0 = vcvt.s32.f32 %v961_v57  ;;  %6113 = vmatprep.subr.bf16.mxu0 %v6112_v58  ;;  %v970_v6 = vunpack.c.3.s8 %v586_v48 }
 0x2a5   : > { %v6114_v3 = vpack.c.bf16 %v2039_v60, %v2031_v59  ;;  %v2048_v5 = vcvt.s32.f32 %v968_v61  ;;  %v978_v7 = vunpack.c.3.s8 %v588_v53  ;;  %v2056_v12 = vcvt.s32.f32 %v976_v2  ;;  %v598_v59 = vld [vmem:[%s7537_s12 + $0x188] sm:$0xff] }
 0x2a6   : > { %6381 = vmatprep.subr.bf16.mxu1 %v6380_v62  ;;  %v6382_v9 = vpack.c.bf16 %v2041_v0, %v2033_v63  ;;  %v967_v14 = vunpack.c.0.s8 %v586_v48  ;;  %v975_v15 = vunpack.c.0.s8 %v588_v53  ;;  %v2050_v4 = vcvt.s32.f32 %v970_v6  ;;  %v600_v0 = vld [vmem:[%s7537_s12 + $0x198] sm:$0xff] }
 0x2a7   : > { %6115 = vmatpush1.bf16.msra.mxu0 %v6114_v3  ;;  %v2058_v19 = vcvt.s32.f32 %v978_v7  ;;  %v969_v21 = vunpack.c.2.s8 %v586_v48  ;;  %v977_v22 = vunpack.c.2.s8 %v588_v53  ;;  %v6116_v24 = vpack.c.bf16 %v2056_v12, %v2048_v5 }
 0x2a8   : > { %6383 = vmatpush1.bf16.msra.mxu1 %v6382_v9  ;;  %v2047_v25 = vcvt.s32.f32 %v967_v14  ;;  %v2055_v26 = vcvt.s32.f32 %v975_v15  ;;  %v984_v29 = vunpack.c.1.s8 %v590_v8  ;;  %v992_v18 = vunpack.c.1.s8 %v592_v16 }
 0x2a9   : > { %v6384_v30 = vpack.c.bf16 %v2058_v19, %v2050_v4  ;;  %v2049_v31 = vcvt.s32.f32 %v969_v21  ;;  %v2057_v32 = vcvt.s32.f32 %v977_v22  ;;  %6117 = vmatprep.subr.bf16.mxu0 %v6116_v24  ;;  %v986_v34 = vunpack.c.3.s8 %v590_v8 }
 0x2aa   : > { %v6118_v27 = vpack.c.bf16 %v2055_v26, %v2047_v25  ;;  %v2064_v33 = vcvt.s32.f32 %v984_v29  ;;  %v994_v40 = vunpack.c.3.s8 %v592_v16  ;;  %v2072_v38 = vcvt.s32.f32 %v992_v18  ;;  %v602_v25 = vld [vmem:[%s7537_s12 + $0x1a8] sm:$0xff] }
 0x2ab   : > { %6385 = vmatprep.subr.bf16.mxu1 %v6384_v30  ;;  %v6386_v37 = vpack.c.bf16 %v2057_v32, %v2049_v31  ;;  %v983_v39 = vunpack.c.0.s8 %v590_v8  ;;  %v991_v41 = vunpack.c.0.s8 %v592_v16  ;;  %v2066_v44 = vcvt.s32.f32 %v986_v34  ;;  %v604_v32 = vld [vmem:[%s7537_s12 + $0x1b8] sm:$0xff] }
 0x2ac   : > { %6119 = vmatpush1.bf16.msra.mxu0 %v6118_v27  ;;  %v2074_v43 = vcvt.s32.f32 %v994_v40  ;;  %v985_v45 = vunpack.c.2.s8 %v590_v8  ;;  %v993_v46 = vunpack.c.2.s8 %v592_v16  ;;  %v6120_v47 = vpack.c.bf16 %v2072_v38, %v2064_v33 }
 0x2ad   : > { %6387 = vmatpush1.bf16.msra.mxu1 %v6386_v37  ;;  %v2063_v48 = vcvt.s32.f32 %v983_v39  ;;  %v2071_v49 = vcvt.s32.f32 %v991_v41  ;;  %v1000_v50 = vunpack.c.1.s8 %v594_v35  ;;  %v1008_v54 = vunpack.c.1.s8 %v596_v42 }
 0x2ae   : > { %v6388_v51 = vpack.c.bf16 %v2074_v43, %v2066_v44  ;;  %v2065_v52 = vcvt.s32.f32 %v985_v45  ;;  %v2073_v53 = vcvt.s32.f32 %v993_v46  ;;  %6121 = vmatprep.subr.bf16.mxu0 %v6120_v47  ;;  %v1002_v57 = vunpack.c.3.s8 %v594_v35 }
 0x2af   : > { %v6122_v55 = vpack.c.bf16 %v2071_v49, %v2063_v48  ;;  %v2080_v56 = vcvt.s32.f32 %v1000_v50  ;;  %v1010_v58 = vunpack.c.3.s8 %v596_v42  ;;  %v2088_v61 = vcvt.s32.f32 %v1008_v54  ;;  %v606_v48 = vld [vmem:[%s7537_s12 + $0x1c8] sm:$0xff] }
 0x2b0   : > { %6389 = vmatprep.subr.bf16.mxu1 %v6388_v51  ;;  %v6390_v60 = vpack.c.bf16 %v2073_v53, %v2065_v52  ;;  %v999_v62 = vunpack.c.0.s8 %v594_v35  ;;  %v1007_v63 = vunpack.c.0.s8 %v596_v42  ;;  %v2082_v2 = vcvt.s32.f32 %v1002_v57  ;;  %v608_v53 = vld [vmem:[%s7537_s12 + $0x1d8] sm:$0xff] }
 0x2b1   : > { %6123 = vmatpush1.bf16.msra.mxu0 %v6122_v55  ;;  %v2090_v3 = vcvt.s32.f32 %v1010_v58  ;;  %v1001_v5 = vunpack.c.2.s8 %v594_v35  ;;  %v1009_v6 = vunpack.c.2.s8 %v596_v42  ;;  %v6124_v7 = vpack.c.bf16 %v2088_v61, %v2080_v56 }
 0x2b2   : > { %6391 = vmatpush1.bf16.msra.mxu1 %v6390_v60  ;;  %v2079_v8 = vcvt.s32.f32 %v999_v62  ;;  %v2087_v9 = vcvt.s32.f32 %v1007_v63  ;;  %v1016_v12 = vunpack.c.1.s8 %v598_v59  ;;  %v1024_v4 = vunpack.c.1.s8 %v600_v0 }
 0x2b3   : > { %v6392_v14 = vpack.c.bf16 %v2090_v3, %v2082_v2  ;;  %v2081_v15 = vcvt.s32.f32 %v1001_v5  ;;  %v2089_v16 = vcvt.s32.f32 %v1009_v6  ;;  %6125 = vmatprep.subr.bf16.mxu0 %v6124_v7  ;;  %v1018_v22 = vunpack.c.3.s8 %v598_v59 }
 0x2b4   : > { %v6126_v19 = vpack.c.bf16 %v2087_v9, %v2079_v8  ;;  %v2096_v21 = vcvt.s32.f32 %v1016_v12  ;;  %v1026_v24 = vunpack.c.3.s8 %v600_v0  ;;  %v2104_v29 = vcvt.s32.f32 %v1024_v4  ;;  %v610_v8 = vld [vmem:[%s7537_s12 + $0x1e8] sm:$0xff] }
 0x2b5   : > { %6393 = vmatprep.subr.bf16.mxu1 %v6392_v14  ;;  %v6394_v26 = vpack.c.bf16 %v2089_v16, %v2081_v15  ;;  %v1015_v30 = vunpack.c.0.s8 %v598_v59  ;;  %v1023_v31 = vunpack.c.0.s8 %v600_v0  ;;  %v2098_v18 = vcvt.s32.f32 %v1018_v22  ;;  %v612_v16 = vld [vmem:[%s7537_s12 + $0x1f8] sm:$0xff] }
 0x2b6   : > { %6127 = vmatpush1.bf16.msra.mxu0 %v6126_v19  ;;  %v2106_v27 = vcvt.s32.f32 %v1026_v24  ;;  %v1017_v33 = vunpack.c.2.s8 %v598_v59  ;;  %v1025_v34 = vunpack.c.2.s8 %v600_v0  ;;  %v6128_v40 = vpack.c.bf16 %v2104_v29, %v2096_v21 }
 0x2b7   : > { %6395 = vmatpush1.bf16.msra.mxu1 %v6394_v26  ;;  %v2095_v35 = vcvt.s32.f32 %v1015_v30  ;;  %v2103_v37 = vcvt.s32.f32 %v1023_v31  ;;  %v1032_v38 = vunpack.c.1.s8 %v602_v25  ;;  %v1040_v44 = vunpack.c.1.s8 %v604_v32 }
 0x2b8   : > { %v6396_v39 = vpack.c.bf16 %v2106_v27, %v2098_v18  ;;  %v2097_v41 = vcvt.s32.f32 %v1017_v33  ;;  %v2105_v42 = vcvt.s32.f32 %v1025_v34  ;;  %6129 = vmatprep.subr.bf16.mxu0 %v6128_v40  ;;  %v1034_v46 = vunpack.c.3.s8 %v602_v25 }
 0x2b9   : > { %v6130_v43 = vpack.c.bf16 %v2103_v37, %v2095_v35  ;;  %v2112_v45 = vcvt.s32.f32 %v1032_v38  ;;  %v1042_v47 = vunpack.c.3.s8 %v604_v32  ;;  %v2120_v50 = vcvt.s32.f32 %v1040_v44  ;;  %v614_v35 = vld [vmem:[%s7537_s12 + $0x208] sm:$0xff] }
 0x2ba   : > { %6397 = vmatprep.subr.bf16.mxu1 %v6396_v39  ;;  %v6398_v49 = vpack.c.bf16 %v2105_v42, %v2097_v41  ;;  %v1031_v51 = vunpack.c.0.s8 %v602_v25  ;;  %v1039_v52 = vunpack.c.0.s8 %v604_v32  ;;  %v2114_v54 = vcvt.s32.f32 %v1034_v46  ;;  %v616_v42 = vld [vmem:[%s7537_s12 + $0x218] sm:$0xff] }
 0x2bb   : > { %6131 = vmatpush1.bf16.msra.mxu0 %v6130_v43  ;;  %v2122_v55 = vcvt.s32.f32 %v1042_v47  ;;  %v1033_v56 = vunpack.c.2.s8 %v602_v25  ;;  %v1041_v57 = vunpack.c.2.s8 %v604_v32  ;;  %v6132_v58 = vpack.c.bf16 %v2120_v50, %v2112_v45 }
 0x2bc   : > { %6399 = vmatpush1.bf16.msra.mxu1 %v6398_v49  ;;  %v2111_v59 = vcvt.s32.f32 %v1031_v51  ;;  %v2119_v60 = vcvt.s32.f32 %v1039_v52  ;;  %v1048_v61 = vunpack.c.1.s8 %v606_v48  ;;  %v1056_v2 = vunpack.c.1.s8 %v608_v53 }
 0x2bd   : > { %v6400_v62 = vpack.c.bf16 %v2122_v55, %v2114_v54  ;;  %v2113_v63 = vcvt.s32.f32 %v1033_v56  ;;  %v2121_v0 = vcvt.s32.f32 %v1041_v57  ;;  %6133 = vmatprep.subr.bf16.mxu0 %v6132_v58  ;;  %v1050_v6 = vunpack.c.3.s8 %v606_v48 }
 0x2be   : > { %v6134_v3 = vpack.c.bf16 %v2119_v60, %v2111_v59  ;;  %v2128_v5 = vcvt.s32.f32 %v1048_v61  ;;  %v1058_v7 = vunpack.c.3.s8 %v608_v53  ;;  %v2136_v12 = vcvt.s32.f32 %v1056_v2  ;;  %v618_v59 = vld [vmem:[%s7537_s12 + $0x228] sm:$0xff] }
 0x2bf   : > { %6401 = vmatprep.subr.bf16.mxu1 %v6400_v62  ;;  %v6402_v9 = vpack.c.bf16 %v2121_v0, %v2113_v63  ;;  %v1047_v14 = vunpack.c.0.s8 %v606_v48  ;;  %v1055_v15 = vunpack.c.0.s8 %v608_v53  ;;  %v2130_v4 = vcvt.s32.f32 %v1050_v6  ;;  %v620_v0 = vld [vmem:[%s7537_s12 + $0x238] sm:$0xff] }
 0x2c0   : > { %6135 = vmatpush1.bf16.msra.mxu0 %v6134_v3  ;;  %v2138_v19 = vcvt.s32.f32 %v1058_v7  ;;  %v1049_v21 = vunpack.c.2.s8 %v606_v48  ;;  %v1057_v22 = vunpack.c.2.s8 %v608_v53  ;;  %v6136_v24 = vpack.c.bf16 %v2136_v12, %v2128_v5 }
 0x2c1   : > { %6403 = vmatpush1.bf16.msra.mxu1 %v6402_v9  ;;  %v2127_v25 = vcvt.s32.f32 %v1047_v14  ;;  %v2135_v26 = vcvt.s32.f32 %v1055_v15  ;;  %v1064_v29 = vunpack.c.1.s8 %v610_v8  ;;  %v1072_v18 = vunpack.c.1.s8 %v612_v16 }
 0x2c2   : > { %v6404_v30 = vpack.c.bf16 %v2138_v19, %v2130_v4  ;;  %v2129_v31 = vcvt.s32.f32 %v1049_v21  ;;  %v2137_v32 = vcvt.s32.f32 %v1057_v22  ;;  %6137 = vmatprep.subr.bf16.mxu0 %v6136_v24  ;;  %v1066_v34 = vunpack.c.3.s8 %v610_v8 }
 0x2c3   : > { %v6138_v27 = vpack.c.bf16 %v2135_v26, %v2127_v25  ;;  %v2144_v33 = vcvt.s32.f32 %v1064_v29  ;;  %v1074_v40 = vunpack.c.3.s8 %v612_v16  ;;  %v2152_v38 = vcvt.s32.f32 %v1072_v18  ;;  %v622_v25 = vld [vmem:[%s7537_s12 + $0x248] sm:$0xff] }
 0x2c4   : > { %6405 = vmatprep.subr.bf16.mxu1 %v6404_v30  ;;  %v6406_v37 = vpack.c.bf16 %v2137_v32, %v2129_v31  ;;  %v1063_v39 = vunpack.c.0.s8 %v610_v8  ;;  %v1071_v41 = vunpack.c.0.s8 %v612_v16  ;;  %v2146_v44 = vcvt.s32.f32 %v1066_v34  ;;  %v624_v32 = vld [vmem:[%s7537_s12 + $0x258] sm:$0xff] }
 0x2c5   : > { %6139 = vmatpush1.bf16.msra.mxu0 %v6138_v27  ;;  %v2154_v43 = vcvt.s32.f32 %v1074_v40  ;;  %v1065_v45 = vunpack.c.2.s8 %v610_v8  ;;  %v1073_v46 = vunpack.c.2.s8 %v612_v16  ;;  %v6140_v47 = vpack.c.bf16 %v2152_v38, %v2144_v33 }
 0x2c6   : > { %6407 = vmatpush1.bf16.msra.mxu1 %v6406_v37  ;;  %v2143_v48 = vcvt.s32.f32 %v1063_v39  ;;  %v2151_v49 = vcvt.s32.f32 %v1071_v41  ;;  %v1080_v50 = vunpack.c.1.s8 %v614_v35  ;;  %v1088_v54 = vunpack.c.1.s8 %v616_v42 }
 0x2c7   : > { %v6408_v51 = vpack.c.bf16 %v2154_v43, %v2146_v44  ;;  %v2145_v52 = vcvt.s32.f32 %v1065_v45  ;;  %v2153_v53 = vcvt.s32.f32 %v1073_v46  ;;  %6141 = vmatprep.subr.bf16.mxu0 %v6140_v47  ;;  %v1082_v57 = vunpack.c.3.s8 %v614_v35  ;;  %v626_v47 = vld [vmem:[%s7537_s12 + $0x268] sm:$0xff] }
 0x2c8   : > { %v6142_v55 = vpack.c.bf16 %v2151_v49, %v2143_v48  ;;  %v2160_v56 = vcvt.s32.f32 %v1080_v50  ;;  %v1090_v58 = vunpack.c.3.s8 %v616_v42  ;;  %v2168_v61 = vcvt.s32.f32 %v1088_v54 }
 0x2c9   : > { %6409 = vmatprep.subr.bf16.mxu1 %v6408_v51  ;;  %v6410_v60 = vpack.c.bf16 %v2153_v53, %v2145_v52  ;;  %v1079_v62 = vunpack.c.0.s8 %v614_v35  ;;  %v1087_v63 = vunpack.c.0.s8 %v616_v42  ;;  %v2162_v2 = vcvt.s32.f32 %v1082_v57  ;;  %v628_v52 = vld [vmem:[%s7537_s12 + $0x278] sm:$0xff] }
 0x2ca   : > { %6143 = vmatpush1.bf16.msra.mxu0 %v6142_v55  ;;  %v2170_v3 = vcvt.s32.f32 %v1090_v58  ;;  %v1081_v5 = vunpack.c.2.s8 %v614_v35  ;;  %v1089_v6 = vunpack.c.2.s8 %v616_v42  ;;  %v6144_v7 = vpack.c.bf16 %v2168_v61, %v2160_v56 }
 0x2cb   : > { %6411 = vmatpush1.bf16.msra.mxu1 %v6410_v60  ;;  %v2159_v8 = vcvt.s32.f32 %v1079_v62  ;;  %v2167_v9 = vcvt.s32.f32 %v1087_v63  ;;  %v1096_v12 = vunpack.c.1.s8 %v618_v59  ;;  %v1104_v4 = vunpack.c.1.s8 %v620_v0 }
 0x2cc   : > { %v6412_v14 = vpack.c.bf16 %v2170_v3, %v2162_v2  ;;  %v2161_v15 = vcvt.s32.f32 %v1081_v5  ;;  %v2169_v16 = vcvt.s32.f32 %v1089_v6  ;;  %6145 = vmatprep.subr.bf16.mxu0 %v6144_v7  ;;  %v1098_v22 = vunpack.c.3.s8 %v618_v59  ;;  %v630_v6 = vld [vmem:[%s7537_s12 + $0x288] sm:$0xff] }
 0x2cd   : > { %4169 = vmatmul.mubr.f32.vlgmr.msra.gmra.mrb[2].mxu0 %v7661_v28  ;;  %v6146_v19 = vpack.c.bf16 %v2167_v9, %v2159_v8  ;;  %v2176_v21 = vcvt.s32.f32 %v1096_v12  ;;  %v1106_v24 = vunpack.c.3.s8 %v620_v0  ;;  %v2184_v29 = vcvt.s32.f32 %v1104_v4 }
 0x2ce   : > { %6413 = vmatprep.subr.bf16.mxu1 %v6412_v14  ;;  %4524 = vmatmul.mubr.f32.vlgmr.msra.gmra.mrb[2].mxu1 %v7661_v28  ;;  %v6414_v26 = vpack.c.bf16 %v2169_v16, %v2161_v15  ;;  %v1095_v30 = vunpack.c.0.s8 %v618_v59  ;;  %v1103_v31 = vunpack.c.0.s8 %v620_v0  ;;  %v2178_v18 = vcvt.s32.f32 %v1098_v22  ;;  %v632_v14 = vld [vmem:[%s7537_s12 + $0x298] sm:$0xff] }
 0x2cf   : > { %6147 = vmatpush1.bf16.msra.mxu0 %v6146_v19  ;;  %v2186_v27 = vcvt.s32.f32 %v1106_v24  ;;  %v1097_v33 = vunpack.c.2.s8 %v618_v59  ;;  %v1105_v34 = vunpack.c.2.s8 %v620_v0  ;;  %4239 = vmatprep.mubr.f32.mxu0 %v7710_v17  ;;  %v6148_v40 = vpack.c.bf16 %v2184_v29, %v2176_v21 }
 0x2d0   : > { %6415 = vmatpush1.bf16.msra.mxu1 %v6414_v26  ;;  %v2175_v35 = vcvt.s32.f32 %v1095_v30  ;;  %v2183_v37 = vcvt.s32.f32 %v1103_v31  ;;  %v1112_v38 = vunpack.c.1.s8 %v622_v25  ;;  %4594 = vmatprep.mubr.f32.mxu1 %v7710_v17  ;;  %v1120_v42 = vunpack.c.1.s8 %v624_v32 }
 0x2d1   : > { %v6416_v28 = vpack.c.bf16 %v2186_v27, %v2178_v18  ;;  %v2177_v39 = vcvt.s32.f32 %v1097_v33  ;;  %v2185_v41 = vcvt.s32.f32 %v1105_v34  ;;  %6149 = vmatprep.subr.bf16.mxu0 %v6148_v40  ;;  %v1114_v45 = vunpack.c.3.s8 %v622_v25  ;;  %v634_v34 = vld [vmem:[%s7537_s12 + $0x2a8] sm:$0xff] }
 0x2d2   : > { %v6150_v44 = vpack.c.bf16 %v2183_v37, %v2175_v35  ;;  %v2192_v43 = vcvt.s32.f32 %v1112_v38  ;;  %v1122_v46 = vunpack.c.3.s8 %v624_v32  ;;  %v2200_v49 = vcvt.s32.f32 %v1120_v42 }
 0x2d3   : > { %6417 = vmatprep.subr.bf16.mxu1 %v6416_v28  ;;  %v6418_v48 = vpack.c.bf16 %v2185_v41, %v2177_v39  ;;  %v1111_v50 = vunpack.c.0.s8 %v622_v25  ;;  %v1119_v51 = vunpack.c.0.s8 %v624_v32  ;;  %v2194_v53 = vcvt.s32.f32 %v1114_v45  ;;  %v636_v28 = vld [vmem:[%s7537_s12 + $0x2b8] sm:$0xff] }
 0x2d4   : > { %6151 = vmatpush1.bf16.msra.mxu0 %v6150_v44  ;;  %v2202_v17 = vcvt.s32.f32 %v1122_v46  ;;  %v1113_v54 = vunpack.c.2.s8 %v622_v25  ;;  %v1121_v55 = vunpack.c.2.s8 %v624_v32  ;;  %v6152_v56 = vpack.c.bf16 %v2200_v49, %v2192_v43 }
 0x2d5   : > { %6419 = vmatpush1.bf16.msra.mxu1 %v6418_v48  ;;  %v2191_v57 = vcvt.s32.f32 %v1111_v50  ;;  %v2199_v58 = vcvt.s32.f32 %v1119_v51  ;;  %v1128_v59 = vunpack.c.1.s8 %v626_v47  ;;  %v1136_v63 = vunpack.c.1.s8 %v628_v52 }
 0x2d6   : > { %v6420_v60 = vpack.c.bf16 %v2202_v17, %v2194_v53  ;;  %v2193_v61 = vcvt.s32.f32 %v1113_v54  ;;  %v2201_v62 = vcvt.s32.f32 %v1121_v55  ;;  %6153 = vmatprep.subr.bf16.mxu0 %v6152_v56  ;;  %v1130_v3 = vunpack.c.3.s8 %v626_v47  ;;  %v638_v55 = vld [vmem:[%s7537_s12 + $0x2c8] sm:$0xff] }
 0x2d7   : > { %v6154_v0 = vpack.c.bf16 %v2199_v58, %v2191_v57  ;;  %v2208_v2 = vcvt.s32.f32 %v1128_v59  ;;  %v1138_v5 = vunpack.c.3.s8 %v628_v52  ;;  %v2216_v8 = vcvt.s32.f32 %v1136_v63 }
 0x2d8   : > { %6421 = vmatprep.subr.bf16.mxu1 %v6420_v60  ;;  %v6422_v7 = vpack.c.bf16 %v2201_v62, %v2193_v61  ;;  %v1127_v9 = vunpack.c.0.s8 %v626_v47  ;;  %v1135_v12 = vunpack.c.0.s8 %v628_v52  ;;  %v2210_v15 = vcvt.s32.f32 %v1130_v3  ;;  %v640_v60 = vld [vmem:[%s7537_s12 + $0x2d8] sm:$0xff] }
 0x2d9   : > { %6155 = vmatpush1.bf16.msra.mxu0 %v6154_v0  ;;  %v2218_v16 = vcvt.s32.f32 %v1138_v5  ;;  %v1129_v4 = vunpack.c.2.s8 %v626_v47  ;;  %v1137_v19 = vunpack.c.2.s8 %v628_v52  ;;  %v6156_v21 = vpack.c.bf16 %v2216_v8, %v2208_v2 }
 0x2da   : > { %6423 = vmatpush1.bf16.msra.mxu1 %v6422_v7  ;;  %v2207_v22 = vcvt.s32.f32 %v1127_v9  ;;  %v2215_v24 = vcvt.s32.f32 %v1135_v12  ;;  %v1144_v25 = vunpack.c.1.s8 %v630_v6  ;;  %v1152_v31 = vunpack.c.1.s8 %v632_v14 }
 0x2db   : > { %v6424_v26 = vpack.c.bf16 %v2218_v16, %v2210_v15  ;;  %v2209_v29 = vcvt.s32.f32 %v1129_v4  ;;  %v2217_v30 = vcvt.s32.f32 %v1137_v19  ;;  %6157 = vmatprep.subr.bf16.mxu0 %v6156_v21  ;;  %v1146_v27 = vunpack.c.3.s8 %v630_v6  ;;  %v642_v19 = vld [vmem:[%s7537_s12 + $0x2e8] sm:$0xff] }
 0x2dc   : > { %v6158_v32 = vpack.c.bf16 %v2215_v24, %v2207_v22  ;;  %v2224_v18 = vcvt.s32.f32 %v1144_v25  ;;  %v1154_v33 = vunpack.c.3.s8 %v632_v14  ;;  %v2232_v35 = vcvt.s32.f32 %v1152_v31 }
 0x2dd   : > { %6425 = vmatprep.subr.bf16.mxu1 %v6424_v26  ;;  %v6426_v40 = vpack.c.bf16 %v2217_v30, %v2209_v29  ;;  %v1143_v37 = vunpack.c.0.s8 %v630_v6  ;;  %v1151_v38 = vunpack.c.0.s8 %v632_v14  ;;  %v2226_v39 = vcvt.s32.f32 %v1146_v27  ;;  %v644_v26 = vld [vmem:[%s7537_s12 + $0x2f8] sm:$0xff] }
 0x2de   : > { %6159 = vmatpush1.bf16.msra.mxu0 %v6158_v32  ;;  %v2234_v41 = vcvt.s32.f32 %v1154_v33  ;;  %v1145_v42 = vunpack.c.2.s8 %v630_v6  ;;  %v1153_v44 = vunpack.c.2.s8 %v632_v14  ;;  %v6160_v43 = vpack.c.bf16 %v2232_v35, %v2224_v18 }
 0x2df   : > { %6427 = vmatpush1.bf16.msra.mxu1 %v6426_v40  ;;  %v2223_v45 = vcvt.s32.f32 %v1143_v37  ;;  %v2231_v46 = vcvt.s32.f32 %v1151_v38  ;;  %v1160_v47 = vunpack.c.1.s8 %v634_v34  ;;  %v1168_v51 = vunpack.c.1.s8 %v636_v28 }
 0x2e0   : > { %v6428_v48 = vpack.c.bf16 %v2234_v41, %v2226_v39  ;;  %v2225_v49 = vcvt.s32.f32 %v1145_v42  ;;  %v2233_v50 = vcvt.s32.f32 %v1153_v44  ;;  %6161 = vmatprep.subr.bf16.mxu0 %v6160_v43  ;;  %v1162_v17 = vunpack.c.3.s8 %v634_v34  ;;  %v646_v44 = vld [vmem:[%s7537_s12 + $0x308] sm:$0xff] }
 0x2e1   : > { %v6162_v52 = vpack.c.bf16 %v2231_v46, %v2223_v45  ;;  %v2240_v53 = vcvt.s32.f32 %v1160_v47  ;;  %v1170_v54 = vunpack.c.3.s8 %v636_v28  ;;  %v2248_v57 = vcvt.s32.f32 %v1168_v51 }
 0x2e2   : > { %6429 = vmatprep.subr.bf16.mxu1 %v6428_v48  ;;  %v6430_v56 = vpack.c.bf16 %v2233_v50, %v2225_v49  ;;  %v1159_v58 = vunpack.c.0.s8 %v634_v34  ;;  %v1167_v59 = vunpack.c.0.s8 %v636_v28  ;;  %v2242_v61 = vcvt.s32.f32 %v1162_v17  ;;  %v648_v48 = vld [vmem:[%s7537_s12 + $0x318] sm:$0xff] }
 0x2e3   : > { %6163 = vmatpush1.bf16.msra.mxu0 %v6162_v52  ;;  %v2250_v62 = vcvt.s32.f32 %v1170_v54  ;;  %v1161_v63 = vunpack.c.2.s8 %v634_v34  ;;  %v1169_v0 = vunpack.c.2.s8 %v636_v28  ;;  %v6164_v2 = vpack.c.bf16 %v2248_v57, %v2240_v53 }
 0x2e4   : > { %6431 = vmatpush1.bf16.msra.mxu1 %v6430_v56  ;;  %v2239_v3 = vcvt.s32.f32 %v1159_v58  ;;  %v2247_v5 = vcvt.s32.f32 %v1167_v59  ;;  %v1176_v6 = vunpack.c.1.s8 %v638_v55  ;;  %v1184_v12 = vunpack.c.1.s8 %v640_v60 }
 0x2e5   : > { %v6432_v7 = vpack.c.bf16 %v2250_v62, %v2242_v61  ;;  %v2241_v8 = vcvt.s32.f32 %v1161_v63  ;;  %v2249_v9 = vcvt.s32.f32 %v1169_v0  ;;  %6165 = vmatprep.subr.bf16.mxu0 %v6164_v2  ;;  %v1178_v16 = vunpack.c.3.s8 %v638_v55  ;;  %v650_v0 = vld [vmem:[%s7537_s12 + $0x328] sm:$0xff] }
 0x2e6   : > { %v6166_v14 = vpack.c.bf16 %v2247_v5, %v2239_v3  ;;  %v2256_v15 = vcvt.s32.f32 %v1176_v6  ;;  %v1186_v4 = vunpack.c.3.s8 %v640_v60  ;;  %v2264_v22 = vcvt.s32.f32 %v1184_v12 }
 0x2e7   : > { %6433 = vmatprep.subr.bf16.mxu1 %v6432_v7  ;;  %v6434_v21 = vpack.c.bf16 %v2249_v9, %v2241_v8  ;;  %v1175_v24 = vunpack.c.0.s8 %v638_v55  ;;  %v1183_v25 = vunpack.c.0.s8 %v640_v60  ;;  %v2258_v29 = vcvt.s32.f32 %v1178_v16  ;;  %v652_v7 = vld [vmem:[%s7537_s12 + $0x338] sm:$0xff] }
 0x2e8   : > { %6167 = vmatpush1.bf16.msra.mxu0 %v6166_v14  ;;  %v2266_v30 = vcvt.s32.f32 %v1186_v4  ;;  %v1177_v31 = vunpack.c.2.s8 %v638_v55  ;;  %v1185_v32 = vunpack.c.2.s8 %v640_v60  ;;  %v6168_v18 = vpack.c.bf16 %v2264_v22, %v2256_v15 }
 0x2e9   : > { %6435 = vmatpush1.bf16.msra.mxu1 %v6434_v21  ;;  %v2255_v27 = vcvt.s32.f32 %v1175_v24  ;;  %v2263_v33 = vcvt.s32.f32 %v1183_v25  ;;  %v1192_v34 = vunpack.c.1.s8 %v642_v19  ;;  %v1200_v38 = vunpack.c.1.s8 %v644_v26 }
 0x2ea   : > { %v6436_v40 = vpack.c.bf16 %v2266_v30, %v2258_v29  ;;  %v2257_v35 = vcvt.s32.f32 %v1177_v31  ;;  %v2265_v37 = vcvt.s32.f32 %v1185_v32  ;;  %6169 = vmatprep.subr.bf16.mxu0 %v6168_v18  ;;  %v1194_v41 = vunpack.c.3.s8 %v642_v19  ;;  %v654_v32 = vld [vmem:[%s7537_s12 + $0x348] sm:$0xff] }
 0x2eb   : > { %v6170_v28 = vpack.c.bf16 %v2263_v33, %v2255_v27  ;;  %v2272_v39 = vcvt.s32.f32 %v1192_v34  ;;  %v1202_v42 = vunpack.c.3.s8 %v644_v26  ;;  %v2280_v45 = vcvt.s32.f32 %v1200_v38 }
 0x2ec   : > { %6437 = vmatprep.subr.bf16.mxu1 %v6436_v40  ;;  %v6438_v43 = vpack.c.bf16 %v2265_v37, %v2257_v35  ;;  %v1191_v46 = vunpack.c.0.s8 %v642_v19  ;;  %v1199_v47 = vunpack.c.0.s8 %v644_v26  ;;  %v2274_v49 = vcvt.s32.f32 %v1194_v41  ;;  %v656_v40 = vld [vmem:[%s7537_s12 + $0x358] sm:$0xff] }
 0x2ed   : > { %6171 = vmatpush1.bf16.msra.mxu0 %v6170_v28  ;;  %v2282_v50 = vcvt.s32.f32 %v1202_v42  ;;  %v1193_v51 = vunpack.c.2.s8 %v642_v19  ;;  %v1201_v52 = vunpack.c.2.s8 %v644_v26  ;;  %v6172_v53 = vpack.c.bf16 %v2280_v45, %v2272_v39 }
 0x2ee   : > { %6439 = vmatpush1.bf16.msra.mxu1 %v6438_v43  ;;  %v2271_v17 = vcvt.s32.f32 %v1191_v46  ;;  %v2279_v54 = vcvt.s32.f32 %v1199_v47  ;;  %v1208_v55 = vunpack.c.1.s8 %v646_v44  ;;  %v1216_v59 = vunpack.c.1.s8 %v648_v48 }
 0x2ef   : > { %v6440_v56 = vpack.c.bf16 %v2282_v50, %v2274_v49  ;;  %v2273_v57 = vcvt.s32.f32 %v1193_v51  ;;  %v2281_v58 = vcvt.s32.f32 %v1201_v52  ;;  %6173 = vmatprep.subr.bf16.mxu0 %v6172_v53  ;;  %v1210_v62 = vunpack.c.3.s8 %v646_v44  ;;  %v658_v52 = vld [vmem:[%s7537_s12 + $0x368] sm:$0xff] }
 0x2f0   : > { %v6174_v60 = vpack.c.bf16 %v2279_v54, %v2271_v17  ;;  %v2288_v61 = vcvt.s32.f32 %v1208_v55  ;;  %v1218_v63 = vunpack.c.3.s8 %v648_v48  ;;  %v2296_v3 = vcvt.s32.f32 %v1216_v59 }
 0x2f1   : > { %6441 = vmatprep.subr.bf16.mxu1 %v6440_v56  ;;  %v6442_v2 = vpack.c.bf16 %v2281_v58, %v2273_v57  ;;  %v1207_v5 = vunpack.c.0.s8 %v646_v44  ;;  %v1215_v6 = vunpack.c.0.s8 %v648_v48  ;;  %v2290_v8 = vcvt.s32.f32 %v1210_v62  ;;  %v660_v56 = vld [vmem:[%s7537_s12 + $0x378] sm:$0xff] }
 0x2f2   : > { %6175 = vmatpush1.bf16.msra.mxu0 %v6174_v60  ;;  %v2298_v9 = vcvt.s32.f32 %v1218_v63  ;;  %v1209_v12 = vunpack.c.2.s8 %v646_v44  ;;  %v1217_v14 = vunpack.c.2.s8 %v648_v48  ;;  %v6176_v15 = vpack.c.bf16 %v2296_v3, %v2288_v61 }
 0x2f3   : > { %6443 = vmatpush1.bf16.msra.mxu1 %v6442_v2  ;;  %v2287_v16 = vcvt.s32.f32 %v1207_v5  ;;  %v2295_v4 = vcvt.s32.f32 %v1215_v6  ;;  %v1224_v19 = vunpack.c.1.s8 %v650_v0  ;;  %v1232_v25 = vunpack.c.1.s8 %v652_v7 }
 0x2f4   : > { %v6444_v21 = vpack.c.bf16 %v2298_v9, %v2290_v8  ;;  %v2289_v22 = vcvt.s32.f32 %v1209_v12  ;;  %v2297_v24 = vcvt.s32.f32 %v1217_v14  ;;  %6177 = vmatprep.subr.bf16.mxu0 %v6176_v15  ;;  %v1226_v30 = vunpack.c.3.s8 %v650_v0  ;;  %v662_v14 = vld [vmem:[%s7537_s12 + $0x388] sm:$0xff] }
 0x2f5   : > { %v6178_v26 = vpack.c.bf16 %v2295_v4, %v2287_v16  ;;  %v2304_v29 = vcvt.s32.f32 %v1224_v19  ;;  %v1234_v31 = vunpack.c.3.s8 %v652_v7  ;;  %v2312_v27 = vcvt.s32.f32 %v1232_v25 }
 0x2f6   : > { %6445 = vmatprep.subr.bf16.mxu1 %v6444_v21  ;;  %v6446_v18 = vpack.c.bf16 %v2297_v24, %v2289_v22  ;;  %v1223_v33 = vunpack.c.0.s8 %v650_v0  ;;  %v1231_v34 = vunpack.c.0.s8 %v652_v7  ;;  %v2306_v35 = vcvt.s32.f32 %v1226_v30  ;;  %v664_v21 = vld [vmem:[%s7537_s12 + $0x398] sm:$0xff] }
 0x2f7   : > { %6179 = vmatpush1.bf16.msra.mxu0 %v6178_v26  ;;  %v2314_v37 = vcvt.s32.f32 %v1234_v31  ;;  %v1225_v38 = vunpack.c.2.s8 %v650_v0  ;;  %v1233_v28 = vunpack.c.2.s8 %v652_v7  ;;  %v6180_v39 = vpack.c.bf16 %v2312_v27, %v2304_v29 }
 0x2f8   : > { %6447 = vmatpush1.bf16.msra.mxu1 %v6446_v18  ;;  %v2303_v41 = vcvt.s32.f32 %v1223_v33  ;;  %v2311_v42 = vcvt.s32.f32 %v1231_v34  ;;  %v1240_v44 = vunpack.c.1.s8 %v654_v32  ;;  %v1248_v47 = vunpack.c.1.s8 %v656_v40 }
 0x2f9   : > { %v6448_v43 = vpack.c.bf16 %v2314_v37, %v2306_v35  ;;  %v2305_v45 = vcvt.s32.f32 %v1225_v38  ;;  %v2313_v46 = vcvt.s32.f32 %v1233_v28  ;;  %6181 = vmatprep.subr.bf16.mxu0 %v6180_v39  ;;  %v1242_v50 = vunpack.c.3.s8 %v654_v32  ;;  %v666_v28 = vld [vmem:[%s7537_s12 + $0x3a8] sm:$0xff] }
 0x2fa   : > { %v6182_v48 = vpack.c.bf16 %v2311_v42, %v2303_v41  ;;  %v2320_v49 = vcvt.s32.f32 %v1240_v44  ;;  %v1250_v51 = vunpack.c.3.s8 %v656_v40  ;;  %v2328_v17 = vcvt.s32.f32 %v1248_v47 }
 0x2fb   : > { %6449 = vmatprep.subr.bf16.mxu1 %v6448_v43  ;;  %v6450_v53 = vpack.c.bf16 %v2313_v46, %v2305_v45  ;;  %v1239_v54 = vunpack.c.0.s8 %v654_v32  ;;  %v1247_v55 = vunpack.c.0.s8 %v656_v40  ;;  %v2322_v57 = vcvt.s32.f32 %v1242_v50  ;;  %v668_v43 = vld [vmem:[%s7537_s12 + $0x3b8] sm:$0xff] }
 0x2fc   : > { %6183 = vmatpush1.bf16.msra.mxu0 %v6182_v48  ;;  %v2330_v58 = vcvt.s32.f32 %v1250_v51  ;;  %v1241_v59 = vunpack.c.2.s8 %v654_v32  ;;  %v1249_v60 = vunpack.c.2.s8 %v656_v40  ;;  %v6184_v61 = vpack.c.bf16 %v2328_v17, %v2320_v49 }
 0x2fd   : > { %6451 = vmatpush1.bf16.msra.mxu1 %v6450_v53  ;;  %v2319_v62 = vcvt.s32.f32 %v1239_v54  ;;  %v2327_v63 = vcvt.s32.f32 %v1247_v55  ;;  %v1256_v0 = vunpack.c.1.s8 %v658_v52  ;;  %v1264_v6 = vunpack.c.1.s8 %v660_v56 }
 0x2fe   : > { %v6452_v2 = vpack.c.bf16 %v2330_v58, %v2322_v57  ;;  %v2321_v3 = vcvt.s32.f32 %v1241_v59  ;;  %v2329_v5 = vcvt.s32.f32 %v1249_v60  ;;  %6185 = vmatprep.subr.bf16.mxu0 %v6184_v61  ;;  %v1258_v9 = vunpack.c.3.s8 %v658_v52  ;;  %v670_v60 = vld [vmem:[%s7537_s12 + $0x3c8] sm:$0xff] }
 0x2ff   : > { %v6186_v7 = vpack.c.bf16 %v2327_v63, %v2319_v62  ;;  %v2336_v8 = vcvt.s32.f32 %v1256_v0  ;;  %v1266_v12 = vunpack.c.3.s8 %v660_v56  ;;  %v2344_v16 = vcvt.s32.f32 %v1264_v6 }
 0x300   : > { %6453 = vmatprep.subr.bf16.mxu1 %v6452_v2  ;;  %v6454_v15 = vpack.c.bf16 %v2329_v5, %v2321_v3  ;;  %v1255_v4 = vunpack.c.0.s8 %v658_v52  ;;  %v1263_v19 = vunpack.c.0.s8 %v660_v56  ;;  %v2338_v22 = vcvt.s32.f32 %v1258_v9  ;;  %v672_v2 = vld [vmem:[%s7537_s12 + $0x3d8] sm:$0xff] }
 0x301   : > { %6187 = vmatpush1.bf16.msra.mxu0 %v6186_v7  ;;  %v2346_v24 = vcvt.s32.f32 %v1266_v12  ;;  %v1257_v25 = vunpack.c.2.s8 %v658_v52  ;;  %v1265_v26 = vunpack.c.2.s8 %v660_v56  ;;  %v6188_v29 = vpack.c.bf16 %v2344_v16, %v2336_v8 }
 0x302   : > { %6455 = vmatpush1.bf16.msra.mxu1 %v6454_v15  ;;  %v2335_v30 = vcvt.s32.f32 %v1255_v4  ;;  %v2343_v31 = vcvt.s32.f32 %v1263_v19  ;;  %v1272_v32 = vunpack.c.1.s8 %v662_v14  ;;  %v1280_v34 = vunpack.c.1.s8 %v664_v21 }
 0x303   : > { %v6456_v18 = vpack.c.bf16 %v2346_v24, %v2338_v22  ;;  %v2337_v27 = vcvt.s32.f32 %v1257_v25  ;;  %v2345_v33 = vcvt.s32.f32 %v1265_v26  ;;  %6189 = vmatprep.subr.bf16.mxu0 %v6188_v29  ;;  %v1274_v37 = vunpack.c.3.s8 %v662_v14  ;;  %v674_v26 = vld [vmem:[%s7537_s12 + $0x3e8] sm:$0xff] }
 0x304   : > { %v6190_v40 = vpack.c.bf16 %v2343_v31, %v2335_v30  ;;  %v2352_v35 = vcvt.s32.f32 %v1272_v32  ;;  %v1282_v38 = vunpack.c.3.s8 %v664_v21  ;;  %v2360_v41 = vcvt.s32.f32 %v1280_v34 }
 0x305   : > { %6457 = vmatprep.subr.bf16.mxu1 %v6456_v18  ;;  %v6458_v39 = vpack.c.bf16 %v2345_v33, %v2337_v27  ;;  %v1271_v42 = vunpack.c.0.s8 %v662_v14  ;;  %v1279_v44 = vunpack.c.0.s8 %v664_v21  ;;  %v2354_v45 = vcvt.s32.f32 %v1274_v37  ;;  %v676_v18 = vld [vmem:[%s7537_s12 + $0x3f8] sm:$0xff] }
 0x306   : > { %6191 = vmatpush1.bf16.msra.mxu0 %v6190_v40  ;;  %v2362_v46 = vcvt.s32.f32 %v1282_v38  ;;  %v1273_v47 = vunpack.c.2.s8 %v662_v14  ;;  %v1281_v48 = vunpack.c.2.s8 %v664_v21  ;;  %v6192_v49 = vpack.c.bf16 %v2360_v41, %v2352_v35 }
 0x307   : > { %6459 = vmatpush1.bf16.msra.mxu1 %v6458_v39  ;;  %v2351_v50 = vcvt.s32.f32 %v1271_v42  ;;  %v2359_v51 = vcvt.s32.f32 %v1279_v44  ;;  %v1288_v52 = vunpack.c.1.s8 %v666_v28  ;;  %v1296_v55 = vunpack.c.1.s8 %v668_v43 }
 0x308   : > { %v6460_v53 = vpack.c.bf16 %v2362_v46, %v2354_v45  ;;  %v2353_v17 = vcvt.s32.f32 %v1273_v47  ;;  %v2361_v54 = vcvt.s32.f32 %v1281_v48  ;;  %6193 = vmatprep.subr.bf16.mxu0 %v6192_v49  ;;  %v1290_v58 = vunpack.c.3.s8 %v666_v28  ;;  %v678_v48 = vld [vmem:[%s7537_s12 + $0x408] sm:$0xff] }
 0x309   : > { %v6194_v56 = vpack.c.bf16 %v2359_v51, %v2351_v50  ;;  %v2368_v57 = vcvt.s32.f32 %v1288_v52  ;;  %v1298_v59 = vunpack.c.3.s8 %v668_v43  ;;  %v2376_v62 = vcvt.s32.f32 %v1296_v55 }
 0x30a   : > { %6461 = vmatprep.subr.bf16.mxu1 %v6460_v53  ;;  %v6462_v61 = vpack.c.bf16 %v2361_v54, %v2353_v17  ;;  %v1287_v63 = vunpack.c.0.s8 %v666_v28  ;;  %v1295_v0 = vunpack.c.0.s8 %v668_v43  ;;  %v2370_v3 = vcvt.s32.f32 %v1290_v58  ;;  %v680_v53 = vld [vmem:[%s7537_s12 + $0x418] sm:$0xff] }
 0x30b   : > { %6195 = vmatpush1.bf16.msra.mxu0 %v6194_v56  ;;  %v2378_v5 = vcvt.s32.f32 %v1298_v59  ;;  %v1289_v6 = vunpack.c.2.s8 %v666_v28  ;;  %v1297_v7 = vunpack.c.2.s8 %v668_v43  ;;  %v6196_v8 = vpack.c.bf16 %v2376_v62, %v2368_v57 }
 0x30c   : > { %6463 = vmatpush1.bf16.msra.mxu1 %v6462_v61  ;;  %v2367_v9 = vcvt.s32.f32 %v1287_v63  ;;  %v2375_v12 = vcvt.s32.f32 %v1295_v0  ;;  %v1304_v14 = vunpack.c.1.s8 %v670_v60  ;;  %v1312_v19 = vunpack.c.1.s8 %v672_v2 }
 0x30d   : > { %v6464_v15 = vpack.c.bf16 %v2378_v5, %v2370_v3  ;;  %v2369_v16 = vcvt.s32.f32 %v1289_v6  ;;  %v2377_v4 = vcvt.s32.f32 %v1297_v7  ;;  %6197 = vmatprep.subr.bf16.mxu0 %v6196_v8  ;;  %v1306_v24 = vunpack.c.3.s8 %v670_v60  ;;  %v682_v7 = vld [vmem:[%s7537_s12 + $0x428] sm:$0xff] }
 0x30e   : > { %v6198_v21 = vpack.c.bf16 %v2375_v12, %v2367_v9  ;;  %v2384_v22 = vcvt.s32.f32 %v1304_v14  ;;  %v1314_v25 = vunpack.c.3.s8 %v672_v2  ;;  %v2392_v30 = vcvt.s32.f32 %v1312_v19 }
 0x30f   : > { %6465 = vmatprep.subr.bf16.mxu1 %v6464_v15  ;;  %v6466_v29 = vpack.c.bf16 %v2377_v4, %v2369_v16  ;;  %v1303_v31 = vunpack.c.0.s8 %v670_v60  ;;  %v1311_v32 = vunpack.c.0.s8 %v672_v2  ;;  %v2386_v27 = vcvt.s32.f32 %v1306_v24  ;;  %v684_v15 = vld [vmem:[%s7537_s12 + $0x438] sm:$0xff] }
 0x310   : > { %6199 = vmatpush1.bf16.msra.mxu0 %v6198_v21  ;;  %v2394_v33 = vcvt.s32.f32 %v1314_v25  ;;  %v1305_v34 = vunpack.c.2.s8 %v670_v60  ;;  %v1313_v40 = vunpack.c.2.s8 %v672_v2  ;;  %v6200_v35 = vpack.c.bf16 %v2392_v30, %v2384_v22 }
 0x311   : > { %6467 = vmatpush1.bf16.msra.mxu1 %v6466_v29  ;;  %v2383_v37 = vcvt.s32.f32 %v1303_v31  ;;  %v2391_v38 = vcvt.s32.f32 %v1311_v32  ;;  %v1320_v28 = vunpack.c.1.s8 %v674_v26  ;;  %v1328_v44 = vunpack.c.1.s8 %v676_v18 }
 0x312   : > { %v6468_v39 = vpack.c.bf16 %v2394_v33, %v2386_v27  ;;  %v2385_v41 = vcvt.s32.f32 %v1305_v34  ;;  %v2393_v42 = vcvt.s32.f32 %v1313_v40  ;;  %6201 = vmatprep.subr.bf16.mxu0 %v6200_v35  ;;  %v1322_v46 = vunpack.c.3.s8 %v674_v26  ;;  %v686_v40 = vld [vmem:[%s7537_s12 + $0x448] sm:$0xff] }
 0x313   : > { %v6202_v43 = vpack.c.bf16 %v2391_v38, %v2383_v37  ;;  %v2400_v45 = vcvt.s32.f32 %v1320_v28  ;;  %v1330_v47 = vunpack.c.3.s8 %v676_v18  ;;  %v2408_v50 = vcvt.s32.f32 %v1328_v44 }
 0x314   : > { %6469 = vmatprep.subr.bf16.mxu1 %v6468_v39  ;;  %v6470_v49 = vpack.c.bf16 %v2393_v42, %v2385_v41  ;;  %v1319_v51 = vunpack.c.0.s8 %v674_v26  ;;  %v1327_v52 = vunpack.c.0.s8 %v676_v18  ;;  %v2402_v17 = vcvt.s32.f32 %v1322_v46  ;;  %v688_v39 = vld [vmem:[%s7537_s12 + $0x458] sm:$0xff] }
 0x315   : > { %6203 = vmatpush1.bf16.msra.mxu0 %v6202_v43  ;;  %v2410_v54 = vcvt.s32.f32 %v1330_v47  ;;  %v1321_v55 = vunpack.c.2.s8 %v674_v26  ;;  %v1329_v56 = vunpack.c.2.s8 %v676_v18  ;;  %v6204_v57 = vpack.c.bf16 %v2408_v50, %v2400_v45 }
 0x316   : > { %6471 = vmatpush1.bf16.msra.mxu1 %v6470_v49  ;;  %v2399_v58 = vcvt.s32.f32 %v1319_v51  ;;  %v2407_v59 = vcvt.s32.f32 %v1327_v52  ;;  %v1336_v60 = vunpack.c.1.s8 %v678_v48  ;;  %v1344_v0 = vunpack.c.1.s8 %v680_v53 }
 0x317   : > { %v6472_v61 = vpack.c.bf16 %v2410_v54, %v2402_v17  ;;  %v2401_v62 = vcvt.s32.f32 %v1321_v55  ;;  %v2409_v63 = vcvt.s32.f32 %v1329_v56  ;;  %6205 = vmatprep.subr.bf16.mxu0 %v6204_v57  ;;  %v1338_v5 = vunpack.c.3.s8 %v678_v48  ;;  %v690_v55 = vld [vmem:[%s7537_s12 + $0x468] sm:$0xff] }
 0x318   : > { %v6206_v2 = vpack.c.bf16 %v2407_v59, %v2399_v58  ;;  %v2416_v3 = vcvt.s32.f32 %v1336_v60  ;;  %v1346_v6 = vunpack.c.3.s8 %v680_v53  ;;  %v2424_v9 = vcvt.s32.f32 %v1344_v0  ;;  %v692_v60 = vld [vmem:[%s7537_s12 + $0x478] sm:$0xff] }
 0x319   : > { %6473 = vmatprep.subr.bf16.mxu1 %v6472_v61  ;;  %v6474_v8 = vpack.c.bf16 %v2409_v63, %v2401_v62  ;;  %v1335_v12 = vunpack.c.0.s8 %v678_v48  ;;  %v1343_v14 = vunpack.c.0.s8 %v680_v53  ;;  %v2418_v16 = vcvt.s32.f32 %v1338_v5 }
 0x31a   : > { %6207 = vmatpush1.bf16.msra.mxu0 %v6206_v2  ;;  %v2426_v4 = vcvt.s32.f32 %v1346_v6  ;;  %v1337_v19 = vunpack.c.2.s8 %v678_v48  ;;  %v1345_v21 = vunpack.c.2.s8 %v680_v53  ;;  %v6208_v22 = vpack.c.bf16 %v2424_v9, %v2416_v3 }
 0x31b   : > { %6475 = vmatpush1.bf16.msra.mxu1 %v6474_v8  ;;  %v2415_v24 = vcvt.s32.f32 %v1335_v12  ;;  %v2423_v25 = vcvt.s32.f32 %v1343_v14  ;;  %v1352_v26 = vunpack.c.1.s8 %v682_v7  ;;  %v1360_v32 = vunpack.c.1.s8 %v684_v15 }
 0x31c   : > { %v6476_v29 = vpack.c.bf16 %v2426_v4, %v2418_v16  ;;  %v2417_v30 = vcvt.s32.f32 %v1337_v19  ;;  %v2425_v31 = vcvt.s32.f32 %v1345_v21  ;;  %6209 = vmatprep.subr.bf16.mxu0 %v6208_v22  ;;  %v1354_v33 = vunpack.c.3.s8 %v682_v7  ;;  %v694_v4 = vld [vmem:[%s7537_s12 + $0x488] sm:$0xff] }
 0x31d   : > { %4240 = vmatmul.mubr.f32.vlgmr.msra.gmra.mrb[2].mxu0 %v7704_v23  ;;  %v6210_v18 = vpack.c.bf16 %v2423_v25, %v2415_v24  ;;  %v2432_v27 = vcvt.s32.f32 %v1352_v26  ;;  %v1362_v34 = vunpack.c.3.s8 %v684_v15  ;;  %v2440_v37 = vcvt.s32.f32 %v1360_v32  ;;  %v696_v25 = vld [vmem:[%s7537_s12 + $0x498] sm:$0xff] }
 0x31e   : > { %6477 = vmatprep.subr.bf16.mxu1 %v6476_v29  ;;  %4595 = vmatmul.mubr.f32.vlgmr.msra.gmra.mrb[2].mxu1 %v7704_v23  ;;  %v6478_v35 = vpack.c.bf16 %v2425_v31, %v2417_v30  ;;  %v1351_v38 = vunpack.c.0.s8 %v682_v7  ;;  %v1359_v28 = vunpack.c.0.s8 %v684_v15  ;;  %v2434_v41 = vcvt.s32.f32 %v1354_v33 }
 0x31f   : > { %6211 = vmatpush1.bf16.msra.mxu0 %v6210_v18  ;;  %v2442_v42 = vcvt.s32.f32 %v1362_v34  ;;  %v1353_v44 = vunpack.c.2.s8 %v682_v7  ;;  %v1361_v43 = vunpack.c.2.s8 %v684_v15  ;;  %4310 = vmatprep.mubr.f32.mxu0 %v7754_v36  ;;  %v6212_v45 = vpack.c.bf16 %v2440_v37, %v2432_v27 }
 0x320   : > { %6479 = vmatpush1.bf16.msra.mxu1 %v6478_v35  ;;  %v2431_v46 = vcvt.s32.f32 %v1351_v38  ;;  %v2439_v47 = vcvt.s32.f32 %v1359_v28  ;;  %v1368_v48 = vunpack.c.1.s8 %v686_v40  ;;  %4665 = vmatprep.mubr.f32.mxu1 %v7754_v36  ;;  %v1376_v51 = vunpack.c.1.s8 %v688_v39 }
 0x321   : > { %v6480_v23 = vpack.c.bf16 %v2442_v42, %v2434_v41  ;;  %v2433_v49 = vcvt.s32.f32 %v1353_v44  ;;  %v2441_v50 = vcvt.s32.f32 %v1361_v43  ;;  %6213 = vmatprep.subr.bf16.mxu0 %v6212_v45  ;;  %v1370_v17 = vunpack.c.3.s8 %v686_v40  ;;  %v698_v42 = vld [vmem:[%s7537_s12 + $0x4a8] sm:$0xff] }
 0x322   : > { %v6214_v52 = vpack.c.bf16 %v2439_v47, %v2431_v46  ;;  %v2448_v53 = vcvt.s32.f32 %v1368_v48  ;;  %v1378_v54 = vunpack.c.3.s8 %v688_v39  ;;  %v2456_v57 = vcvt.s32.f32 %v1376_v51  ;;  %v700_v47 = vld [vmem:[%s7537_s12 + $0x4b8] sm:$0xff] }
 0x323   : > { %6481 = vmatprep.subr.bf16.mxu1 %v6480_v23  ;;  %v6482_v56 = vpack.c.bf16 %v2441_v50, %v2433_v49  ;;  %v1367_v58 = vunpack.c.0.s8 %v686_v40  ;;  %v1375_v59 = vunpack.c.0.s8 %v688_v39  ;;  %v2450_v61 = vcvt.s32.f32 %v1370_v17 }
 0x324   : > { %6215 = vmatpush1.bf16.msra.mxu0 %v6214_v52  ;;  %v2458_v36 = vcvt.s32.f32 %v1378_v54  ;;  %v1369_v62 = vunpack.c.2.s8 %v686_v40  ;;  %v1377_v63 = vunpack.c.2.s8 %v688_v39  ;;  %v6216_v0 = vpack.c.bf16 %v2456_v57, %v2448_v53 }
 0x325   : > { %6483 = vmatpush1.bf16.msra.mxu1 %v6482_v56  ;;  %v2447_v2 = vcvt.s32.f32 %v1367_v58  ;;  %v2455_v3 = vcvt.s32.f32 %v1375_v59  ;;  %v1384_v5 = vunpack.c.1.s8 %v690_v55  ;;  %v1392_v9 = vunpack.c.1.s8 %v692_v60 }
 0x326   : > { %v6484_v6 = vpack.c.bf16 %v2458_v36, %v2450_v61  ;;  %v2449_v7 = vcvt.s32.f32 %v1369_v62  ;;  %v2457_v8 = vcvt.s32.f32 %v1377_v63  ;;  %6217 = vmatprep.subr.bf16.mxu0 %v6216_v0  ;;  %v1386_v15 = vunpack.c.3.s8 %v690_v55  ;;  %v702_v36 = vld [vmem:[%s7537_s12 + $0x4c8] sm:$0xff] }
 0x327   : > { %v6218_v12 = vpack.c.bf16 %v2455_v3, %v2447_v2  ;;  %v2464_v14 = vcvt.s32.f32 %v1384_v5  ;;  %v1394_v16 = vunpack.c.3.s8 %v692_v60  ;;  %v2472_v21 = vcvt.s32.f32 %v1392_v9  ;;  %v704_v3 = vld [vmem:[%s7537_s12 + $0x4d8] sm:$0xff] }
 0x328   : > { %6485 = vmatprep.subr.bf16.mxu1 %v6484_v6  ;;  %v6486_v19 = vpack.c.bf16 %v2457_v8, %v2449_v7  ;;  %v1383_v22 = vunpack.c.0.s8 %v690_v55  ;;  %v1391_v24 = vunpack.c.0.s8 %v692_v60  ;;  %v2466_v26 = vcvt.s32.f32 %v1386_v15 }
 0x329   : > { %6219 = vmatpush1.bf16.msra.mxu0 %v6218_v12  ;;  %v2474_v29 = vcvt.s32.f32 %v1394_v16  ;;  %v1385_v30 = vunpack.c.2.s8 %v690_v55  ;;  %v1393_v31 = vunpack.c.2.s8 %v692_v60  ;;  %v6220_v32 = vpack.c.bf16 %v2472_v21, %v2464_v14 }
 0x32a   : > { %6487 = vmatpush1.bf16.msra.mxu1 %v6486_v19  ;;  %v2463_v18 = vcvt.s32.f32 %v1383_v22  ;;  %v2471_v27 = vcvt.s32.f32 %v1391_v24  ;;  %v1400_v33 = vunpack.c.1.s8 %v694_v4  ;;  %v1408_v37 = vunpack.c.1.s8 %v696_v25 }
 0x32b   : > { %v6488_v34 = vpack.c.bf16 %v2474_v29, %v2466_v26  ;;  %v2465_v40 = vcvt.s32.f32 %v1385_v30  ;;  %v2473_v35 = vcvt.s32.f32 %v1393_v31  ;;  %6221 = vmatprep.subr.bf16.mxu0 %v6220_v32  ;;  %v1402_v39 = vunpack.c.3.s8 %v694_v4  ;;  %v706_v29 = vld [vmem:[%s7537_s12 + $0x4e8] sm:$0xff] }
 0x32c   : > { %v6222_v38 = vpack.c.bf16 %v2471_v27, %v2463_v18  ;;  %v2480_v28 = vcvt.s32.f32 %v1400_v33  ;;  %v1410_v41 = vunpack.c.3.s8 %v696_v25  ;;  %v2488_v43 = vcvt.s32.f32 %v1408_v37  ;;  %v708_v27 = vld [vmem:[%s7537_s12 + $0x4f8] sm:$0xff] }
 0x32d   : > { %6489 = vmatprep.subr.bf16.mxu1 %v6488_v34  ;;  %v6490_v44 = vpack.c.bf16 %v2473_v35, %v2465_v40  ;;  %v1399_v45 = vunpack.c.0.s8 %v694_v4  ;;  %v1407_v46 = vunpack.c.0.s8 %v696_v25  ;;  %v2482_v48 = vcvt.s32.f32 %v1402_v39 }
 0x32e   : > { %6223 = vmatpush1.bf16.msra.mxu0 %v6222_v38  ;;  %v2490_v23 = vcvt.s32.f32 %v1410_v41  ;;  %v1401_v49 = vunpack.c.2.s8 %v694_v4  ;;  %v1409_v50 = vunpack.c.2.s8 %v696_v25  ;;  %v6224_v51 = vpack.c.bf16 %v2488_v43, %v2480_v28 }
 0x32f   : > { %6491 = vmatpush1.bf16.msra.mxu1 %v6490_v44  ;;  %v2479_v52 = vcvt.s32.f32 %v1399_v45  ;;  %v2487_v53 = vcvt.s32.f32 %v1407_v46  ;;  %v1416_v17 = vunpack.c.1.s8 %v698_v42  ;;  %v1424_v57 = vunpack.c.1.s8 %v700_v47 }
 0x330   : > { %v6492_v54 = vpack.c.bf16 %v2490_v23, %v2482_v48  ;;  %v2481_v55 = vcvt.s32.f32 %v1401_v49  ;;  %v2489_v56 = vcvt.s32.f32 %v1409_v50  ;;  %6225 = vmatprep.subr.bf16.mxu0 %v6224_v51  ;;  %v1418_v60 = vunpack.c.3.s8 %v698_v42  ;;  %v710_v23 = vld [vmem:[%s7537_s12 + $0x508] sm:$0xff] }
 0x331   : > { %v6226_v58 = vpack.c.bf16 %v2487_v53, %v2479_v52  ;;  %v2496_v59 = vcvt.s32.f32 %v1416_v17  ;;  %v1426_v61 = vunpack.c.3.s8 %v700_v47  ;;  %v2504_v63 = vcvt.s32.f32 %v1424_v57  ;;  %v712_v53 = vld [vmem:[%s7537_s12 + $0x518] sm:$0xff] }
 0x332   : > { %6493 = vmatprep.subr.bf16.mxu1 %v6492_v54  ;;  %v6494_v62 = vpack.c.bf16 %v2489_v56, %v2481_v55  ;;  %v1415_v0 = vunpack.c.0.s8 %v698_v42  ;;  %v1423_v2 = vunpack.c.0.s8 %v700_v47  ;;  %v2498_v5 = vcvt.s32.f32 %v1418_v60 }
 0x333   : > { %6227 = vmatpush1.bf16.msra.mxu0 %v6226_v58  ;;  %v2506_v6 = vcvt.s32.f32 %v1426_v61  ;;  %v1417_v7 = vunpack.c.2.s8 %v698_v42  ;;  %v1425_v8 = vunpack.c.2.s8 %v700_v47  ;;  %v6228_v9 = vpack.c.bf16 %v2504_v63, %v2496_v59 }
 0x334   : > { %6495 = vmatpush1.bf16.msra.mxu1 %v6494_v62  ;;  %v2495_v12 = vcvt.s32.f32 %v1415_v0  ;;  %v2503_v14 = vcvt.s32.f32 %v1423_v2  ;;  %v1432_v15 = vunpack.c.1.s8 %v702_v36  ;;  %v1440_v21 = vunpack.c.1.s8 %v704_v3 }
 0x335   : > { %v6496_v16 = vpack.c.bf16 %v2506_v6, %v2498_v5  ;;  %v2497_v4 = vcvt.s32.f32 %v1417_v7  ;;  %v2505_v19 = vcvt.s32.f32 %v1425_v8  ;;  %6229 = vmatprep.subr.bf16.mxu0 %v6228_v9  ;;  %v1434_v25 = vunpack.c.3.s8 %v702_v36  ;;  %v714_v6 = vld [vmem:[%s7537_s12 + $0x528] sm:$0xff] }
 0x336   : > { %v6230_v22 = vpack.c.bf16 %v2503_v14, %v2495_v12  ;;  %v2512_v24 = vcvt.s32.f32 %v1432_v15  ;;  %v1442_v26 = vunpack.c.3.s8 %v704_v3  ;;  %v2520_v31 = vcvt.s32.f32 %v1440_v21  ;;  %v716_v14 = vld [vmem:[%s7537_s12 + $0x538] sm:$0xff] }
 0x337   : > { %6497 = vmatprep.subr.bf16.mxu1 %v6496_v16  ;;  %v6498_v30 = vpack.c.bf16 %v2505_v19, %v2497_v4  ;;  %v1431_v32 = vunpack.c.0.s8 %v702_v36  ;;  %v1439_v18 = vunpack.c.0.s8 %v704_v3  ;;  %v2514_v33 = vcvt.s32.f32 %v1434_v25 }
 0x338   : > { %6231 = vmatpush1.bf16.msra.mxu0 %v6230_v22  ;;  %v2522_v34 = vcvt.s32.f32 %v1442_v26  ;;  %v1433_v40 = vunpack.c.2.s8 %v702_v36  ;;  %v1441_v35 = vunpack.c.2.s8 %v704_v3  ;;  %v6232_v37 = vpack.c.bf16 %v2520_v31, %v2512_v24 }
 0x339   : > { %6499 = vmatpush1.bf16.msra.mxu1 %v6498_v30  ;;  %v2511_v38 = vcvt.s32.f32 %v1431_v32  ;;  %v2519_v28 = vcvt.s32.f32 %v1439_v18  ;;  %v1448_v39 = vunpack.c.1.s8 %v706_v29  ;;  %v1456_v43 = vunpack.c.1.s8 %v708_v27 }
 0x33a   : > { %v6500_v41 = vpack.c.bf16 %v2522_v34, %v2514_v33  ;;  %v2513_v42 = vcvt.s32.f32 %v1433_v40  ;;  %v2521_v44 = vcvt.s32.f32 %v1441_v35  ;;  %6233 = vmatprep.subr.bf16.mxu0 %v6232_v37  ;;  %v1450_v47 = vunpack.c.3.s8 %v706_v29  ;;  %v718_v34 = vld [vmem:[%s7537_s12 + $0x548] sm:$0xff] }
 0x33b   : > { %v6234_v45 = vpack.c.bf16 %v2519_v28, %v2511_v38  ;;  %v2528_v46 = vcvt.s32.f32 %v1448_v39  ;;  %v1458_v48 = vunpack.c.3.s8 %v708_v27  ;;  %v2536_v50 = vcvt.s32.f32 %v1456_v43  ;;  %v720_v28 = vld [vmem:[%s7537_s12 + $0x558] sm:$0xff] }
 0x33c   : > { %6501 = vmatprep.subr.bf16.mxu1 %v6500_v41  ;;  %v6502_v49 = vpack.c.bf16 %v2521_v44, %v2513_v42  ;;  %v1447_v51 = vunpack.c.0.s8 %v706_v29  ;;  %v1455_v52 = vunpack.c.0.s8 %v708_v27  ;;  %v2530_v17 = vcvt.s32.f32 %v1450_v47 }
 0x33d   : > { %6235 = vmatpush1.bf16.msra.mxu0 %v6234_v45  ;;  %v2538_v54 = vcvt.s32.f32 %v1458_v48  ;;  %v1449_v55 = vunpack.c.2.s8 %v706_v29  ;;  %v1457_v56 = vunpack.c.2.s8 %v708_v27  ;;  %v6236_v57 = vpack.c.bf16 %v2536_v50, %v2528_v46 }
 0x33e   : > { %6503 = vmatpush1.bf16.msra.mxu1 %v6502_v49  ;;  %v2527_v58 = vcvt.s32.f32 %v1447_v51  ;;  %v2535_v59 = vcvt.s32.f32 %v1455_v52  ;;  %v1464_v60 = vunpack.c.1.s8 %v710_v23  ;;  %v1472_v63 = vunpack.c.1.s8 %v712_v53 }
 0x33f   : > { %v6504_v61 = vpack.c.bf16 %v2538_v54, %v2530_v17  ;;  %v2529_v36 = vcvt.s32.f32 %v1449_v55  ;;  %v2537_v62 = vcvt.s32.f32 %v1457_v56  ;;  %6237 = vmatprep.subr.bf16.mxu0 %v6236_v57  ;;  %v1466_v3 = vunpack.c.3.s8 %v710_v23  ;;  %v722_v54 = vld [vmem:[%s7537_s12 + $0x568] sm:$0xff] }
 0x340   : > { %v6238_v0 = vpack.c.bf16 %v2535_v59, %v2527_v58  ;;  %v2544_v2 = vcvt.s32.f32 %v1464_v60  ;;  %v1474_v5 = vunpack.c.3.s8 %v712_v53  ;;  %v2552_v8 = vcvt.s32.f32 %v1472_v63  ;;  %v724_v59 = vld [vmem:[%s7537_s12 + $0x578] sm:$0xff] }
 0x341   : > { %6505 = vmatprep.subr.bf16.mxu1 %v6504_v61  ;;  %v6506_v7 = vpack.c.bf16 %v2537_v62, %v2529_v36  ;;  %v1463_v9 = vunpack.c.0.s8 %v710_v23  ;;  %v1471_v12 = vunpack.c.0.s8 %v712_v53  ;;  %v2546_v15 = vcvt.s32.f32 %v1466_v3 }
 0x342   : > { %6239 = vmatpush1.bf16.msra.mxu0 %v6238_v0  ;;  %v2554_v16 = vcvt.s32.f32 %v1474_v5  ;;  %v1465_v4 = vunpack.c.2.s8 %v710_v23  ;;  %v1473_v19 = vunpack.c.2.s8 %v712_v53  ;;  %v6240_v21 = vpack.c.bf16 %v2552_v8, %v2544_v2 }
 0x343   : > { %6507 = vmatpush1.bf16.msra.mxu1 %v6506_v7  ;;  %v2543_v22 = vcvt.s32.f32 %v1463_v9  ;;  %v2551_v24 = vcvt.s32.f32 %v1471_v12  ;;  %v1480_v25 = vunpack.c.1.s8 %v714_v6  ;;  %v1488_v31 = vunpack.c.1.s8 %v716_v14 }
 0x344   : > { %v6508_v26 = vpack.c.bf16 %v2554_v16, %v2546_v15  ;;  %v2545_v29 = vcvt.s32.f32 %v1465_v4  ;;  %v2553_v30 = vcvt.s32.f32 %v1473_v19  ;;  %6241 = vmatprep.subr.bf16.mxu0 %v6240_v21  ;;  %v1482_v27 = vunpack.c.3.s8 %v714_v6  ;;  %v726_v16 = vld [vmem:[%s7537_s12 + $0x588] sm:$0xff] }
 0x345   : > { %v6242_v32 = vpack.c.bf16 %v2551_v24, %v2543_v22  ;;  %v2560_v18 = vcvt.s32.f32 %v1480_v25  ;;  %v1490_v33 = vunpack.c.3.s8 %v716_v14  ;;  %v2568_v35 = vcvt.s32.f32 %v1488_v31  ;;  %v728_v24 = vld [vmem:[%s7537_s12 + $0x598] sm:$0xff] }
 0x346   : > { %6509 = vmatprep.subr.bf16.mxu1 %v6508_v26  ;;  %v6510_v40 = vpack.c.bf16 %v2553_v30, %v2545_v29  ;;  %v1479_v37 = vunpack.c.0.s8 %v714_v6  ;;  %v1487_v38 = vunpack.c.0.s8 %v716_v14  ;;  %v2562_v39 = vcvt.s32.f32 %v1482_v27 }
 0x347   : > { %6243 = vmatpush1.bf16.msra.mxu0 %v6242_v32  ;;  %v2570_v41 = vcvt.s32.f32 %v1490_v33  ;;  %v1481_v42 = vunpack.c.2.s8 %v714_v6  ;;  %v1489_v44 = vunpack.c.2.s8 %v716_v14  ;;  %v6244_v43 = vpack.c.bf16 %v2568_v35, %v2560_v18 }
 0x348   : > { %6511 = vmatpush1.bf16.msra.mxu1 %v6510_v40  ;;  %v2559_v45 = vcvt.s32.f32 %v1479_v37  ;;  %v2567_v46 = vcvt.s32.f32 %v1487_v38  ;;  %v1496_v47 = vunpack.c.1.s8 %v718_v34  ;;  %v1504_v50 = vunpack.c.1.s8 %v720_v28 }
 0x349   : > { %v6512_v48 = vpack.c.bf16 %v2570_v41, %v2562_v39  ;;  %v2561_v23 = vcvt.s32.f32 %v1481_v42  ;;  %v2569_v49 = vcvt.s32.f32 %v1489_v44  ;;  %6245 = vmatprep.subr.bf16.mxu0 %v6244_v43  ;;  %v1498_v53 = vunpack.c.3.s8 %v718_v34 }
 0x34a   : > { %v6246_v51 = vpack.c.bf16 %v2567_v46, %v2559_v45  ;;  %v2576_v52 = vcvt.s32.f32 %v1496_v47  ;;  %v1506_v17 = vunpack.c.3.s8 %v720_v28  ;;  %v2584_v56 = vcvt.s32.f32 %v1504_v50  ;;  %v730_v45 = vld [vmem:[%s7537_s12 + $0x5a8] sm:$0xff] }
 0x34b   : > { %6513 = vmatprep.subr.bf16.mxu1 %v6512_v48  ;;  %v6514_v55 = vpack.c.bf16 %v2569_v49, %v2561_v23  ;;  %v1495_v57 = vunpack.c.0.s8 %v718_v34  ;;  %v1503_v58 = vunpack.c.0.s8 %v720_v28  ;;  %v2578_v60 = vcvt.s32.f32 %v1498_v53  ;;  %v732_v49 = vld [vmem:[%s7537_s12 + $0x5b8] sm:$0xff] }
 0x34c   : > { %6247 = vmatpush1.bf16.msra.mxu0 %v6246_v51  ;;  %v2586_v61 = vcvt.s32.f32 %v1506_v17  ;;  %v1497_v36 = vunpack.c.2.s8 %v718_v34  ;;  %v1505_v62 = vunpack.c.2.s8 %v720_v28  ;;  %v6248_v63 = vpack.c.bf16 %v2584_v56, %v2576_v52 }
 0x34d   : > { %6515 = vmatpush1.bf16.msra.mxu1 %v6514_v55  ;;  %v2575_v0 = vcvt.s32.f32 %v1495_v57  ;;  %v2583_v2 = vcvt.s32.f32 %v1503_v58  ;;  %v1512_v3 = vunpack.c.1.s8 %v722_v54  ;;  %v1520_v8 = vunpack.c.1.s8 %v724_v59 }
 0x34e   : > { %v6516_v5 = vpack.c.bf16 %v2586_v61, %v2578_v60  ;;  %v2577_v6 = vcvt.s32.f32 %v1497_v36  ;;  %v2585_v7 = vcvt.s32.f32 %v1505_v62  ;;  %6249 = vmatprep.subr.bf16.mxu0 %v6248_v63  ;;  %v1514_v14 = vunpack.c.3.s8 %v722_v54 }
 0x34f   : > { %v6250_v9 = vpack.c.bf16 %v2583_v2, %v2575_v0  ;;  %v2592_v12 = vcvt.s32.f32 %v1512_v3  ;;  %v1522_v15 = vunpack.c.3.s8 %v724_v59  ;;  %v2600_v19 = vcvt.s32.f32 %v1520_v8  ;;  %v734_v0 = vld [vmem:[%s7537_s12 + $0x5c8] sm:$0xff] }
 0x350   : > { %6517 = vmatprep.subr.bf16.mxu1 %v6516_v5  ;;  %v6518_v4 = vpack.c.bf16 %v2585_v7, %v2577_v6  ;;  %v1511_v21 = vunpack.c.0.s8 %v722_v54  ;;  %v1519_v22 = vunpack.c.0.s8 %v724_v59  ;;  %v7914_v25 = vpop.f32.mrb[0].mxu0  ;;  %v2594_v26 = vcvt.s32.f32 %v1514_v14  ;;  %v736_v7 = vld [vmem:[%s7537_s12 + $0x5d8] sm:$0xff] }
 0x351   : > { %6251 = vmatpush1.bf16.msra.mxu0 %v6250_v9  ;;  %v2602_v29 = vcvt.s32.f32 %v1522_v15  ;;  %v1513_v30 = vunpack.c.2.s8 %v722_v54  ;;  %v1521_v31 = vunpack.c.2.s8 %v724_v59  ;;  %v7916_v32 = vpop.f32.mrb[0].mxu1  ;;  %v7918_v18 = vpop.f32.mrb[1].mxu0  ;;  %v6252_v27 = vpack.c.bf16 %v2600_v19, %v2592_v12 }
 0x352   : > { %6519 = vmatpush1.bf16.msra.mxu1 %v6518_v4  ;;  %v2591_v33 = vcvt.s32.f32 %v1511_v21  ;;  %v2599_v34 = vcvt.s32.f32 %v1519_v22  ;;  %v1528_v40 = vunpack.c.1.s8 %v726_v16  ;;  %v7920_v35 = vpop.f32.mrb[1].mxu1  ;;  %v1536_v39 = vunpack.c.1.s8 %v728_v24 }
 0x353   : > { %v6520_v37 = vpack.c.bf16 %v2602_v29, %v2594_v26  ;;  %v2593_v38 = vcvt.s32.f32 %v1513_v30  ;;  %v2601_v28 = vcvt.s32.f32 %v1521_v31  ;;  %6253 = vmatprep.subr.bf16.mxu0 %v6252_v27  ;;  %v1530_v44 = vunpack.c.3.s8 %v726_v16 }
 0x354   : > { %v6254_v41 = vpack.c.bf16 %v2599_v34, %v2591_v33  ;;  %v2608_v42 = vcvt.s32.f32 %v1528_v40  ;;  %v1538_v43 = vunpack.c.3.s8 %v728_v24  ;;  %v2616_v47 = vcvt.s32.f32 %v1536_v39  ;;  %v738_v33 = vld [vmem:[%s7537_s12 + $0x5e8] sm:$0xff] }
 0x355   : > { %6521 = vmatprep.subr.bf16.mxu1 %v6520_v37  ;;  %v6522_v46 = vpack.c.bf16 %v2601_v28, %v2593_v38  ;;  %v1527_v48 = vunpack.c.0.s8 %v726_v16  ;;  %v1535_v23 = vunpack.c.0.s8 %v728_v24  ;;  %v2610_v50 = vcvt.s32.f32 %v1530_v44  ;;  %v740_v28 = vld [vmem:[%s7537_s12 + $0x5f8] sm:$0xff] }
 0x356   : > { %6255 = vmatpush1.bf16.msra.mxu0 %v6254_v41  ;;  %v2618_v51 = vcvt.s32.f32 %v1538_v43  ;;  %v1529_v52 = vunpack.c.2.s8 %v726_v16  ;;  %v1537_v53 = vunpack.c.2.s8 %v728_v24  ;;  %v6256_v17 = vpack.c.bf16 %v2616_v47, %v2608_v42 }
 0x357   : > { %6523 = vmatpush1.bf16.msra.mxu1 %v6522_v46  ;;  %v2607_v54 = vcvt.s32.f32 %v1527_v48  ;;  %v2615_v55 = vcvt.s32.f32 %v1535_v23  ;;  %v1544_v56 = vunpack.c.1.s8 %v730_v45  ;;  %v1552_v60 = vunpack.c.1.s8 %v732_v49 }
 0x358   : > { %v6524_v57 = vpack.c.bf16 %v2618_v51, %v2610_v50  ;;  %v2609_v58 = vcvt.s32.f32 %v1529_v52  ;;  %v2617_v59 = vcvt.s32.f32 %v1537_v53  ;;  %6257 = vmatprep.subr.bf16.mxu0 %v6256_v17  ;;  %v1546_v62 = vunpack.c.3.s8 %v730_v45 }
 0x359   : > { %v6258_v61 = vpack.c.bf16 %v2615_v55, %v2607_v54  ;;  %v2624_v36 = vcvt.s32.f32 %v1544_v56  ;;  %v1554_v63 = vunpack.c.3.s8 %v732_v49  ;;  %v2632_v3 = vcvt.s32.f32 %v1552_v60  ;;  %v742_v54 = vld [vmem:[%s7537_s12 + $0x608] sm:$0xff] }
 0x35a   : > { %6525 = vmatprep.subr.bf16.mxu1 %v6524_v57  ;;  %v6526_v2 = vpack.c.bf16 %v2617_v59, %v2609_v58  ;;  %v1543_v5 = vunpack.c.0.s8 %v730_v45  ;;  %v1551_v6 = vunpack.c.0.s8 %v732_v49  ;;  %v2626_v8 = vcvt.s32.f32 %v1546_v62  ;;  %v744_v59 = vld [vmem:[%s7537_s12 + $0x618] sm:$0xff] }
 0x35b   : > { %6259 = vmatpush1.bf16.msra.mxu0 %v6258_v61  ;;  %v2634_v9 = vcvt.s32.f32 %v1554_v63  ;;  %v1545_v12 = vunpack.c.2.s8 %v730_v45  ;;  %v1553_v14 = vunpack.c.2.s8 %v732_v49  ;;  %v6260_v15 = vpack.c.bf16 %v2632_v3, %v2624_v36 }
 0x35c   : > { %6527 = vmatpush1.bf16.msra.mxu1 %v6526_v2  ;;  %v2623_v16 = vcvt.s32.f32 %v1543_v5  ;;  %v2631_v4 = vcvt.s32.f32 %v1551_v6  ;;  %v1560_v19 = vunpack.c.1.s8 %v734_v0  ;;  %v1568_v26 = vunpack.c.1.s8 %v736_v7 }
 0x35d   : > { %v6528_v21 = vpack.c.bf16 %v2634_v9, %v2626_v8  ;;  %v2625_v22 = vcvt.s32.f32 %v1545_v12  ;;  %v2633_v24 = vcvt.s32.f32 %v1553_v14  ;;  %6261 = vmatprep.subr.bf16.mxu0 %v6260_v15  ;;  %v1562_v31 = vunpack.c.3.s8 %v734_v0 }
 0x35e   : > { %v6262_v29 = vpack.c.bf16 %v2631_v4, %v2623_v16  ;;  %v2640_v30 = vcvt.s32.f32 %v1560_v19  ;;  %v1570_v27 = vunpack.c.3.s8 %v736_v7  ;;  %v2648_v40 = vcvt.s32.f32 %v1568_v26  ;;  %v746_v16 = vld [vmem:[%s7537_s12 + $0x628] sm:$0xff] }
 0x35f   : > { %6529 = vmatprep.subr.bf16.mxu1 %v6528_v21  ;;  %v6530_v34 = vpack.c.bf16 %v2633_v24, %v2625_v22  ;;  %v1559_v37 = vunpack.c.0.s8 %v734_v0  ;;  %v1567_v38 = vunpack.c.0.s8 %v736_v7  ;;  %v2642_v39 = vcvt.s32.f32 %v1562_v31  ;;  %v748_v24 = vld [vmem:[%s7537_s12 + $0x638] sm:$0xff] }
 0x360   : > { %6263 = vmatpush1.bf16.msra.mxu0 %v6262_v29  ;;  %v2650_v41 = vcvt.s32.f32 %v1570_v27  ;;  %v1561_v42 = vunpack.c.2.s8 %v734_v0  ;;  %v1569_v44 = vunpack.c.2.s8 %v736_v7  ;;  %v6264_v43 = vpack.c.bf16 %v2648_v40, %v2640_v30 }
 0x361   : > { %6531 = vmatpush1.bf16.msra.mxu1 %v6530_v34  ;;  %v2639_v45 = vcvt.s32.f32 %v1559_v37  ;;  %v2647_v46 = vcvt.s32.f32 %v1567_v38  ;;  %v1576_v47 = vunpack.c.1.s8 %v738_v33  ;;  %v1584_v50 = vunpack.c.1.s8 %v740_v28 }
 0x362   : > { %v6532_v48 = vpack.c.bf16 %v2650_v41, %v2642_v39  ;;  %v2641_v23 = vcvt.s32.f32 %v1561_v42  ;;  %v2649_v49 = vcvt.s32.f32 %v1569_v44  ;;  %6265 = vmatprep.subr.bf16.mxu0 %v6264_v43  ;;  %v1578_v53 = vunpack.c.3.s8 %v738_v33 }
 0x363   : > { %v6266_v51 = vpack.c.bf16 %v2647_v46, %v2639_v45  ;;  %v2656_v52 = vcvt.s32.f32 %v1576_v47  ;;  %v1586_v17 = vunpack.c.3.s8 %v740_v28  ;;  %v2664_v56 = vcvt.s32.f32 %v1584_v50  ;;  %v750_v45 = vld [vmem:[%s7537_s12 + $0x648] sm:$0xff] }
 0x364   : > { %6533 = vmatprep.subr.bf16.mxu1 %v6532_v48  ;;  %v6534_v55 = vpack.c.bf16 %v2649_v49, %v2641_v23  ;;  %v1575_v57 = vunpack.c.0.s8 %v738_v33  ;;  %v1583_v58 = vunpack.c.0.s8 %v740_v28  ;;  %v2658_v60 = vcvt.s32.f32 %v1578_v53  ;;  %v752_v49 = vld [vmem:[%s7537_s12 + $0x658] sm:$0xff] }
 0x365   : > { %6267 = vmatpush1.bf16.msra.mxu0 %v6266_v51  ;;  %v2666_v61 = vcvt.s32.f32 %v1586_v17  ;;  %v1577_v36 = vunpack.c.2.s8 %v738_v33  ;;  %v1585_v62 = vunpack.c.2.s8 %v740_v28  ;;  %v6268_v63 = vpack.c.bf16 %v2664_v56, %v2656_v52 }
 0x366   : > { %6535 = vmatpush1.bf16.msra.mxu1 %v6534_v55  ;;  %v2655_v0 = vcvt.s32.f32 %v1575_v57  ;;  %v2663_v2 = vcvt.s32.f32 %v1583_v58  ;;  %v1592_v3 = vunpack.c.1.s8 %v742_v54  ;;  %v1600_v8 = vunpack.c.1.s8 %v744_v59 }
 0x367   : > { %v6536_v5 = vpack.c.bf16 %v2666_v61, %v2658_v60  ;;  %v2657_v6 = vcvt.s32.f32 %v1577_v36  ;;  %v2665_v7 = vcvt.s32.f32 %v1585_v62  ;;  %6269 = vmatprep.subr.bf16.mxu0 %v6268_v63  ;;  %v1594_v14 = vunpack.c.3.s8 %v742_v54  ;;  %v754_v63 = vld [vmem:[%s7537_s12 + $0x668] sm:$0xff] }
 0x368   : > { %v6270_v9 = vpack.c.bf16 %v2663_v2, %v2655_v0  ;;  %v2672_v12 = vcvt.s32.f32 %v1592_v3  ;;  %v1602_v15 = vunpack.c.3.s8 %v744_v59  ;;  %v2680_v19 = vcvt.s32.f32 %v1600_v8 }
 0x369   : > { %6537 = vmatprep.subr.bf16.mxu1 %v6536_v5  ;;  %v6538_v4 = vpack.c.bf16 %v2665_v7, %v2657_v6  ;;  %v1591_v21 = vunpack.c.0.s8 %v742_v54  ;;  %v1599_v22 = vunpack.c.0.s8 %v744_v59  ;;  %v2674_v26 = vcvt.s32.f32 %v1594_v14  ;;  %v756_v6 = vld [vmem:[%s7537_s12 + $0x678] sm:$0xff] }
 0x36a   : > { %6271 = vmatpush1.bf16.msra.mxu0 %v6270_v9  ;;  %v2682_v29 = vcvt.s32.f32 %v1602_v15  ;;  %v1593_v30 = vunpack.c.2.s8 %v742_v54  ;;  %v1601_v31 = vunpack.c.2.s8 %v744_v59  ;;  %v6272_v27 = vpack.c.bf16 %v2680_v19, %v2672_v12 }
 0x36b   : > { %6539 = vmatpush1.bf16.msra.mxu1 %v6538_v4  ;;  %v2671_v33 = vcvt.s32.f32 %v1591_v21  ;;  %v2679_v34 = vcvt.s32.f32 %v1599_v22  ;;  %v1608_v40 = vunpack.c.1.s8 %v746_v16  ;;  %v1616_v39 = vunpack.c.1.s8 %v748_v24 }
 0x36c   : > { %v6540_v37 = vpack.c.bf16 %v2682_v29, %v2674_v26  ;;  %v2673_v38 = vcvt.s32.f32 %v1593_v30  ;;  %v2681_v28 = vcvt.s32.f32 %v1601_v31  ;;  %6273 = vmatprep.subr.bf16.mxu0 %v6272_v27  ;;  %v1610_v44 = vunpack.c.3.s8 %v746_v16  ;;  %v758_v31 = vld [vmem:[%s7537_s12 + $0x688] sm:$0xff] }
 0x36d   : > { %4311 = vmatmul.mubr.f32.vlgmr.msra.gmra.mrb[2].mxu0 %v7750_v20  ;;  %v6274_v41 = vpack.c.bf16 %v2679_v34, %v2671_v33  ;;  %v2688_v42 = vcvt.s32.f32 %v1608_v40  ;;  %v1618_v43 = vunpack.c.3.s8 %v748_v24  ;;  %v2696_v47 = vcvt.s32.f32 %v1616_v39 }
 0x36e   : > { %6541 = vmatprep.subr.bf16.mxu1 %v6540_v37  ;;  %4666 = vmatmul.mubr.f32.vlgmr.msra.gmra.mrb[2].mxu1 %v7750_v20  ;;  %v6542_v46 = vpack.c.bf16 %v2681_v28, %v2673_v38  ;;  %v1607_v48 = vunpack.c.0.s8 %v746_v16  ;;  %v1615_v23 = vunpack.c.0.s8 %v748_v24  ;;  %v2690_v50 = vcvt.s32.f32 %v1610_v44  ;;  %v760_v37 = vld [vmem:[%s7537_s12 + $0x698] sm:$0xff] }
 0x36f   : > { %6275 = vmatpush1.bf16.msra.mxu0 %v6274_v41  ;;  %v2698_v51 = vcvt.s32.f32 %v1618_v43  ;;  %v1609_v52 = vunpack.c.2.s8 %v746_v16  ;;  %v1617_v53 = vunpack.c.2.s8 %v748_v24  ;;  %4381 = vmatprep.mubr.f32.mxu0 %v7801_v13  ;;  %v6276_v17 = vpack.c.bf16 %v2696_v47, %v2688_v42 }
 0x370   : > { %6543 = vmatpush1.bf16.msra.mxu1 %v6542_v46  ;;  %v2687_v54 = vcvt.s32.f32 %v1607_v48  ;;  %v2695_v55 = vcvt.s32.f32 %v1615_v23  ;;  %v1624_v56 = vunpack.c.1.s8 %v750_v45  ;;  %4736 = vmatprep.mubr.f32.mxu1 %v7801_v13  ;;  %v1632_v59 = vunpack.c.1.s8 %v752_v49 }
 0x371   : > { %v6544_v20 = vpack.c.bf16 %v2698_v51, %v2690_v50  ;;  %v2689_v57 = vcvt.s32.f32 %v1609_v52  ;;  %v2697_v58 = vcvt.s32.f32 %v1617_v53  ;;  %6277 = vmatprep.subr.bf16.mxu0 %v6276_v17  ;;  %v1626_v36 = vunpack.c.3.s8 %v750_v45 }
 0x372   : > { %v6278_v60 = vpack.c.bf16 %v2695_v55, %v2687_v54  ;;  %v2704_v61 = vcvt.s32.f32 %v1624_v56  ;;  %v1634_v62 = vunpack.c.3.s8 %v752_v49  ;;  %v2712_v2 = vcvt.s32.f32 %v1632_v59 }
 0x373   : > { %6545 = vmatprep.subr.bf16.mxu1 %v6544_v20  ;;  %v6546_v0 = vpack.c.bf16 %v2697_v58, %v2689_v57  ;;  %v1623_v3 = vunpack.c.0.s8 %v750_v45  ;;  %v1631_v5 = vunpack.c.0.s8 %v752_v49  ;;  %v2706_v7 = vcvt.s32.f32 %v1626_v36 }
 0x374   : > { %6279 = vmatpush1.bf16.msra.mxu0 %v6278_v60  ;;  %v2714_v13 = vcvt.s32.f32 %v1634_v62  ;;  %v1625_v8 = vunpack.c.2.s8 %v750_v45  ;;  %v1633_v9 = vunpack.c.2.s8 %v752_v49  ;;  %v6280_v12 = vpack.c.bf16 %v2712_v2, %v2704_v61 }
 0x375   : > { %6547 = vmatpush1.bf16.msra.mxu1 %v6546_v0  ;;  %v2703_v14 = vcvt.s32.f32 %v1623_v3  ;;  %v2711_v15 = vcvt.s32.f32 %v1631_v5  ;;  %v1640_v16 = vunpack.c.1.s8 %v754_v63  ;;  %v1648_v22 = vunpack.c.1.s8 %v756_v6  ;;  %v762_v0 = vld [vmem:[%s7537_s12 + $0x6a8] sm:$0xff]  ;;  %v764_v3 = vld [vmem:[%s7537_s12 + $0x6b8] sm:$0xff] }
 0x376   : > { %v6548_v4 = vpack.c.bf16 %v2714_v13, %v2706_v7  ;;  %v2705_v19 = vcvt.s32.f32 %v1625_v8  ;;  %v2713_v21 = vcvt.s32.f32 %v1633_v9  ;;  %6281 = vmatprep.subr.bf16.mxu0 %v6280_v12  ;;  %v1642_v29 = vunpack.c.3.s8 %v754_v63  ;;  %v7946_v7 = vld [vmem:[%s7545_s18] sm:$0xff] }
 0x377   : > { %v6282_v24 = vpack.c.bf16 %v2711_v15, %v2703_v14  ;;  %v2720_v26 = vcvt.s32.f32 %v1640_v16  ;;  %v1650_v30 = vunpack.c.3.s8 %v756_v6  ;;  %v2728_v33 = vcvt.s32.f32 %v1648_v22  ;;  %v7949_v14 = vld [vmem:[%s7547_s21] sm:$0xff] }
 0x378   : > { %6549 = vmatprep.subr.bf16.mxu1 %v6548_v4  ;;  %v6550_v27 = vpack.c.bf16 %v2713_v21, %v2705_v19  ;;  %v1639_v34 = vunpack.c.0.s8 %v754_v63  ;;  %v1647_v40 = vunpack.c.0.s8 %v756_v6  ;;  %v2722_v38 = vcvt.s32.f32 %v1642_v29  ;;  %v766_v22 = vld [vmem:[%s7537_s12 + $0x6c8] sm:$0xff]  ;;  %v768_v29 = vld [vmem:[%s7537_s12 + $0x6d8] sm:$0xff] }
 0x379   : > { %6283 = vmatpush1.bf16.msra.mxu0 %v6282_v24  ;;  %v2730_v28 = vcvt.s32.f32 %v1650_v30  ;;  %v1641_v39 = vunpack.c.2.s8 %v754_v63  ;;  %v1649_v41 = vunpack.c.2.s8 %v756_v6  ;;  %v6284_v42 = vpack.c.bf16 %v2728_v33, %v2720_v26 }
 0x37a   : > { %6551 = vmatpush1.bf16.msra.mxu1 %v6550_v27  ;;  %v2719_v44 = vcvt.s32.f32 %v1639_v34  ;;  %v2727_v43 = vcvt.s32.f32 %v1647_v40  ;;  %v1656_v45 = vunpack.c.1.s8 %v758_v31  ;;  %v1664_v23 = vunpack.c.1.s8 %v760_v37 }
 0x37b   : > { %v6552_v46 = vpack.c.bf16 %v2730_v28, %v2722_v38  ;;  %v2721_v47 = vcvt.s32.f32 %v1641_v39  ;;  %v2729_v48 = vcvt.s32.f32 %v1649_v41  ;;  %6285 = vmatprep.subr.bf16.mxu0 %v6284_v42  ;;  %v1658_v51 = vunpack.c.3.s8 %v758_v31 }
 0x37c   : > { %v6286_v49 = vpack.c.bf16 %v2727_v43, %v2719_v44  ;;  %v2736_v50 = vcvt.s32.f32 %v1656_v45  ;;  %v1666_v52 = vunpack.c.3.s8 %v760_v37  ;;  %v2744_v17 = vcvt.s32.f32 %v1664_v23 }
 0x37d   : > { %6553 = vmatprep.subr.bf16.mxu1 %v6552_v46  ;;  %v6554_v53 = vpack.c.bf16 %v2729_v48, %v2721_v47  ;;  %v1655_v54 = vunpack.c.0.s8 %v758_v31  ;;  %v1663_v55 = vunpack.c.0.s8 %v760_v37  ;;  %v2738_v56 = vcvt.s32.f32 %v1658_v51  ;;  %v770_v47 = vld [vmem:[%s7537_s12 + $0x6e8] sm:$0xff] }
 0x37e   : > { %6287 = vmatpush1.bf16.msra.mxu0 %v6286_v49  ;;  %v2746_v20 = vcvt.s32.f32 %v1666_v52  ;;  %v1657_v57 = vunpack.c.2.s8 %v758_v31  ;;  %v1665_v58 = vunpack.c.2.s8 %v760_v37  ;;  %v6288_v59 = vpack.c.bf16 %v2744_v17, %v2736_v50  ;;  %v772_v50 = vld [vmem:[%s7537_s12 + $0x6f8] sm:$0xff] }
 0x37f   : > { %6555 = vmatpush1.bf16.msra.mxu1 %v6554_v53  ;;  %v2735_v60 = vcvt.s32.f32 %v1655_v54  ;;  %v2743_v61 = vcvt.s32.f32 %v1663_v55  ;;  %v4822_v6 = vsub.s32 1, %v7650_v11  ;;  %v1672_v13 = vunpack.c.1.s8 %v762_v0 }
 0x380   : > { %v6556_v36 = vpack.c.bf16 %v2746_v20, %v2738_v56  ;;  %v2737_v62 = vcvt.s32.f32 %v1657_v57  ;;  %v2745_v63 = vcvt.s32.f32 %v1665_v58  ;;  %6289 = vmatprep.subr.bf16.mxu0 %v6288_v59  ;;  %v1680_v8 = vunpack.c.1.s8 %v764_v3 }
 0x381   : > { %v6290_v2 = vpack.c.bf16 %v2743_v61, %v2735_v60  ;;  %v2752_v9 = vcvt.s32.f32 %v1672_v13  ;;  %v1674_v12 = vunpack.c.3.s8 %v762_v0  ;;  %v4823_v15 = vrot.slane %v7946_v7, %v4822_v6  ;;  %v776_v13 = vld [vmem:[%s7537_s12 + $0x718] sm:$0xff] }
 0x382   : > { %6557 = vmatprep.subr.bf16.mxu1 %v6556_v36  ;;  %v6558_v5 = vpack.c.bf16 %v2745_v63, %v2737_v62  ;;  %v2760_v16 = vcvt.s32.f32 %v1680_v8  ;;  %v1682_v4 = vunpack.c.3.s8 %v764_v3  ;;  %v1671_v21 = vunpack.c.0.s8 %v762_v0 }
 0x383   : > { %6291 = vmatpush1.bf16.msra.mxu0 %v6290_v2  ;;  %v2754_v19 = vcvt.s32.f32 %v1674_v12  ;;  %v7955_v30 = vrot.slane %v7949_v14, %v4822_v6  ;;  %v1679_v31 = vunpack.c.0.s8 %v764_v3  ;;  %v1673_v33 = vunpack.c.2.s8 %v762_v0  ;;  %v774_v0 = vld [vmem:[%s7537_s12 + $0x708] sm:$0xff] }
 0x384   : > { %6559 = vmatpush1.bf16.msra.mxu1 %v6558_v5  ;;  %v6292_v24 = vpack.c.bf16 %v2760_v16, %v2752_v9  ;;  %v2762_v26 = vcvt.s32.f32 %v1682_v4  ;;  %v2751_v27 = vcvt.s32.f32 %v1671_v21  ;;  %v7958_v34 = vmul.f32 %v4823_v15, %v7918_v18 }
 0x385   : > { %v1681_v37 = vunpack.c.2.s8 %v764_v3  ;;  %v1688_v38 = vunpack.c.1.s8 %v766_v22  ;;  %v2759_v28 = vcvt.s32.f32 %v1679_v31  ;;  %v2753_v39 = vcvt.s32.f32 %v1673_v33 }
 0x386   : > { %6293 = vmatprep.subr.bf16.mxu0 %v6292_v24  ;;  %v6560_v40 = vpack.c.bf16 %v2762_v26, %v2754_v19  ;;  %v1696_v41 = vunpack.c.1.s8 %v768_v29  ;;  %v1690_v42 = vunpack.c.3.s8 %v766_v22  ;;  %v1698_v45 = vunpack.c.3.s8 %v768_v29 }
 0x387   : > { %v2761_v44 = vcvt.s32.f32 %v1681_v37  ;;  %v2768_v43 = vcvt.s32.f32 %v1688_v38  ;;  %v1687_v46 = vunpack.c.0.s8 %v766_v22  ;;  %v6294_v48 = vpack.c.bf16 %v2759_v28, %v2751_v27  ;;  %v778_v37 = vld [vmem:[%s7537_s12 + $0x728] sm:$0xff] }
 0x388   : > { %6561 = vmatprep.subr.bf16.mxu1 %v6560_v40  ;;  %v2776_v23 = vcvt.s32.f32 %v1696_v41  ;;  %v2770_v49 = vcvt.s32.f32 %v1690_v42  ;;  %v1695_v18 = vunpack.c.0.s8 %v768_v29  ;;  %v2778_v52 = vcvt.s32.f32 %v1698_v45  ;;  %v780_v42 = vld [vmem:[%s7537_s12 + $0x738] sm:$0xff] }
 0x389   : > { %v6562_v51 = vpack.c.bf16 %v2761_v44, %v2753_v39  ;;  %v2767_v53 = vcvt.s32.f32 %v1687_v46  ;;  %v1689_v17 = vunpack.c.2.s8 %v766_v22  ;;  %6295 = vmatpush1.bf16.msra.mxu0 %v6294_v48  ;;  %v1697_v56 = vunpack.c.2.s8 %v768_v29 }
 0x38a   : > { %v6296_v54 = vpack.c.bf16 %v2776_v23, %v2768_v43  ;;  %v2775_v55 = vcvt.s32.f32 %v1695_v18  ;;  %v1704_v20 = vunpack.c.1.s8 %v770_v47  ;;  %v6564_v57 = vpack.c.bf16 %v2778_v52, %v2770_v49 }
 0x38b   : > { %6563 = vmatpush1.bf16.msra.mxu1 %v6562_v51  ;;  %v2769_v58 = vcvt.s32.f32 %v1689_v17  ;;  %v1712_v59 = vunpack.c.1.s8 %v772_v50  ;;  %v1706_v60 = vunpack.c.3.s8 %v770_v47  ;;  %v2777_v36 = vcvt.s32.f32 %v1697_v56  ;;  %v782_v56 = vld [vmem:[%s7537_s12 + $0x748] sm:$0xff] }
 0x38c   : > { %6297 = vmatprep.subr.bf16.mxu0 %v6296_v54  ;;  %v6298_v61 = vpack.c.bf16 %v2775_v55, %v2767_v53  ;;  %v2784_v62 = vcvt.s32.f32 %v1704_v20  ;;  %v1714_v63 = vunpack.c.3.s8 %v772_v50  ;;  %6565 = vmatprep.subr.bf16.mxu1 %v6564_v57  ;;  %v1703_v5 = vunpack.c.0.s8 %v770_v47 }
 0x38d   : > { %v2792_v2 = vcvt.s32.f32 %v1712_v59  ;;  %v2786_v3 = vcvt.s32.f32 %v1706_v60  ;;  %v1711_v6 = vunpack.c.0.s8 %v772_v50  ;;  %v6566_v8 = vpack.c.bf16 %v2777_v36, %v2769_v58  ;;  %v784_v60 = vld [vmem:[%s7537_s12 + $0x758] sm:$0xff] }
 0x38e   : > { %6299 = vmatpush1.bf16.msra.mxu0 %v6298_v61  ;;  %v2794_v9 = vcvt.s32.f32 %v1714_v63  ;;  %v1705_v12 = vunpack.c.2.s8 %v770_v47  ;;  %v1713_v15 = vunpack.c.2.s8 %v772_v50  ;;  %v2783_v4 = vcvt.s32.f32 %v1703_v5 }
 0x38f   : > { %v6300_v16 = vpack.c.bf16 %v2792_v2, %v2784_v62  ;;  %v2791_v19 = vcvt.s32.f32 %v1711_v6  ;;  %v1720_v21 = vunpack.c.1.s8 %v774_v0  ;;  %6567 = vmatpush1.bf16.msra.mxu1 %v6566_v8  ;;  %v1728_v29 = vunpack.c.1.s8 %v776_v13 }
 0x390   : > { %v6568_v22 = vpack.c.bf16 %v2794_v9, %v2786_v3  ;;  %v2785_v24 = vcvt.s32.f32 %v1705_v12  ;;  %v2793_v26 = vcvt.s32.f32 %v1713_v15  ;;  %v1722_v33 = vunpack.c.3.s8 %v774_v0 }
 0x391   : > { %6301 = vmatprep.subr.bf16.mxu0 %v6300_v16  ;;  %v6302_v31 = vpack.c.bf16 %v2791_v19, %v2783_v4  ;;  %v2800_v27 = vcvt.s32.f32 %v1720_v21  ;;  %v1730_v40 = vunpack.c.3.s8 %v776_v13  ;;  %v2808_v28 = vcvt.s32.f32 %v1728_v29  ;;  %v786_v19 = vld [vmem:[%s7537_s12 + $0x768] sm:$0xff]  ;;  %v788_v29 = vld [vmem:[%s7537_s12 + $0x778] sm:$0xff] }
 0x392   : > { %6569 = vmatprep.subr.bf16.mxu1 %v6568_v22  ;;  %v6570_v38 = vpack.c.bf16 %v2793_v26, %v2785_v24  ;;  %v1719_v39 = vunpack.c.0.s8 %v774_v0  ;;  %v1727_v41 = vunpack.c.0.s8 %v776_v13  ;;  %v2802_v44 = vcvt.s32.f32 %v1722_v33 }
 0x393   : > { %6303 = vmatpush1.bf16.msra.mxu0 %v6302_v31  ;;  %v2810_v43 = vcvt.s32.f32 %v1730_v40  ;;  %v1721_v45 = vunpack.c.2.s8 %v774_v0  ;;  %v1729_v46 = vunpack.c.2.s8 %v776_v13  ;;  %v6304_v47 = vpack.c.bf16 %v2808_v28, %v2800_v27 }
 0x394   : > { %6571 = vmatpush1.bf16.msra.mxu1 %v6570_v38  ;;  %v2799_v48 = vcvt.s32.f32 %v1719_v39  ;;  %v2807_v23 = vcvt.s32.f32 %v1727_v41  ;;  %v1736_v49 = vunpack.c.1.s8 %v778_v37  ;;  %v1744_v52 = vunpack.c.1.s8 %v780_v42 }
 0x395   : > { %v6572_v18 = vpack.c.bf16 %v2810_v43, %v2802_v44  ;;  %v2801_v50 = vcvt.s32.f32 %v1721_v45  ;;  %v2809_v51 = vcvt.s32.f32 %v1729_v46  ;;  %6305 = vmatprep.subr.bf16.mxu0 %v6304_v47  ;;  %v1738_v54 = vunpack.c.3.s8 %v778_v37 }
 0x396   : > { %v6306_v53 = vpack.c.bf16 %v2807_v23, %v2799_v48  ;;  %v2816_v17 = vcvt.s32.f32 %v1736_v49  ;;  %v1746_v55 = vunpack.c.3.s8 %v780_v42  ;;  %v2824_v57 = vcvt.s32.f32 %v1744_v52  ;;  %v790_v23 = vld [vmem:[%s7537_s12 + $0x788] sm:$0xff]  ;;  %v792_v52 = vld [vmem:[%s7537_s12 + $0x798] sm:$0xff] }
 0x397   : > { %6573 = vmatprep.subr.bf16.mxu1 %v6572_v18  ;;  %v6574_v20 = vpack.c.bf16 %v2809_v51, %v2801_v50  ;;  %v1735_v58 = vunpack.c.0.s8 %v778_v37  ;;  %v1743_v59 = vunpack.c.0.s8 %v780_v42  ;;  %v2818_v61 = vcvt.s32.f32 %v1738_v54 }
 0x398   : > { %6307 = vmatpush1.bf16.msra.mxu0 %v6306_v53  ;;  %v2826_v36 = vcvt.s32.f32 %v1746_v55  ;;  %v1737_v62 = vunpack.c.2.s8 %v778_v37  ;;  %v1745_v63 = vunpack.c.2.s8 %v780_v42  ;;  %v6308_v0 = vpack.c.bf16 %v2824_v57, %v2816_v17 }
 0x399   : > { %6575 = vmatpush1.bf16.msra.mxu1 %v6574_v20  ;;  %v2815_v2 = vcvt.s32.f32 %v1735_v58  ;;  %v2823_v3 = vcvt.s32.f32 %v1743_v59  ;;  %v1752_v5 = vunpack.c.1.s8 %v782_v56  ;;  %v1760_v9 = vunpack.c.1.s8 %v784_v60 }
 0x39a   : > { %v6576_v6 = vpack.c.bf16 %v2826_v36, %v2818_v61  ;;  %v2817_v13 = vcvt.s32.f32 %v1737_v62  ;;  %v2825_v8 = vcvt.s32.f32 %v1745_v63  ;;  %6309 = vmatprep.subr.bf16.mxu0 %v6308_v0  ;;  %v1754_v16 = vunpack.c.3.s8 %v782_v56 }
 0x39b   : > { %v6310_v12 = vpack.c.bf16 %v2823_v3, %v2815_v2  ;;  %v2832_v15 = vcvt.s32.f32 %v1752_v5  ;;  %v1762_v4 = vunpack.c.3.s8 %v784_v60  ;;  %v2840_v22 = vcvt.s32.f32 %v1760_v9  ;;  %v794_v3 = vld [vmem:[%s7537_s12 + $0x7a8] sm:$0xff]  ;;  %v796_v9 = vld [vmem:[%s7537_s12 + $0x7b8] sm:$0xff] }
 0x39c   : > { %6577 = vmatprep.subr.bf16.mxu1 %v6576_v6  ;;  %v6578_v21 = vpack.c.bf16 %v2825_v8, %v2817_v13  ;;  %v1751_v24 = vunpack.c.0.s8 %v782_v56  ;;  %v1759_v26 = vunpack.c.0.s8 %v784_v60  ;;  %v2834_v31 = vcvt.s32.f32 %v1754_v16 }
 0x39d   : > { %6311 = vmatpush1.bf16.msra.mxu0 %v6310_v12  ;;  %v2842_v27 = vcvt.s32.f32 %v1762_v4  ;;  %v1753_v33 = vunpack.c.2.s8 %v782_v56  ;;  %v1761_v40 = vunpack.c.2.s8 %v784_v60  ;;  %v6312_v37 = vpack.c.bf16 %v2840_v22, %v2832_v15 }
 0x39e   : > { %6579 = vmatpush1.bf16.msra.mxu1 %v6578_v21  ;;  %v2831_v38 = vcvt.s32.f32 %v1751_v24  ;;  %v2839_v28 = vcvt.s32.f32 %v1759_v26  ;;  %v1768_v39 = vunpack.c.1.s8 %v786_v19  ;;  %v1776_v43 = vunpack.c.1.s8 %v788_v29 }
 0x39f   : > { %v6580_v41 = vpack.c.bf16 %v2842_v27, %v2834_v31  ;;  %v2833_v42 = vcvt.s32.f32 %v1753_v33  ;;  %v2841_v44 = vcvt.s32.f32 %v1761_v40  ;;  %6313 = vmatprep.subr.bf16.mxu0 %v6312_v37  ;;  %v1770_v47 = vunpack.c.3.s8 %v786_v19 }
 0x3a0   : > { %v6314_v45 = vpack.c.bf16 %v2839_v28, %v2831_v38  ;;  %v2848_v46 = vcvt.s32.f32 %v1768_v39  ;;  %v1778_v48 = vunpack.c.3.s8 %v788_v29  ;;  %v2856_v18 = vcvt.s32.f32 %v1776_v43  ;;  %v798_v28 = vld [vmem:[%s7537_s12 + $0x7c8] sm:$0xff]  ;;  %v800_v43 = vld [vmem:[%s7537_s12 + $0x7d8] sm:$0xff] }
 0x3a1   : > { %6581 = vmatprep.subr.bf16.mxu1 %v6580_v41  ;;  %v6582_v49 = vpack.c.bf16 %v2841_v44, %v2833_v42  ;;  %v1767_v50 = vunpack.c.0.s8 %v786_v19  ;;  %v1775_v51 = vunpack.c.0.s8 %v788_v29  ;;  %v2850_v53 = vcvt.s32.f32 %v1770_v47 }
 0x3a2   : > { %6315 = vmatpush1.bf16.msra.mxu0 %v6314_v45  ;;  %v2858_v17 = vcvt.s32.f32 %v1778_v48  ;;  %v1769_v54 = vunpack.c.2.s8 %v786_v19  ;;  %v1777_v55 = vunpack.c.2.s8 %v788_v29  ;;  %v6316_v56 = vpack.c.bf16 %v2856_v18, %v2848_v46 }
 0x3a3   : > { %6583 = vmatpush1.bf16.msra.mxu1 %v6582_v49  ;;  %v2847_v20 = vcvt.s32.f32 %v1767_v50  ;;  %v2855_v57 = vcvt.s32.f32 %v1775_v51  ;;  %v1784_v58 = vunpack.c.1.s8 %v790_v23  ;;  %v1792_v36 = vunpack.c.1.s8 %v792_v52 }
 0x3a4   : > { %v6584_v59 = vpack.c.bf16 %v2858_v17, %v2850_v53  ;;  %v2849_v60 = vcvt.s32.f32 %v1769_v54  ;;  %v2857_v61 = vcvt.s32.f32 %v1777_v55  ;;  %6317 = vmatprep.subr.bf16.mxu0 %v6316_v56  ;;  %v1786_v0 = vunpack.c.3.s8 %v790_v23 }
 0x3a5   : > { %v6318_v62 = vpack.c.bf16 %v2855_v57, %v2847_v20  ;;  %v2864_v63 = vcvt.s32.f32 %v1784_v58  ;;  %v1794_v2 = vunpack.c.3.s8 %v792_v52  ;;  %v2872_v6 = vcvt.s32.f32 %v1792_v36  ;;  %v802_v57 = vld [vmem:[%s7537_s12 + $0x7e8] sm:$0xff]  ;;  %v804_v36 = vld [vmem:[%s7537_s12 + $0x7f8] sm:$0xff] }
 0x3a6   : > { %6585 = vmatprep.subr.bf16.mxu1 %v6584_v59  ;;  %v6586_v5 = vpack.c.bf16 %v2857_v61, %v2849_v60  ;;  %v1783_v13 = vunpack.c.0.s8 %v790_v23  ;;  %v1791_v8 = vunpack.c.0.s8 %v792_v52  ;;  %v2866_v12 = vcvt.s32.f32 %v1786_v0 }
 0x3a7   : > { %6319 = vmatpush1.bf16.msra.mxu0 %v6318_v62  ;;  %v2874_v15 = vcvt.s32.f32 %v1794_v2  ;;  %v1785_v16 = vunpack.c.2.s8 %v790_v23  ;;  %v1793_v4 = vunpack.c.2.s8 %v792_v52  ;;  %v6320_v19 = vpack.c.bf16 %v2872_v6, %v2864_v63 }
 0x3a8   : > { %6587 = vmatpush1.bf16.msra.mxu1 %v6586_v5  ;;  %v2863_v21 = vcvt.s32.f32 %v1783_v13  ;;  %v2871_v22 = vcvt.s32.f32 %v1791_v8  ;;  %v1800_v24 = vunpack.c.1.s8 %v794_v3  ;;  %v1808_v27 = vunpack.c.1.s8 %v796_v9 }
 0x3a9   : > { %v6588_v26 = vpack.c.bf16 %v2874_v15, %v2866_v12  ;;  %v2865_v29 = vcvt.s32.f32 %v1785_v16  ;;  %v2873_v31 = vcvt.s32.f32 %v1793_v4  ;;  %6321 = vmatprep.subr.bf16.mxu0 %v6320_v19  ;;  %v1802_v37 = vunpack.c.3.s8 %v794_v3 }
 0x3aa   : > { %v6322_v33 = vpack.c.bf16 %v2871_v22, %v2863_v21  ;;  %v2880_v40 = vcvt.s32.f32 %v1800_v24  ;;  %v1810_v38 = vunpack.c.3.s8 %v796_v9  ;;  %v2888_v41 = vcvt.s32.f32 %v1808_v27  ;;  %v806_v22 = vld [vmem:[%s7537_s12 + $0x808] sm:$0xff]  ;;  %v808_v27 = vld [vmem:[%s7537_s12 + $0x818] sm:$0xff] }
 0x3ab   : > { %6589 = vmatprep.subr.bf16.mxu1 %v6588_v26  ;;  %v6590_v39 = vpack.c.bf16 %v2873_v31, %v2865_v29  ;;  %v1799_v42 = vunpack.c.0.s8 %v794_v3  ;;  %v1807_v44 = vunpack.c.0.s8 %v796_v9  ;;  %v2882_v45 = vcvt.s32.f32 %v1802_v37 }
 0x3ac   : > { %6323 = vmatpush1.bf16.msra.mxu0 %v6322_v33  ;;  %v2890_v46 = vcvt.s32.f32 %v1810_v38  ;;  %v1801_v47 = vunpack.c.2.s8 %v794_v3  ;;  %v1809_v48 = vunpack.c.2.s8 %v796_v9  ;;  %v6324_v23 = vpack.c.bf16 %v2888_v41, %v2880_v40 }
 0x3ad   : > { %6591 = vmatpush1.bf16.msra.mxu1 %v6590_v39  ;;  %v2879_v49 = vcvt.s32.f32 %v1799_v42  ;;  %v2887_v18 = vcvt.s32.f32 %v1807_v44  ;;  %v1816_v50 = vunpack.c.1.s8 %v798_v28  ;;  %v1824_v17 = vunpack.c.1.s8 %v800_v43 }
 0x3ae   : > { %v6592_v51 = vpack.c.bf16 %v2890_v46, %v2882_v45  ;;  %v2881_v52 = vcvt.s32.f32 %v1801_v47  ;;  %v2889_v53 = vcvt.s32.f32 %v1809_v48  ;;  %6325 = vmatprep.subr.bf16.mxu0 %v6324_v23  ;;  %v1818_v56 = vunpack.c.3.s8 %v798_v28 }
 0x3af   : > { %v6326_v54 = vpack.c.bf16 %v2887_v18, %v2879_v49  ;;  %v2896_v55 = vcvt.s32.f32 %v1816_v50  ;;  %v1826_v20 = vunpack.c.3.s8 %v800_v43  ;;  %v2904_v59 = vcvt.s32.f32 %v1824_v17  ;;  %v810_v18 = vld [vmem:[%s7537_s12 + $0x828] sm:$0xff]  ;;  %v812_v17 = vld [vmem:[%s7537_s12 + $0x838] sm:$0xff] }
 0x3b0   : > { %6593 = vmatprep.subr.bf16.mxu1 %v6592_v51  ;;  %v6594_v58 = vpack.c.bf16 %v2889_v53, %v2881_v52  ;;  %v1815_v60 = vunpack.c.0.s8 %v798_v28  ;;  %v1823_v61 = vunpack.c.0.s8 %v800_v43  ;;  %v2898_v62 = vcvt.s32.f32 %v1818_v56 }
 0x3b1   : > { %6327 = vmatpush1.bf16.msra.mxu0 %v6326_v54  ;;  %v2906_v63 = vcvt.s32.f32 %v1826_v20  ;;  %v1817_v0 = vunpack.c.2.s8 %v798_v28  ;;  %v1825_v2 = vunpack.c.2.s8 %v800_v43  ;;  %v6328_v3 = vpack.c.bf16 %v2904_v59, %v2896_v55 }
 0x3b2   : > { %6595 = vmatpush1.bf16.msra.mxu1 %v6594_v58  ;;  %v2895_v5 = vcvt.s32.f32 %v1815_v60  ;;  %v2903_v6 = vcvt.s32.f32 %v1823_v61  ;;  %v1832_v13 = vunpack.c.1.s8 %v802_v57  ;;  %v1840_v15 = vunpack.c.1.s8 %v804_v36 }
 0x3b3   : > { %v6596_v8 = vpack.c.bf16 %v2906_v63, %v2898_v62  ;;  %v2897_v9 = vcvt.s32.f32 %v1817_v0  ;;  %v2905_v12 = vcvt.s32.f32 %v1825_v2  ;;  %6329 = vmatprep.subr.bf16.mxu0 %v6328_v3  ;;  %v1834_v19 = vunpack.c.3.s8 %v802_v57 }
 0x3b4   : > { %v6330_v16 = vpack.c.bf16 %v2903_v6, %v2895_v5  ;;  %v2912_v4 = vcvt.s32.f32 %v1832_v13  ;;  %v1842_v21 = vunpack.c.3.s8 %v804_v36  ;;  %v2920_v26 = vcvt.s32.f32 %v1840_v15  ;;  %v814_v6 = vld [vmem:[%s7537_s12 + $0x848] sm:$0xff]  ;;  %v816_v15 = vld [vmem:[%s7537_s12 + $0x858] sm:$0xff] }
 0x3b5   : > { %6597 = vmatprep.subr.bf16.mxu1 %v6596_v8  ;;  %v6598_v24 = vpack.c.bf16 %v2905_v12, %v2897_v9  ;;  %v1831_v29 = vunpack.c.0.s8 %v802_v57  ;;  %v1839_v31 = vunpack.c.0.s8 %v804_v36  ;;  %v2914_v33 = vcvt.s32.f32 %v1834_v19 }
 0x3b6   : > { %6331 = vmatpush1.bf16.msra.mxu0 %v6330_v16  ;;  %v2922_v40 = vcvt.s32.f32 %v1842_v21  ;;  %v1833_v37 = vunpack.c.2.s8 %v802_v57  ;;  %v1841_v38 = vunpack.c.2.s8 %v804_v36  ;;  %v6332_v28 = vpack.c.bf16 %v2920_v26, %v2912_v4 }
 0x3b7   : > { %6599 = vmatpush1.bf16.msra.mxu1 %v6598_v24  ;;  %v2911_v39 = vcvt.s32.f32 %v1831_v29  ;;  %v2919_v41 = vcvt.s32.f32 %v1839_v31  ;;  %v1848_v42 = vunpack.c.1.s8 %v806_v22  ;;  %v1856_v46 = vunpack.c.1.s8 %v808_v27 }
 0x3b8   : > { %v6600_v44 = vpack.c.bf16 %v2922_v40, %v2914_v33  ;;  %v2913_v43 = vcvt.s32.f32 %v1833_v37  ;;  %v2921_v45 = vcvt.s32.f32 %v1841_v38  ;;  %6333 = vmatprep.subr.bf16.mxu0 %v6332_v28  ;;  %v1850_v23 = vunpack.c.3.s8 %v806_v22 }
 0x3b9   : > { %v6334_v47 = vpack.c.bf16 %v2919_v41, %v2911_v39  ;;  %v2928_v48 = vcvt.s32.f32 %v1848_v42  ;;  %v1858_v49 = vunpack.c.3.s8 %v808_v27  ;;  %v2936_v51 = vcvt.s32.f32 %v1856_v46  ;;  %v818_v39 = vld [vmem:[%s7537_s12 + $0x868] sm:$0xff] }
 0x3ba   : > { %6601 = vmatprep.subr.bf16.mxu1 %v6600_v44  ;;  %v6602_v50 = vpack.c.bf16 %v2921_v45, %v2913_v43  ;;  %v1847_v52 = vunpack.c.0.s8 %v806_v22  ;;  %v1855_v53 = vunpack.c.0.s8 %v808_v27  ;;  %v2930_v54 = vcvt.s32.f32 %v1850_v23 }
 0x3bb   : > { %6335 = vmatpush1.bf16.msra.mxu0 %v6334_v47  ;;  %v2938_v55 = vcvt.s32.f32 %v1858_v49  ;;  %v1849_v56 = vunpack.c.2.s8 %v806_v22  ;;  %v1857_v20 = vunpack.c.2.s8 %v808_v27  ;;  %v6336_v57 = vpack.c.bf16 %v2936_v51, %v2928_v48 }
 0x3bc   : > { %6603 = vmatpush1.bf16.msra.mxu1 %v6602_v50  ;;  %v2927_v58 = vcvt.s32.f32 %v1847_v52  ;;  %v2935_v59 = vcvt.s32.f32 %v1855_v53  ;;  %v1864_v60 = vunpack.c.1.s8 %v810_v18  ;;  %v1872_v63 = vunpack.c.1.s8 %v812_v17 }
 0x3bd   : > { %v6604_v61 = vpack.c.bf16 %v2938_v55, %v2930_v54  ;;  %v2929_v36 = vcvt.s32.f32 %v1849_v56  ;;  %v2937_v62 = vcvt.s32.f32 %v1857_v20  ;;  %6337 = vmatprep.subr.bf16.mxu0 %v6336_v57  ;;  %v1866_v3 = vunpack.c.3.s8 %v810_v18 }
 0x3be   : > { %4382 = vmatmul.mubr.f32.vlgmr.msra.gmra.mrb[2].mxu0 %v7795_v1  ;;  %v6338_v0 = vpack.c.bf16 %v2935_v59, %v2927_v58  ;;  %v2944_v2 = vcvt.s32.f32 %v1864_v60  ;;  %v1874_v5 = vunpack.c.3.s8 %v812_v17  ;;  %v2952_v8 = vcvt.s32.f32 %v1872_v63  ;;  %v4923_v58 = vld [vmem:[%s7549_s2 + $0x8] sm:$0xff] }
 0x3bf   : > { %6605 = vmatprep.subr.bf16.mxu1 %v6604_v61  ;;  %4737 = vmatmul.mubr.f32.vlgmr.msra.gmra.mrb[2].mxu1 %v7795_v1  ;;  %v6606_v13 = vpack.c.bf16 %v2937_v62, %v2929_v36  ;;  %v1863_v9 = vunpack.c.0.s8 %v810_v18  ;;  %v1871_v12 = vunpack.c.0.s8 %v812_v17  ;;  %v2946_v16 = vcvt.s32.f32 %v1866_v3  ;;  %v4927_v60 = vld [vmem:[%s7549_s2 + $0x28] sm:$0xff]  ;;  %v6809_v3 = vld.sshfl [vmem:[#allocation2 + $0x10] sm:$0x3 pattern:$0x76325410] }
 0x3c0   : > { %6339 = vmatpush1.bf16.msra.mxu0 %v6338_v0  ;;  %v2954_v4 = vcvt.s32.f32 %v1874_v5  ;;  %v1865_v19 = vunpack.c.2.s8 %v810_v18  ;;  %v1873_v21 = vunpack.c.2.s8 %v812_v17  ;;  %4452 = vmatprep.mubr.f32.mxu0 %v7166_v10  ;;  %v6340_v22 = vpack.c.bf16 %v2952_v8, %v2944_v2  ;;  %v4926_v0 = vld [vmem:[%s7549_s2 + $0x20] sm:$0xff] }
 0x3c1   : > { %6607 = vmatpush1.bf16.msra.mxu1 %v6606_v13  ;;  %v2943_v24 = vcvt.s32.f32 %v1863_v9  ;;  %v2951_v26 = vcvt.s32.f32 %v1871_v12  ;;  %v1880_v29 = vunpack.c.1.s8 %v814_v6  ;;  %4807 = vmatprep.mubr.f32.mxu1 %v7166_v10  ;;  %v1888_v33 = vunpack.c.1.s8 %v816_v15  ;;  %v4922_v5 = vld [vmem:[%s7549_s2] sm:$0xff] }
 0x3c2   : > { %v6608_v1 = vpack.c.bf16 %v2954_v4, %v2946_v16  ;;  %v2945_v31 = vcvt.s32.f32 %v1865_v19  ;;  %v2953_v27 = vcvt.s32.f32 %v1873_v21  ;;  %6341 = vmatprep.subr.bf16.mxu0 %v6340_v22  ;;  %v1882_v38 = vunpack.c.3.s8 %v814_v6 }
 0x3c3   : > { %v6342_v40 = vpack.c.bf16 %v2951_v26, %v2943_v24  ;;  %v2960_v37 = vcvt.s32.f32 %v1880_v29  ;;  %v1890_v28 = vunpack.c.3.s8 %v816_v15  ;;  %v2968_v42 = vcvt.s32.f32 %v1888_v33  ;;  %v4924_v29 = vld [vmem:[%s7549_s2 + $0x10] sm:$0xff] }
 0x3c4   : > { %6609 = vmatprep.subr.bf16.mxu1 %v6608_v1  ;;  %v6610_v41 = vpack.c.bf16 %v2953_v27, %v2945_v31  ;;  %v1879_v44 = vunpack.c.0.s8 %v814_v6  ;;  %v1887_v43 = vunpack.c.0.s8 %v816_v15  ;;  %v2962_v45 = vcvt.s32.f32 %v1882_v38 }
 0x3c5   : > { %6343 = vmatpush1.bf16.msra.mxu0 %v6342_v40  ;;  %v2970_v46 = vcvt.s32.f32 %v1890_v28  ;;  %v1881_v47 = vunpack.c.2.s8 %v814_v6  ;;  %v1889_v10 = vunpack.c.2.s8 %v816_v15  ;;  %v6344_v48 = vpack.c.bf16 %v2968_v42, %v2960_v37  ;;  %v4925_v15 = vld [vmem:[%s7549_s2 + $0x18] sm:$0xff] }
 0x3c6   : > { %6611 = vmatpush1.bf16.msra.mxu1 %v6610_v41  ;;  %v2959_v23 = vcvt.s32.f32 %v1879_v44  ;;  %v2967_v49 = vcvt.s32.f32 %v1887_v43  ;;  %v1896_v18 = vunpack.c.1.s8 %v818_v39  ;;  %v1898_v53 = vunpack.c.3.s8 %v818_v39  ;;  %v4929_v43 = vld [vmem:[%s7549_s2 + $0x38] sm:$0xff] }
 0x3c7   : > { %v6612_v50 = vpack.c.bf16 %v2970_v46, %v2962_v45  ;;  %v2961_v51 = vcvt.s32.f32 %v1881_v47  ;;  %v2969_v52 = vcvt.s32.f32 %v1889_v10  ;;  %6345 = vmatprep.subr.bf16.mxu0 %v6344_v48  ;;  %v1895_v55 = vunpack.c.0.s8 %v818_v39 }
 0x3c8   : > { %v6346_v17 = vpack.c.bf16 %v2967_v49, %v2959_v23  ;;  %v2976_v54 = vcvt.s32.f32 %v1896_v18  ;;  %v1897_v56 = vunpack.c.2.s8 %v818_v39  ;;  %v2978_v57 = vcvt.s32.f32 %v1898_v53 }
 0x3c9   : > { %6613 = vmatprep.subr.bf16.mxu1 %v6612_v50  ;;  %v6614_v20 = vpack.c.bf16 %v2969_v52, %v2961_v51  ;;  %v2975_v59 = vcvt.s32.f32 %v1895_v55  ;;  %v4907_v61 = vadd.f32 %v7955_v30, %v7958_v34  ;;  %v6616_v62 = vunpack.c.l.s8.bf16 %v4923_v58 }
 0x3ca   : > { %6347 = vmatpush1.bf16.msra.mxu0 %v6346_v17  ;;  %v2977_v36 = vcvt.s32.f32 %v1897_v56  ;;  %v6632_v63 = vunpack.c.l.s8.bf16 %v4927_v60  ;;  %v6634_v30 = vunpack.c.l.s8.bf16 %v4926_v0  ;;  %v6618_v34 = vunpack.c.l.s8.bf16 %v4922_v5 }
 0x3cb   : > { %6615 = vmatpush1.bf16.msra.mxu1 %v6614_v20  ;;  %4400 = vmatprep.subr.mxu0 %v2976_v54  ;;  %v4915_v2 = vmax.f32 %v4907_v61, 0.0  ;;  %v4818_v6 = vsub.s32 0, %v7650_v11  ;;  %v6620_v13 = vunpack.c.h.s8.bf16 %v4923_v58  ;;  %v4830_v8 = vsub.s32 3, %v7650_v11 }
 0x3cc   : > { %4755 = vmatprep.subr.mxu1 %v2978_v57  ;;  %v6622_v16 = vunpack.c.h.s8.bf16 %v4922_v5  ;;  %v6624_v21 = vunpack.c.l.s8.bf16 %v4925_v15  ;;  %v6626_v31 = vunpack.c.l.s8.bf16 %v4924_v29  ;;  %v4826_v33 = vsub.s32 2, %v7650_v11  ;;  %v4928_v57 = vld [vmem:[%s7549_s2 + $0x30] sm:$0xff] }
 0x3cd   : > { %v4819_v9 = vrot.slane %v7946_v7, %v4818_v6  ;;  %v4831_v12 = vrot.slane %v7946_v7, %v4830_v8  ;;  %v4869_v19 = vrot.slane %v7949_v14, %v4818_v6  ;;  %v4881_v24 = vrot.slane %v7949_v14, %v4830_v8 }
 0x3ce   : > { %4401 = vmatpush1.msra.mxu0 %v2975_v59  ;;  %v6628_v40 = vunpack.c.h.s8.bf16 %v4925_v15  ;;  %v4877_v28 = vrot.slane %v7949_v14, %v4826_v33  ;;  %v6636_v42 = vunpack.c.h.s8.bf16 %v4927_v60  ;;  %v6638_v44 = vunpack.c.h.s8.bf16 %v4926_v0 }
 0x3cf   : > { %4756 = vmatpush1.msra.mxu1 %v2977_v36  ;;  %5500 = vmatmul.mubr.msk.f32.vlgmr.msra.gmra.mrb[2].mxu0 %vm3391_vm2, %v6809_v3  ;;  %v4856_v4 = vmul.f32 %v4819_v9, %v7914_v25  ;;  %v4859_v22 = vmul.f32 %v4831_v12, %v7920_v35  ;;  %v4827_v25 = vrot.slane %v7946_v7, %v4826_v33  ;;  %v6630_v35 = vunpack.c.h.s8.bf16 %v4924_v29  ;;  %v5502_v9 = vld [vmem:[#allocation12] ss:$0 sm:$0xff] }
 0x3d0   : > { %5501 = vmatmul.mubr.msk.f32.vlgmr.msra.gmra.mrb[2].mxu1 %vm3391_vm2, %v6809_v3  ;;  %6617 = vmatprep.subr.bf16.mxu1 %v6616_v62  ;;  %v6640_v45 = vunpack.c.l.s8.bf16 %v4929_v43  ;;  %v4834_v46 = vsub.s32 4, %v7650_v11  ;;  %v4838_v47 = vsub.s32 5, %v7650_v11  ;;  %v6642_v61 = vunpack.c.l.s8.bf16 %v4928_v57 }
 0x3d1   : > { %5058 = vmatprep.mubr.f32.mxu1 %v4915_v2  ;;  %6633 = vmatprep.subr.bf16.mxu0 %v6632_v63  ;;  %v4906_v26 = vadd.f32 %v4869_v19, %v4856_v4  ;;  %v4909_v1 = vadd.f32 %v4881_v24, %v4859_v22  ;;  %v4858_v38 = vmul.f32 %v4827_v25, %v7916_v32  ;;  %v4846_v32 = vsub.s32 7, %v7650_v11 }
 0x3d2   : > { %v4835_v10 = vrot.slane %v7946_v7, %v4834_v46  ;;  %v4839_v48 = vrot.slane %v7946_v7, %v4838_v47  ;;  %v4885_v23 = vrot.slane %v7949_v14, %v4834_v46  ;;  %v4889_v50 = vrot.slane %v7949_v14, %v4838_v47 }
 0x3d3   : > { %v4914_v27 = vmax.f32 %v4906_v26, 0.0  ;;  %v4917_v37 = vmax.f32 %v4909_v1, 0.0  ;;  %v4908_v39 = vadd.f32 %v4877_v28, %v4858_v38  ;;  %v4847_v49 = vrot.slane %v7946_v7, %v4846_v32 }
 0x3d4   : > { %v4897_v17 = vrot.slane %v7949_v14, %v4846_v32  ;;  %v4842_v62 = vsub.s32 6, %v7650_v11  ;;  %v6644_v63 = vunpack.c.h.s8.bf16 %v4929_v43  ;;  %v6646_v3 = vunpack.c.h.s8.bf16 %v4928_v57 }
 0x3d5   : > { %6635 = vmatpush1.bf16.xpose.msra.mxu0 %v6634_v30  ;;  %v4916_v41 = vmax.f32 %v4908_v39, 0.0  ;;  %vm5284_vm3 = vcmask 254976  }
 0x3d6   : > { %6619 = vmatpush1.bf16.xpose.msra.mxu1 %v6618_v34  ;;  %6637 = vmatprep.subr.bf16.mxu0 %v6636_v42  ;;  %v4843_v2 = vrot.slane %v7946_v7, %v4842_v62  ;;  %v4893_v30 = vrot.slane %v7949_v14, %v4842_v62 }
 0x3d7   : > { %6621 = vmatprep.subr.bf16.mxu1 %v6620_v13 }
 0x3dd   : > { %6639 = vmatpush1.bf16.xpose.msra.mxu0 %v6638_v44 }
 0x3de   : > { %6623 = vmatpush1.bf16.xpose.msra.mxu1 %v6622_v16  ;;  %6641 = vmatprep.subr.bf16.mxu0 %v6640_v45  ;;  %v5274_v16 = vld [vmem:[#allocation15] sm:$0x3] }
 0x3df   : > { %6625 = vmatprep.subr.bf16.mxu1 %v6624_v21 }
 0x3e5   : > { %5059 = vmatmul.mubr.f32.vlgmr.msra.gmra.mrb[4].mxu1 %v4914_v27 }
 0x3e6   : > { %6627 = vmatpush1.bf16.xpose.msra.mxu1 %v6626_v31  ;;  %5128 = vmatprep.mubr.f32.mxu1 %v4917_v37 }
 0x3e7   : > { %6629 = vmatprep.subr.bf16.mxu1 %v6628_v40 }
 0x3ee   : > { %6631 = vmatpush1.bf16.xpose.msra.mxu1 %v6630_v35 }
 0x3f5   : > { %5129 = vmatmul.mubr.f32.vlgmr.msra.gmra.mrb[4].mxu1 %v4916_v41 }
 0x4a2   : > { %v4454_v18 = vpop.f32.mrb[2].mxu0 }
 0x4a3   : > { %v4860_v51 = vmul.f32 %v4835_v10, %v4454_v18  ;;  %v4809_v52 = vpop.f32.mrb[2].mxu1  ;;  %v4456_v53 = vpop.f32.mrb[3].mxu0 }
 0x4a4   : > { %v4861_v54 = vmul.f32 %v4839_v48, %v4456_v53  ;;  %v4811_v55 = vpop.f32.mrb[3].mxu1  ;;  %v4862_v5 = vmul.f32 %v4843_v2, %v4809_v52 }
 0x4a5   : > { %v4910_v56 = vadd.f32 %v4885_v23, %v4860_v51  ;;  %v4863_v20 = vmul.f32 %v4847_v49, %v4811_v55 }
 0x4a6   : > { %v4911_v58 = vadd.f32 %v4889_v50, %v4861_v54  ;;  %v4912_v34 = vadd.f32 %v4893_v30, %v4862_v5 }
 0x4a7   : > { %v4913_v59 = vadd.f32 %v4897_v17, %v4863_v20  ;;  %v4918_v36 = vmax.f32 %v4910_v56, 0.0 }
 0x4a8   : > { %v4919_v60 = vmax.f32 %v4911_v58, 0.0  ;;  %v4920_v6 = vmax.f32 %v4912_v34, 0.0 }
 0x4a9   : > { %v4921_v0 = vmax.f32 %v4913_v59, 0.0 }
 0x4aa   : > { %5198 = vmatprep.mubr.f32.mxu0 %v4919_v60 }
 0x4ab   : > { %5199 = vmatmul.mubr.f32.vlgmr.msra.gmra.mrb[4].mxu0 %v4918_v36 }
 0x4ac   : > { %6643 = vmatpush1.bf16.xpose.msra.mxu0 %v6642_v61  ;;  %5268 = vmatprep.mubr.f32.mxu0 %v4921_v0 }
 0x4ad   : > { %6645 = vmatprep.subr.bf16.mxu0 %v6644_v63 }
 0x4b4   : > { %6647 = vmatpush1.bf16.xpose.msra.mxu0 %v6646_v3 }
 0x4bb   : > { %5269 = vmatmul.mubr.f32.vlgmr.msra.gmra.mrb[4].mxu0 %v4920_v6 }
 0x4c8   : > { %v5130_v13 = vpop.f32.mrb[4].mxu1 }
 0x4c9   : > { %v5132_v11 = vpop.f32.mrb[5].mxu1 }
 0x58e   : > { %v5270_v8 = vpop.f32.mrb[4].mxu0 }
 0x58f   : > { %v6648_v12 = vadd.f32 %v5270_v8, %v5130_v13  ;;  %v5272_v15 = vpop.f32.mrb[5].mxu0 }
 0x591   : > { %v5282_v7 = vmul.f32 %v6648_v12, %v5502_v9 }
 0x593   : > { %v5283_v4 = vadd.f32 %v5282_v7, %v5274_v16 }
 0x595   : > { %5285 = vst.msk [vmem:[#allocation15] sm:$0x3] %vm5284_vm3, %v5283_v4 }
 0x596   : > { %7085 = shalt.err (!%p7082_p0)
}
 0x597   : > { %s8129_s16 = sld [smem:[#allocation28_spill]] }
 0x59d   : > { %s7086_s26 = scalar_lea.hbm %s8129_s16, 32 }
 0x59e   : > { %p7087_p11 = scmp.ne.s32.totalorder %s8129_s16, %s7086_s26  ;;  %p7092_p1 = scmp.lt.u32.totalorder %s7086_s26, %s8129_s16 }
 0x5a0   : > { %p7088_p12 = pnand %p7087_p11, %p6763_p9 }
 0x5a2   : > { %p7089_p5 = pneg %p7088_p12 }
 0x5a4   : > { %p7094_p3 = pnand %p7092_p1, %p7089_p5 }
 0x5a6   : > { %7097 = shalt.err (!%p7094_p3)
}
 0x5a7   : > { %6722 = dma.vmem_to_hbm [thread:$0]  (%p6763_p9), %s5294_s24, 32, %s8129_s16, [#allocation4]  }
 0x5a8   : > { %7135 = dma.done.wait (%p6763_p9), [#allocation4], 32  }
 0x5a9   : > { %7137 = vsyncadd (%p6763_p9), [#allocation4], 4294967264 }
 0x5aa PF: > { %s8130_s12 = sld [smem:[#allocation23_spill]]  ;;  %s8131_s17 = sld [smem:[#allocation22_spill]] }
 0x5ab   : > { %s8132_s11 = sld [smem:[#allocation24_spill]]  ;;  %s8133_s30 = smov %s7144_s10 }
 0x5b0   : > { %p20_p7 = scmp.ge.s32.totalorder %s8130_s12, 5   ;;  %s8134_s10 = smov %s8131_s17 }
 0x5b2   :  { %22 = sbr.rel (!%p20_p7) target bundleno = 9 (0x9), region = 156 }
 0x5b9   :  { %5306 = vsyncpa [#allocation3], 1 }
 0x5ba   :  { %5308 = vsyncpa [#allocation3 + $0x1], 1 }
 0x5bb   :  { %5309 = vsyncpa [#allocation6], 1 }
 0x5bc   :  { %5310 = vsyncpa [#allocation14], 1 }
 0x5bd   :  { %5311 = vsyncpa [#allocation4], 1 }
 0x5be   :  { %5313 = vsyncpa [#allocation4 + $0x1], 1 }

</bundles_post_ra>
